<compile_context>
chip_gen: v5e
topology: v5e:2x2
jax: 0.10.0
libtpu: 0.0.40
codegen_flags: <defaults>
</compile_context>

<pallas_src>
import jax
import jax.numpy as jnp
from jax import lax
from jax.experimental import pallas as pl
from jax.experimental.pallas import tpu as pltpu


def _round_up(x, m):
    return (x + m - 1) // m * m


# ----------------------------------------------------------------------------
# LSTM layer kernel.  Input rows are time-major flattened: row = t*BP + b.
# PyTorch gate order i, f, g, o ; c = f*c + i*g ; h = o*tanh(c).
# Gate g lives at lanes [g*HP, g*HP + H) of the padded 4*HP gate vector, so
# padded lanes see zero weights/biases and the padded hidden state stays 0.
# ----------------------------------------------------------------------------
def lstm_chunk_kernel(x_ref, wih_ref, whh_ref, b_ref, out_ref,
                      h_scr, c_scr, gx_scr):
    BP, HP = h_scr.shape
    t_chunk = gx_scr.shape[0] // BP

    @pl.when(pl.program_id(0) == 0)
    def _():
        h_scr[...] = jnp.zeros_like(h_scr)
        c_scr[...] = jnp.zeros_like(c_scr)

    # Hoisted input projection + bias for the whole chunk: one big MXU matmul
    # (T_CHUNK*BP, DP) x (DP, 4*HP) instead of T tiny per-step matmuls.
    gx_scr[...] = (
        jnp.dot(x_ref[...], wih_ref[...], preferred_element_type=jnp.float32)
        + b_ref[...])

    whh = whh_ref[...]            # hoisted weight read (stays resident)
    dot_dtype = whh.dtype

    def step(t, carry):
        h, c = carry
        row = pl.multiple_of(t * BP, BP)          # BP is a multiple of 8
        gates = gx_scr[pl.ds(row, BP), :] + jnp.dot(
            h.astype(dot_dtype), whh, preferred_element_type=jnp.float32)
        i = jax.nn.sigmoid(gates[:, 0 * HP:1 * HP])
        f = jax.nn.sigmoid(gates[:, 1 * HP:2 * HP])
        g = jnp.tanh(gates[:, 2 * HP:3 * HP])
        o = jax.nn.sigmoid(gates[:, 3 * HP:4 * HP])
        c = f * c + i * g
        h = o * jnp.tanh(c)
        out_ref[pl.ds(row, BP), :] = h.astype(out_ref.dtype)
        return h, c

    h_out, c_out = lax.fori_loop(0, t_chunk, step,
                                 (h_scr[...], c_scr[...]), unroll=True)
    h_scr[...] = h_out
    c_scr[...] = c_out


def lstm_layer(x_flat, wih_p, whh_p, b_p, *, BP, T_chunk, n_chunks):
    """x_flat: (T_pad*BP, DP) time-major rows; weights padded/lane-aligned."""
    rows, DP = x_flat.shape
    HP = whh_p.shape[0]
    return pl.pallas_call(
        lstm_chunk_kernel,
        out_shape=jax.ShapeDtypeStruct((rows, HP), jnp.float32),
        grid=(n_chunks,),
        in_specs=[
            pl.BlockSpec((T_chunk * BP, DP), lambda c: (c, 0)),
            pl.BlockSpec((DP, 4 * HP), lambda c: (0, 0)),
            pl.BlockSpec((HP, 4 * HP), lambda c: (0, 0)),
            pl.BlockSpec((1, 4 * HP), lambda c: (0, 0)),
        ],
        out_specs=pl.BlockSpec((T_chunk * BP, HP), lambda c: (c, 0)),
        scratch_shapes=[pltpu.VMEM((BP, HP), jnp.float32),        # h carry
                        pltpu.VMEM((BP, HP), jnp.float32),        # c carry
                        pltpu.VMEM((T_chunk * BP, 4 * HP), jnp.float32)],
        compiler_params=pltpu.CompilerParams(
            dimension_semantics=("arbitrary",),
            vmem_limit_bytes=32 * 1024 * 1024),
    )(x_flat, wih_p, whh_p, b_p)


# ----------------------------------------------------------------------------
# Fused head kernel (linear_1 + silu, + silu(linear_1_) residual, transpose,
# linear_2, + silu(linear_2_) residual, softmax) in feature-major space, so
# every matmul is a standard 2-D contraction (no in-kernel transposes, no HBM
# round-trip of the (B,T,F) intermediate).
#   y_ref : (H, B*T)   columns ordered batch-major (col = b*T + t)
#   w1    : (F, H)  b1: (F, 1)   w1p: (F, F)  b1p: (F, 1)
#   w2    : (T, To) b2: (1, To)  w2p: (To,To) b2p: (1, To)
#   out   : (B, F, To)
# ----------------------------------------------------------------------------
def head_kernel(y_ref, w1_ref, b1_ref, w1p_ref, b1p_ref,
                w2_ref, b2_ref, w2p_ref, b2p_ref, o_ref):
    B = o_ref.shape[0]
    T = w2_ref.shape[0]
    dot_dtype = w1_ref.dtype

    y = y_ref[...]                                             # (H, B*T)
    # pred = silu(linear_1(output)) — all (b, t) columns in one matmul.
    a = jnp.dot(w1_ref[...], y,
                preferred_element_type=jnp.float32) + b1_ref[...]
    p = a * jax.nn.sigmoid(a)                                  # (F, B*T)
    a2 = jnp.dot(w1p_ref[...], p.astype(dot_dtype),
                 preferred_element_type=jnp.float32) + b1p_ref[...]
    p = p + a2 * jax.nn.sigmoid(a2)                            # pred + pred_

    w2 = w2_ref[...]
    b2 = b2_ref[...]
    w2p = w2p_ref[...]
    b2p = b2p_ref[...]
    for b in range(B):                                         # static, B small
        p_b = p[:, b * T:(b + 1) * T]                          # (F, T)
        q = jnp.dot(p_b.astype(dot_dtype), w2,
                    preferred_element_type=jnp.float32) + b2   # (F, To)
        q2 = jnp.dot(q.astype(dot_dtype), w2p,
                     preferred_element_type=jnp.float32) + b2p
        q = q + q2 * jax.nn.sigmoid(q2)
        q = q - jnp.max(q, axis=-1, keepdims=True)
        e = jnp.exp(q)
        o_ref[b] = (e / jnp.sum(e, axis=-1, keepdims=True)).astype(o_ref.dtype)


def head_forward(yT, w1, b1, w1p, b1p, w2, b2, w2p, b2p, *, B):
    H, BT = yT.shape
    F = w1.shape[0]
    T = w2.shape[0]
    To = w2.shape[1]
    return pl.pallas_call(
        head_kernel,
        out_shape=jax.ShapeDtypeStruct((B, F, To), jnp.float32),
        grid=(1,),
        in_specs=[
            pl.BlockSpec((H, BT), lambda i: (0, 0)),
            pl.BlockSpec((F, H), lambda i: (0, 0)),
            pl.BlockSpec((F, 1), lambda i: (0, 0)),
            pl.BlockSpec((F, F), lambda i: (0, 0)),
            pl.BlockSpec((F, 1), lambda i: (0, 0)),
            pl.BlockSpec((T, To), lambda i: (0, 0)),
            pl.BlockSpec((1, To), lambda i: (0, 0)),
            pl.BlockSpec((To, To), lambda i: (0, 0)),
            pl.BlockSpec((1, To), lambda i: (0, 0)),
        ],
        out_specs=pl.BlockSpec((B, F, To), lambda i: (0, 0, 0)),
        compiler_params=pltpu.CompilerParams(
            dimension_semantics=("arbitrary",),
            vmem_limit_bytes=32 * 1024 * 1024),
    )(yT, w1, b1, w1p, b1p, w2, b2, w2p, b2p)


# ----------------------------------------------------------------------------
# Kernel-facing parameter preparation: transpose, pad to (8,128) boundaries,
# place gate g at lane offset g*HP, optionally cast matmul operands to bf16.
# Padded lanes carry zero weights & biases, so padded hidden state stays 0.
# ----------------------------------------------------------------------------
def prepare_kernel_params(params, dot_dtype=jnp.float32):
    H = params["lstm"][0][1].shape[0]
    HP = _round_up(H, 128)
    kp = {"H": H, "HP": HP, "dot_dtype": dot_dtype, "lstm": []}
    for (w_ih_t, w_hh_t, b) in params["lstm"]:
        d_in = w_ih_t.shape[0]
        DP = _round_up(d_in, 128)
        wih_p = jnp.zeros((DP, 4 * HP), dot_dtype)
        whh_p = jnp.zeros((HP, 4 * HP), dot_dtype)
        b_p = jnp.zeros((1, 4 * HP), jnp.float32)
        for g in range(4):
            wih_p = wih_p.at[:d_in, g * HP:g * HP + H].set(
                w_ih_t[:, g * H:(g + 1) * H].astype(dot_dtype))
            whh_p = whh_p.at[:H, g * HP:g * HP + H].set(
                w_hh_t[:, g * H:(g + 1) * H].astype(dot_dtype))
            b_p = b_p.at[:, g * HP:g * HP + H].set(b[:, g * H:(g + 1) * H])
        kp["lstm"].append((wih_p, whh_p, b_p))
    kp["w1"] = params["w1_t"].T.astype(dot_dtype)     # (F, H)  = torch W1
    kp["b1"] = params["b1"].T                         # (F, 1)
    kp["w1p"] = params["w1p_t"].T.astype(dot_dtype)   # (F, F)  = torch W1_
    kp["b1p"] = params["b1p"].T                       # (F, 1)
    kp["w2"] = params["w2_t"].astype(dot_dtype)       # (T, To) = torch W2^T
    kp["b2"] = params["b2"]                           # (1, To)
    kp["w2p"] = params["w2p_t"].astype(dot_dtype)     # (To,To) = torch W2_^T
    kp["b2p"] = params["b2p"]                         # (1, To)
    return kp


# ----------------------------------------------------------------------------
# Full forward (Pallas for all matmul / recurrence / activation work; plain
# XLA transposes/pads as glue, mirroring the PyTorch module's transposes).
# ----------------------------------------------------------------------------
def lstm_module_forward(x_bct, kp):
    B, C, T = x_bct.shape
    H, HP = kp["H"], kp["HP"]
    dot_dtype = kp["dot_dtype"]

    BP = _round_up(B, 8)
    T_chunk = min(T, 16)
    n_chunks = pl.cdiv(T, T_chunk)
    T_pad = n_chunks * T_chunk

    DP0 = kp["lstm"][0][0].shape[0]
    x_tbd = jnp.transpose(x_bct, (2, 0, 1))                 # (T, B, C)
    x_p = jnp.zeros((T_pad, BP, DP0), dot_dtype)
    x_p = x_p.at[:T, :B, :C].set(x_tbd.astype(dot_dtype))
    h = x_p.reshape(T_pad * BP, DP0)                        # row = t*BP + b

    for (wih_p, whh_p, b_p) in kp["lstm"]:
        h = lstm_layer(h, wih_p, whh_p, b_p,
                       BP=BP, T_chunk=T_chunk, n_chunks=n_chunks)
        h = h.astype(dot_dtype)

    h3 = h.reshape(T_pad, BP, HP)[:T, :B, :H]               # (T, B, H)
    yT = jnp.transpose(h3, (2, 1, 0)).reshape(H, B * T)     # col = b*T + t
    return head_forward(yT, kp["w1"], kp["b1"], kp["w1p"], kp["b1p"],
                        kp["w2"], kp["b2"], kp["w2p"], kp["b2p"], B=B)


# ----------------------------------------------------------------------------
# Pure-JAX reference (same math, no Pallas) for verification.
# ----------------------------------------------------------------------------
def reference_forward(x_bct, params):
    h = jnp.transpose(x_bct, (0, 2, 1))            # (B, T, C)
    for (w_ih_t, w_hh_t, b) in params["lstm"]:
        B, T, _ = h.shape
        H = w_hh_t.shape[0]

        def step(carry, x_t):
            hp, cp = carry
            gates = x_t @ w_ih_t + hp @ w_hh_t + b[0]
            i = jax.nn.sigmoid(gates[:, :H])
            f = jax.nn.sigmoid(gates[:, H:2 * H])
            g = jnp.tanh(gates[:, 2 * H:3 * H])
            o = jax.nn.sigmoid(gates[:, 3 * H:])
            c = f * cp + i * g
            hn = o * jnp.tanh(c)
            return (hn, c), hn

        xs = jnp.transpose(h, (1, 0, 2))
        _, ys = jax.lax.scan(step, (jnp.zeros((B, H)), jnp.zeros((B, H))), xs)
        h = jnp.transpose(ys, (1, 0, 2))

    silu = lambda v: v * jax.nn.sigmoid(v)
    p = silu(h @ params["w1_t"] + params["b1"][0])
    p = p + silu(p @ params["w1p_t"] + params["b1p"][0])
    p = jnp.transpose(p, (0, 2, 1))
    q = p @ params["w2_t"] + params["b2"][0]
    q = q + silu(q @ params["w2p_t"] + params["b2p"][0])
    return jax.nn.softmax(q, axis=-1)


# ----------------------------------------------------------------------------
# Deterministic parameter construction (shapes match nn.LSTM / nn.Linear).
# ----------------------------------------------------------------------------
def make_params(key, feature, seq, hidden, num_layers, out_feat, out_seq):
    def uni(k, shape, fan_in):
        bound = 1.0 / jnp.sqrt(jnp.float32(fan_in))
        return jax.random.uniform(k, shape, jnp.float32, -bound, bound)

    params = {"lstm": []}
    d_in = feature
    for _ in range(num_layers):
        key, k1, k2, k3, k4 = jax.random.split(key, 5)
        w_ih = uni(k1, (4 * hidden, d_in), hidden)    # torch weight_ih_l{k}
        w_hh = uni(k2, (4 * hidden, hidden), hidden)  # torch weight_hh_l{k}
        b_ih = uni(k3, (4 * hidden,), hidden)
        b_hh = uni(k4, (4 * hidden,), hidden)
        params["lstm"].append(
            (w_ih.T, w_hh.T, (b_ih + b_hh).reshape(1, 4 * hidden)))
        d_in = hidden

    key, k1, k2, k3, k4, k5, k6, k7, k8 = jax.random.split(key, 9)
    params["w1_t"] = uni(k1, (out_feat, hidden), hidden).T       # (H, F)
    params["b1"] = uni(k2, (out_feat,), hidden).reshape(1, -1)
    params["w1p_t"] = uni(k3, (out_feat, out_feat), out_feat).T  # (F, F)
    params["b1p"] = uni(k4, (out_feat,), out_feat).reshape(1, -1)
    params["w2_t"] = uni(k5, (out_seq, seq), seq).T              # (T, To)
    params["b2"] = uni(k6, (out_seq,), seq).reshape(1, -1)
    params["w2p_t"] = uni(k7, (out_seq, out_seq), out_seq).T     # (To, To)
    params["b2p"] = uni(k8, (out_seq,), out_seq).reshape(1, -1)
    return params


if __name__ == "__main__":
    # params.input_size = (batch, feature, seq); hidden_size = (hidden, layers)
    # params.output_size = (out_feature, out_seq)
    B, C, T = 2, 4, 8
    H, L = 32, 2
    F_OUT, T_OUT = 4, 8

    key = jax.random.PRNGKey(0)
    key, kx, kparam = jax.random.split(key, 3)
    x = jax.random.normal(kx, (B, C, T), jnp.float32)
    params = make_params(kparam, C, T, H, L, F_OUT, T_OUT)
    ref = reference_forward(x, params)

    # float32 run — tight numerical check against the pure-JAX reference.
    kp32 = prepare_kernel_params(params, dot_dtype=jnp.float32)
    out = jax.jit(lambda xx: lstm_module_forward(xx, kp32))(x)
    out = jax.block_until_ready(out)
    assert out.shape == (B, F_OUT, T_OUT), out.shape
    assert jnp.allclose(out, ref, atol=1e-4, rtol=1e-4), \
        float(jnp.max(jnp.abs(out - ref)))

    # bfloat16-weight run (MXU-friendly on v6e/v7x; activations stay f32) —
    # loose sanity check only (bf16 matmuls differ from the f32 reference).
    kpbf = prepare_kernel_params(params, dot_dtype=jnp.bfloat16)
    out_bf = jax.jit(lambda xx: lstm_module_forward(xx, kpbf))(x)
    out_bf = jax.block_until_ready(out_bf)
    assert out_bf.shape == (B, F_OUT, T_OUT)
    assert bool(jnp.all(jnp.isfinite(out_bf)))
    assert float(jnp.max(jnp.abs(out_bf - ref))) < 0.1

    print("KERNEL_OK")
</pallas_src>

<mosaic_0001>
module attributes {stable_mosaic.version = 11 : i64} {
  func.func @lstm_chunk_kernel(%arg0: i32, %arg1: memref<64x128xf32, #tpu.memory_space<vmem>>, %arg2: memref<128x512xf32, #tpu.memory_space<vmem>>, %arg3: memref<128x512xf32, #tpu.memory_space<vmem>>, %arg4: memref<1x512xf32, #tpu.memory_space<vmem>>, %arg5: memref<64x128xf32, #tpu.memory_space<vmem>>, %arg6: memref<8x128xf32, #tpu.memory_space<vmem>>, %arg7: memref<8x128xf32, #tpu.memory_space<vmem>>, %arg8: memref<64x512xf32, #tpu.memory_space<vmem>>) attributes {dimension_semantics = [#tpu.dimension_semantics<arbitrary>], iteration_bounds = array<i64: 1>, scalar_prefetch = 0 : i64, scratch_operands = 3 : i64, tpu.core_type = #tpu.core_type<tc>, window_params = [{transform_indices = @transform_0, window_bounds = array<i64: 64, 128>}, {pipeline_mode = #tpu.pipeline_mode<synchronous>, transform_indices = @transform_1, window_bounds = array<i64: 128, 512>}, {pipeline_mode = #tpu.pipeline_mode<synchronous>, transform_indices = @transform_2, window_bounds = array<i64: 128, 512>}, {pipeline_mode = #tpu.pipeline_mode<synchronous>, transform_indices = @transform_3, window_bounds = array<i64: 1, 512>}, {transform_indices = @transform_4, window_bounds = array<i64: 64, 128>}]} {
    %c0_i32 = arith.constant 0 : i32
    %0 = arith.cmpi eq, %arg0, %c0_i32 : i32
    %1 = arith.extui %0 : i1 to i32
    %c0_i32_0 = arith.constant 0 : i32
    %2 = arith.cmpi ne, %1, %c0_i32_0 : i32
    scf.if %2 {
      %cst_75 = arith.constant 0.000000e+00 : f32
      %279 = vector.broadcast %cst_75 : f32 to vector<8x128xf32>
      %c0_76 = arith.constant 0 : index
      %c0_77 = arith.constant 0 : index
      %280 = vector.load %arg6[%c0_76, %c0_77] : memref<8x128xf32, #tpu.memory_space<vmem>>, vector<8x128xf32>
      tpu.vector_store %arg6[%c0_76, %c0_77], %279 {strides = array<i32>} : memref<8x128xf32, #tpu.memory_space<vmem>>, vector<8x128xf32>,
      %cst_78 = arith.constant 0.000000e+00 : f32
      %281 = vector.broadcast %cst_78 : f32 to vector<8x128xf32>
      %c0_79 = arith.constant 0 : index
      %c0_80 = arith.constant 0 : index
      %282 = vector.load %arg7[%c0_79, %c0_80] : memref<8x128xf32, #tpu.memory_space<vmem>>, vector<8x128xf32>
      tpu.vector_store %arg7[%c0_79, %c0_80], %281 {strides = array<i32>} : memref<8x128xf32, #tpu.memory_space<vmem>>, vector<8x128xf32>,
    } else {
    }
    %c0 = arith.constant 0 : index
    %c0_1 = arith.constant 0 : index
    %3 = vector.load %arg1[%c0, %c0_1] : memref<64x128xf32, #tpu.memory_space<vmem>>, vector<64x128xf32>
    %c0_2 = arith.constant 0 : index
    %c0_3 = arith.constant 0 : index
    %4 = vector.load %arg2[%c0_2, %c0_3] : memref<128x512xf32, #tpu.memory_space<vmem>>, vector<128x512xf32>
    %cst = arith.constant dense<0.000000e+00> : vector<64x512xf32>
    %5 = tpu.matmul %3, %4, %cst {dimension_numbers = #tpu.dot_dimension_numbers<[1], [0], [0], [1], [0, 0, 1, 1], [], []>} : vector<64x128xf32>, vector<128x512xf32>, vector<64x512xf32> -> vector<64x512xf32>
    %c0_4 = arith.constant 0 : index
    %c0_5 = arith.constant 0 : index
    %6 = vector.load %arg4[%c0_4, %c0_5] : memref<1x512xf32, #tpu.memory_space<vmem>>, vector<1x512xf32>
    %7 = vector.broadcast %6 : vector<1x512xf32> to vector<64x512xf32>
    %8 = arith.addf %5, %7 : vector<64x512xf32>
    %c0_6 = arith.constant 0 : index
    %c0_7 = arith.constant 0 : index
    %9 = vector.load %arg8[%c0_6, %c0_7] : memref<64x512xf32, #tpu.memory_space<vmem>>, vector<64x512xf32>
    tpu.vector_store %arg8[%c0_6, %c0_7], %8 {strides = array<i32>} : memref<64x512xf32, #tpu.memory_space<vmem>>, vector<64x512xf32>,
    %c0_8 = arith.constant 0 : index
    %c0_9 = arith.constant 0 : index
    %10 = vector.load %arg3[%c0_8, %c0_9] : memref<128x512xf32, #tpu.memory_space<vmem>>, vector<128x512xf32>
    %c0_10 = arith.constant 0 : index
    %c0_11 = arith.constant 0 : index
    %11 = vector.load %arg6[%c0_10, %c0_11] : memref<8x128xf32, #tpu.memory_space<vmem>>, vector<8x128xf32>
    %c0_12 = arith.constant 0 : index
    %c0_13 = arith.constant 0 : index
    %12 = vector.load %arg7[%c0_12, %c0_13] : memref<8x128xf32, #tpu.memory_space<vmem>>, vector<8x128xf32>
    %c0_i32_14 = arith.constant 0 : i32
    %c8_i32 = arith.constant 8 : i32
    %13 = arith.muli %c0_i32_14, %c8_i32 : i32
    %14 = tpu.assume_multiple %13, 8 : i32
    %15 = arith.index_cast %14 : i32 to index
    %c0_15 = arith.constant 0 : index
    %16 = vector.load %arg8[%15, %c0_15] : memref<64x512xf32, #tpu.memory_space<vmem>>, vector<8x512xf32>
    %cst_16 = arith.constant dense<0.000000e+00> : vector<8x512xf32>
    %17 = tpu.matmul %11, %10, %cst_16 {dimension_numbers = #tpu.dot_dimension_numbers<[1], [0], [0], [1], [0, 0, 1, 1], [], []>} : vector<8x128xf32>, vector<128x512xf32>, vector<8x512xf32> -> vector<8x512xf32>
    %18 = arith.addf %16, %17 : vector<8x512xf32>
    %19 = vector.extract_strided_slice %18 {offsets = [0, 0], sizes = [8, 128], strides = [1, 1]} : vector<8x512xf32> to vector<8x128xf32>
    %20 = arith.negf %19 : vector<8x128xf32>
    %21 = math.exp %20 : vector<8x128xf32>
    %cst_17 = arith.constant 1.000000e+00 : f32
    %22 = vector.broadcast %cst_17 : f32 to vector<8x128xf32>
    %23 = arith.addf %22, %21 : vector<8x128xf32>
    %24 = arith.divf %22, %23 : vector<8x128xf32>
    %25 = vector.extract_strided_slice %18 {offsets = [0, 128], sizes = [8, 128], strides = [1, 1]} : vector<8x512xf32> to vector<8x128xf32>
    %26 = arith.negf %25 : vector<8x128xf32>
    %27 = math.exp %26 : vector<8x128xf32>
    %cst_18 = arith.constant 1.000000e+00 : f32
    %28 = vector.broadcast %cst_18 : f32 to vector<8x128xf32>
    %29 = arith.addf %28, %27 : vector<8x128xf32>
    %30 = arith.divf %28, %29 : vector<8x128xf32>
    %31 = vector.extract_strided_slice %18 {offsets = [0, 256], sizes = [8, 128], strides = [1, 1]} : vector<8x512xf32> to vector<8x128xf32>
    %32 = math.tanh %31 : vector<8x128xf32>
    %33 = vector.extract_strided_slice %18 {offsets = [0, 384], sizes = [8, 128], strides = [1, 1]} : vector<8x512xf32> to vector<8x128xf32>
    %34 = arith.negf %33 : vector<8x128xf32>
    %35 = math.exp %34 : vector<8x128xf32>
    %cst_19 = arith.constant 1.000000e+00 : f32
    %36 = vector.broadcast %cst_19 : f32 to vector<8x128xf32>
    %37 = arith.addf %36, %35 : vector<8x128xf32>
    %38 = arith.divf %36, %37 : vector<8x128xf32>
    %39 = arith.mulf %30, %12 : vector<8x128xf32>
    %40 = arith.mulf %24, %32 : vector<8x128xf32>
    %41 = arith.addf %39, %40 : vector<8x128xf32>
    %42 = math.tanh %41 : vector<8x128xf32>
    %43 = arith.mulf %38, %42 : vector<8x128xf32>
    %44 = arith.index_cast %14 : i32 to index
    %c0_20 = arith.constant 0 : index
    %45 = vector.load %arg5[%44, %c0_20] : memref<64x128xf32, #tpu.memory_space<vmem>>, vector<8x128xf32>
    tpu.vector_store %arg5[%44, %c0_20], %43 {strides = array<i32>} : memref<64x128xf32, #tpu.memory_space<vmem>>, vector<8x128xf32>,
    %c1_i32 = arith.constant 1 : i32
    %c8_i32_21 = arith.constant 8 : i32
    %46 = arith.muli %c1_i32, %c8_i32_21 : i32
    %47 = tpu.assume_multiple %46, 8 : i32
    %48 = arith.index_cast %47 : i32 to index
    %c0_22 = arith.constant 0 : index
    %49 = vector.load %arg8[%48, %c0_22] : memref<64x512xf32, #tpu.memory_space<vmem>>, vector<8x512xf32>
    %cst_23 = arith.constant dense<0.000000e+00> : vector<8x512xf32>
    %50 = tpu.matmul %43, %10, %cst_23 {dimension_numbers = #tpu.dot_dimension_numbers<[1], [0], [0], [1], [0, 0, 1, 1], [], []>} : vector<8x128xf32>, vector<128x512xf32>, vector<8x512xf32> -> vector<8x512xf32>
    %51 = arith.addf %49, %50 : vector<8x512xf32>
    %52 = vector.extract_strided_slice %51 {offsets = [0, 0], sizes = [8, 128], strides = [1, 1]} : vector<8x512xf32> to vector<8x128xf32>
    %53 = arith.negf %52 : vector<8x128xf32>
    %54 = math.exp %53 : vector<8x128xf32>
    %cst_24 = arith.constant 1.000000e+00 : f32
    %55 = vector.broadcast %cst_24 : f32 to vector<8x128xf32>
    %56 = arith.addf %55, %54 : vector<8x128xf32>
    %57 = arith.divf %55, %56 : vector<8x128xf32>
    %58 = vector.extract_strided_slice %51 {offsets = [0, 128], sizes = [8, 128], strides = [1, 1]} : vector<8x512xf32> to vector<8x128xf32>
    %59 = arith.negf %58 : vector<8x128xf32>
    %60 = math.exp %59 : vector<8x128xf32>
    %cst_25 = arith.constant 1.000000e+00 : f32
    %61 = vector.broadcast %cst_25 : f32 to vector<8x128xf32>
    %62 = arith.addf %61, %60 : vector<8x128xf32>
    %63 = arith.divf %61, %62 : vector<8x128xf32>
    %64 = vector.extract_strided_slice %51 {offsets = [0, 256], sizes = [8, 128], strides = [1, 1]} : vector<8x512xf32> to vector<8x128xf32>
    %65 = math.tanh %64 : vector<8x128xf32>
    %66 = vector.extract_strided_slice %51 {offsets = [0, 384], sizes = [8, 128], strides = [1, 1]} : vector<8x512xf32> to vector<8x128xf32>
    %67 = arith.negf %66 : vector<8x128xf32>
    %68 = math.exp %67 : vector<8x128xf32>
    %cst_26 = arith.constant 1.000000e+00 : f32
    %69 = vector.broadcast %cst_26 : f32 to vector<8x128xf32>
    %70 = arith.addf %69, %68 : vector<8x128xf32>
    %71 = arith.divf %69, %70 : vector<8x128xf32>
    %72 = arith.mulf %63, %41 : vector<8x128xf32>
    %73 = arith.mulf %57, %65 : vector<8x128xf32>
    %74 = arith.addf %72, %73 : vector<8x128xf32>
    %75 = math.tanh %74 : vector<8x128xf32>
    %76 = arith.mulf %71, %75 : vector<8x128xf32>
    %77 = arith.index_cast %47 : i32 to index
    %c0_27 = arith.constant 0 : index
    %78 = vector.load %arg5[%77, %c0_27] : memref<64x128xf32, #tpu.memory_space<vmem>>, vector<8x128xf32>
    tpu.vector_store %arg5[%77, %c0_27], %76 {strides = array<i32>} : memref<64x128xf32, #tpu.memory_space<vmem>>, vector<8x128xf32>,
    %c2_i32 = arith.constant 2 : i32
    %c8_i32_28 = arith.constant 8 : i32
    %79 = arith.muli %c2_i32, %c8_i32_28 : i32
    %80 = tpu.assume_multiple %79, 8 : i32
    %81 = arith.index_cast %80 : i32 to index
    %c0_29 = arith.constant 0 : index
    %82 = vector.load %arg8[%81, %c0_29] : memref<64x512xf32, #tpu.memory_space<vmem>>, vector<8x512xf32>
    %cst_30 = arith.constant dense<0.000000e+00> : vector<8x512xf32>
    %83 = tpu.matmul %76, %10, %cst_30 {dimension_numbers = #tpu.dot_dimension_numbers<[1], [0], [0], [1], [0, 0, 1, 1], [], []>} : vector<8x128xf32>, vector<128x512xf32>, vector<8x512xf32> -> vector<8x512xf32>
    %84 = arith.addf %82, %83 : vector<8x512xf32>
    %85 = vector.extract_strided_slice %84 {offsets = [0, 0], sizes = [8, 128], strides = [1, 1]} : vector<8x512xf32> to vector<8x128xf32>
    %86 = arith.negf %85 : vector<8x128xf32>
    %87 = math.exp %86 : vector<8x128xf32>
    %cst_31 = arith.constant 1.000000e+00 : f32
    %88 = vector.broadcast %cst_31 : f32 to vector<8x128xf32>
    %89 = arith.addf %88, %87 : vector<8x128xf32>
    %90 = arith.divf %88, %89 : vector<8x128xf32>
    %91 = vector.extract_strided_slice %84 {offsets = [0, 128], sizes = [8, 128], strides = [1, 1]} : vector<8x512xf32> to vector<8x128xf32>
    %92 = arith.negf %91 : vector<8x128xf32>
    %93 = math.exp %92 : vector<8x128xf32>
    %cst_32 = arith.constant 1.000000e+00 : f32
    %94 = vector.broadcast %cst_32 : f32 to vector<8x128xf32>
    %95 = arith.addf %94, %93 : vector<8x128xf32>
    %96 = arith.divf %94, %95 : vector<8x128xf32>
    %97 = vector.extract_strided_slice %84 {offsets = [0, 256], sizes = [8, 128], strides = [1, 1]} : vector<8x512xf32> to vector<8x128xf32>
    %98 = math.tanh %97 : vector<8x128xf32>
    %99 = vector.extract_strided_slice %84 {offsets = [0, 384], sizes = [8, 128], strides = [1, 1]} : vector<8x512xf32> to vector<8x128xf32>
    %100 = arith.negf %99 : vector<8x128xf32>
    %101 = math.exp %100 : vector<8x128xf32>
    %cst_33 = arith.constant 1.000000e+00 : f32
    %102 = vector.broadcast %cst_33 : f32 to vector<8x128xf32>
    %103 = arith.addf %102, %101 : vector<8x128xf32>
    %104 = arith.divf %102, %103 : vector<8x128xf32>
    %105 = arith.mulf %96, %74 : vector<8x128xf32>
    %106 = arith.mulf %90, %98 : vector<8x128xf32>
    %107 = arith.addf %105, %106 : vector<8x128xf32>
    %108 = math.tanh %107 : vector<8x128xf32>
    %109 = arith.mulf %104, %108 : vector<8x128xf32>
    %110 = arith.index_cast %80 : i32 to index
    %c0_34 = arith.constant 0 : index
    %111 = vector.load %arg5[%110, %c0_34] : memref<64x128xf32, #tpu.memory_space<vmem>>, vector<8x128xf32>
    tpu.vector_store %arg5[%110, %c0_34], %109 {strides = array<i32>} : memref<64x128xf32, #tpu.memory_space<vmem>>, vector<8x128xf32>,
    %c3_i32 = arith.constant 3 : i32
    %c8_i32_35 = arith.constant 8 : i32
    %112 = arith.muli %c3_i32, %c8_i32_35 : i32
    %113 = tpu.assume_multiple %112, 8 : i32
    %114 = arith.index_cast %113 : i32 to index
    %c0_36 = arith.constant 0 : index
    %115 = vector.load %arg8[%114, %c0_36] : memref<64x512xf32, #tpu.memory_space<vmem>>, vector<8x512xf32>
    %cst_37 = arith.constant dense<0.000000e+00> : vector<8x512xf32>
    %116 = tpu.matmul %109, %10, %cst_37 {dimension_numbers = #tpu.dot_dimension_numbers<[1], [0], [0], [1], [0, 0, 1, 1], [], []>} : vector<8x128xf32>, vector<128x512xf32>, vector<8x512xf32> -> vector<8x512xf32>
    %117 = arith.addf %115, %116 : vector<8x512xf32>
    %118 = vector.extract_strided_slice %117 {offsets = [0, 0], sizes = [8, 128], strides = [1, 1]} : vector<8x512xf32> to vector<8x128xf32>
    %119 = arith.negf %118 : vector<8x128xf32>
    %120 = math.exp %119 : vector<8x128xf32>
    %cst_38 = arith.constant 1.000000e+00 : f32
    %121 = vector.broadcast %cst_38 : f32 to vector<8x128xf32>
    %122 = arith.addf %121, %120 : vector<8x128xf32>
    %123 = arith.divf %121, %122 : vector<8x128xf32>
    %124 = vector.extract_strided_slice %117 {offsets = [0, 128], sizes = [8, 128], strides = [1, 1]} : vector<8x512xf32> to vector<8x128xf32>
    %125 = arith.negf %124 : vector<8x128xf32>
    %126 = math.exp %125 : vector<8x128xf32>
    %cst_39 = arith.constant 1.000000e+00 : f32
    %127 = vector.broadcast %cst_39 : f32 to vector<8x128xf32>
    %128 = arith.addf %127, %126 : vector<8x128xf32>
    %129 = arith.divf %127, %128 : vector<8x128xf32>
    %130 = vector.extract_strided_slice %117 {offsets = [0, 256], sizes = [8, 128], strides = [1, 1]} : vector<8x512xf32> to vector<8x128xf32>
    %131 = math.tanh %130 : vector<8x128xf32>
    %132 = vector.extract_strided_slice %117 {offsets = [0, 384], sizes = [8, 128], strides = [1, 1]} : vector<8x512xf32> to vector<8x128xf32>
    %133 = arith.negf %132 : vector<8x128xf32>
    %134 = math.exp %133 : vector<8x128xf32>
    %cst_40 = arith.constant 1.000000e+00 : f32
    %135 = vector.broadcast %cst_40 : f32 to vector<8x128xf32>
    %136 = arith.addf %135, %134 : vector<8x128xf32>
    %137 = arith.divf %135, %136 : vector<8x128xf32>
    %138 = arith.mulf %129, %107 : vector<8x128xf32>
    %139 = arith.mulf %123, %131 : vector<8x128xf32>
    %140 = arith.addf %138, %139 : vector<8x128xf32>
    %141 = math.tanh %140 : vector<8x128xf32>
    %142 = arith.mulf %137, %141 : vector<8x128xf32>
    %143 = arith.index_cast %113 : i32 to index
    %c0_41 = arith.constant 0 : index
    %144 = vector.load %arg5[%143, %c0_41] : memref<64x128xf32, #tpu.memory_space<vmem>>, vector<8x128xf32>
    tpu.vector_store %arg5[%143, %c0_41], %142 {strides = array<i32>} : memref<64x128xf32, #tpu.memory_space<vmem>>, vector<8x128xf32>,
    %c4_i32 = arith.constant 4 : i32
    %c8_i32_42 = arith.constant 8 : i32
    %145 = arith.muli %c4_i32, %c8_i32_42 : i32
    %146 = tpu.assume_multiple %145, 8 : i32
    %147 = arith.index_cast %146 : i32 to index
    %c0_43 = arith.constant 0 : index
    %148 = vector.load %arg8[%147, %c0_43] : memref<64x512xf32, #tpu.memory_space<vmem>>, vector<8x512xf32>
    %cst_44 = arith.constant dense<0.000000e+00> : vector<8x512xf32>
    %149 = tpu.matmul %142, %10, %cst_44 {dimension_numbers = #tpu.dot_dimension_numbers<[1], [0], [0], [1], [0, 0, 1, 1], [], []>} : vector<8x128xf32>, vector<128x512xf32>, vector<8x512xf32> -> vector<8x512xf32>
    %150 = arith.addf %148, %149 : vector<8x512xf32>
    %151 = vector.extract_strided_slice %150 {offsets = [0, 0], sizes = [8, 128], strides = [1, 1]} : vector<8x512xf32> to vector<8x128xf32>
    %152 = arith.negf %151 : vector<8x128xf32>
    %153 = math.exp %152 : vector<8x128xf32>
    %cst_45 = arith.constant 1.000000e+00 : f32
    %154 = vector.broadcast %cst_45 : f32 to vector<8x128xf32>
    %155 = arith.addf %154, %153 : vector<8x128xf32>
    %156 = arith.divf %154, %155 : vector<8x128xf32>
    %157 = vector.extract_strided_slice %150 {offsets = [0, 128], sizes = [8, 128], strides = [1, 1]} : vector<8x512xf32> to vector<8x128xf32>
    %158 = arith.negf %157 : vector<8x128xf32>
    %159 = math.exp %158 : vector<8x128xf32>
    %cst_46 = arith.constant 1.000000e+00 : f32
    %160 = vector.broadcast %cst_46 : f32 to vector<8x128xf32>
    %161 = arith.addf %160, %159 : vector<8x128xf32>
    %162 = arith.divf %160, %161 : vector<8x128xf32>
    %163 = vector.extract_strided_slice %150 {offsets = [0, 256], sizes = [8, 128], strides = [1, 1]} : vector<8x512xf32> to vector<8x128xf32>
    %164 = math.tanh %163 : vector<8x128xf32>
    %165 = vector.extract_strided_slice %150 {offsets = [0, 384], sizes = [8, 128], strides = [1, 1]} : vector<8x512xf32> to vector<8x128xf32>
    %166 = arith.negf %165 : vector<8x128xf32>
    %167 = math.exp %166 : vector<8x128xf32>
    %cst_47 = arith.constant 1.000000e+00 : f32
    %168 = vector.broadcast %cst_47 : f32 to vector<8x128xf32>
    %169 = arith.addf %168, %167 : vector<8x128xf32>
    %170 = arith.divf %168, %169 : vector<8x128xf32>
    %171 = arith.mulf %162, %140 : vector<8x128xf32>
    %172 = arith.mulf %156, %164 : vector<8x128xf32>
    %173 = arith.addf %171, %172 : vector<8x128xf32>
    %174 = math.tanh %173 : vector<8x128xf32>
    %175 = arith.mulf %170, %174 : vector<8x128xf32>
    %176 = arith.index_cast %146 : i32 to index
    %c0_48 = arith.constant 0 : index
    %177 = vector.load %arg5[%176, %c0_48] : memref<64x128xf32, #tpu.memory_space<vmem>>, vector<8x128xf32>
    tpu.vector_store %arg5[%176, %c0_48], %175 {strides = array<i32>} : memref<64x128xf32, #tpu.memory_space<vmem>>, vector<8x128xf32>,
    %c5_i32 = arith.constant 5 : i32
    %c8_i32_49 = arith.constant 8 : i32
    %178 = arith.muli %c5_i32, %c8_i32_49 : i32
    %179 = tpu.assume_multiple %178, 8 : i32
    %180 = arith.index_cast %179 : i32 to index
    %c0_50 = arith.constant 0 : index
    %181 = vector.load %arg8[%180, %c0_50] : memref<64x512xf32, #tpu.memory_space<vmem>>, vector<8x512xf32>
    %cst_51 = arith.constant dense<0.000000e+00> : vector<8x512xf32>
    %182 = tpu.matmul %175, %10, %cst_51 {dimension_numbers = #tpu.dot_dimension_numbers<[1], [0], [0], [1], [0, 0, 1, 1], [], []>} : vector<8x128xf32>, vector<128x512xf32>, vector<8x512xf32> -> vector<8x512xf32>
    %183 = arith.addf %181, %182 : vector<8x512xf32>
    %184 = vector.extract_strided_slice %183 {offsets = [0, 0], sizes = [8, 128], strides = [1, 1]} : vector<8x512xf32> to vector<8x128xf32>
    %185 = arith.negf %184 : vector<8x128xf32>
    %186 = math.exp %185 : vector<8x128xf32>
    %cst_52 = arith.constant 1.000000e+00 : f32
    %187 = vector.broadcast %cst_52 : f32 to vector<8x128xf32>
    %188 = arith.addf %187, %186 : vector<8x128xf32>
    %189 = arith.divf %187, %188 : vector<8x128xf32>
    %190 = vector.extract_strided_slice %183 {offsets = [0, 128], sizes = [8, 128], strides = [1, 1]} : vector<8x512xf32> to vector<8x128xf32>
    %191 = arith.negf %190 : vector<8x128xf32>
    %192 = math.exp %191 : vector<8x128xf32>
    %cst_53 = arith.constant 1.000000e+00 : f32
    %193 = vector.broadcast %cst_53 : f32 to vector<8x128xf32>
    %194 = arith.addf %193, %192 : vector<8x128xf32>
    %195 = arith.divf %193, %194 : vector<8x128xf32>
    %196 = vector.extract_strided_slice %183 {offsets = [0, 256], sizes = [8, 128], strides = [1, 1]} : vector<8x512xf32> to vector<8x128xf32>
    %197 = math.tanh %196 : vector<8x128xf32>
    %198 = vector.extract_strided_slice %183 {offsets = [0, 384], sizes = [8, 128], strides = [1, 1]} : vector<8x512xf32> to vector<8x128xf32>
    %199 = arith.negf %198 : vector<8x128xf32>
    %200 = math.exp %199 : vector<8x128xf32>
    %cst_54 = arith.constant 1.000000e+00 : f32
    %201 = vector.broadcast %cst_54 : f32 to vector<8x128xf32>
    %202 = arith.addf %201, %200 : vector<8x128xf32>
    %203 = arith.divf %201, %202 : vector<8x128xf32>
    %204 = arith.mulf %195, %173 : vector<8x128xf32>
    %205 = arith.mulf %189, %197 : vector<8x128xf32>
    %206 = arith.addf %204, %205 : vector<8x128xf32>
    %207 = math.tanh %206 : vector<8x128xf32>
    %208 = arith.mulf %203, %207 : vector<8x128xf32>
    %209 = arith.index_cast %179 : i32 to index
    %c0_55 = arith.constant 0 : index
    %210 = vector.load %arg5[%209, %c0_55] : memref<64x128xf32, #tpu.memory_space<vmem>>, vector<8x128xf32>
    tpu.vector_store %arg5[%209, %c0_55], %208 {strides = array<i32>} : memref<64x128xf32, #tpu.memory_space<vmem>>, vector<8x128xf32>,
    %c6_i32 = arith.constant 6 : i32
    %c8_i32_56 = arith.constant 8 : i32
    %211 = arith.muli %c6_i32, %c8_i32_56 : i32
    %212 = tpu.assume_multiple %211, 8 : i32
    %213 = arith.index_cast %212 : i32 to index
    %c0_57 = arith.constant 0 : index
    %214 = vector.load %arg8[%213, %c0_57] : memref<64x512xf32, #tpu.memory_space<vmem>>, vector<8x512xf32>
    %cst_58 = arith.constant dense<0.000000e+00> : vector<8x512xf32>
    %215 = tpu.matmul %208, %10, %cst_58 {dimension_numbers = #tpu.dot_dimension_numbers<[1], [0], [0], [1], [0, 0, 1, 1], [], []>} : vector<8x128xf32>, vector<128x512xf32>, vector<8x512xf32> -> vector<8x512xf32>
    %216 = arith.addf %214, %215 : vector<8x512xf32>
    %217 = vector.extract_strided_slice %216 {offsets = [0, 0], sizes = [8, 128], strides = [1, 1]} : vector<8x512xf32> to vector<8x128xf32>
    %218 = arith.negf %217 : vector<8x128xf32>
    %219 = math.exp %218 : vector<8x128xf32>
    %cst_59 = arith.constant 1.000000e+00 : f32
    %220 = vector.broadcast %cst_59 : f32 to vector<8x128xf32>
    %221 = arith.addf %220, %219 : vector<8x128xf32>
    %222 = arith.divf %220, %221 : vector<8x128xf32>
    %223 = vector.extract_strided_slice %216 {offsets = [0, 128], sizes = [8, 128], strides = [1, 1]} : vector<8x512xf32> to vector<8x128xf32>
    %224 = arith.negf %223 : vector<8x128xf32>
    %225 = math.exp %224 : vector<8x128xf32>
    %cst_60 = arith.constant 1.000000e+00 : f32
    %226 = vector.broadcast %cst_60 : f32 to vector<8x128xf32>
    %227 = arith.addf %226, %225 : vector<8x128xf32>
    %228 = arith.divf %226, %227 : vector<8x128xf32>
    %229 = vector.extract_strided_slice %216 {offsets = [0, 256], sizes = [8, 128], strides = [1, 1]} : vector<8x512xf32> to vector<8x128xf32>
    %230 = math.tanh %229 : vector<8x128xf32>
    %231 = vector.extract_strided_slice %216 {offsets = [0, 384], sizes = [8, 128], strides = [1, 1]} : vector<8x512xf32> to vector<8x128xf32>
    %232 = arith.negf %231 : vector<8x128xf32>
    %233 = math.exp %232 : vector<8x128xf32>
    %cst_61 = arith.constant 1.000000e+00 : f32
    %234 = vector.broadcast %cst_61 : f32 to vector<8x128xf32>
    %235 = arith.addf %234, %233 : vector<8x128xf32>
    %236 = arith.divf %234, %235 : vector<8x128xf32>
    %237 = arith.mulf %228, %206 : vector<8x128xf32>
    %238 = arith.mulf %222, %230 : vector<8x128xf32>
    %239 = arith.addf %237, %238 : vector<8x128xf32>
    %240 = math.tanh %239 : vector<8x128xf32>
    %241 = arith.mulf %236, %240 : vector<8x128xf32>
    %242 = arith.index_cast %212 : i32 to index
    %c0_62 = arith.constant 0 : index
    %243 = vector.load %arg5[%242, %c0_62] : memref<64x128xf32, #tpu.memory_space<vmem>>, vector<8x128xf32>
    tpu.vector_store %arg5[%242, %c0_62], %241 {strides = array<i32>} : memref<64x128xf32, #tpu.memory_space<vmem>>, vector<8x128xf32>,
    %c7_i32 = arith.constant 7 : i32
    %c8_i32_63 = arith.constant 8 : i32
    %244 = arith.muli %c7_i32, %c8_i32_63 : i32
    %245 = tpu.assume_multiple %244, 8 : i32
    %246 = arith.index_cast %245 : i32 to index
    %c0_64 = arith.constant 0 : index
    %247 = vector.load %arg8[%246, %c0_64] : memref<64x512xf32, #tpu.memory_space<vmem>>, vector<8x512xf32>
    %cst_65 = arith.constant dense<0.000000e+00> : vector<8x512xf32>
    %248 = tpu.matmul %241, %10, %cst_65 {dimension_numbers = #tpu.dot_dimension_numbers<[1], [0], [0], [1], [0, 0, 1, 1], [], []>} : vector<8x128xf32>, vector<128x512xf32>, vector<8x512xf32> -> vector<8x512xf32>
    %249 = arith.addf %247, %248 : vector<8x512xf32>
    %250 = vector.extract_strided_slice %249 {offsets = [0, 0], sizes = [8, 128], strides = [1, 1]} : vector<8x512xf32> to vector<8x128xf32>
    %251 = arith.negf %250 : vector<8x128xf32>
    %252 = math.exp %251 : vector<8x128xf32>
    %cst_66 = arith.constant 1.000000e+00 : f32
    %253 = vector.broadcast %cst_66 : f32 to vector<8x128xf32>
    %254 = arith.addf %253, %252 : vector<8x128xf32>
    %255 = arith.divf %253, %254 : vector<8x128xf32>
    %256 = vector.extract_strided_slice %249 {offsets = [0, 128], sizes = [8, 128], strides = [1, 1]} : vector<8x512xf32> to vector<8x128xf32>
    %257 = arith.negf %256 : vector<8x128xf32>
    %258 = math.exp %257 : vector<8x128xf32>
    %cst_67 = arith.constant 1.000000e+00 : f32
    %259 = vector.broadcast %cst_67 : f32 to vector<8x128xf32>
    %260 = arith.addf %259, %258 : vector<8x128xf32>
    %261 = arith.divf %259, %260 : vector<8x128xf32>
    %262 = vector.extract_strided_slice %249 {offsets = [0, 256], sizes = [8, 128], strides = [1, 1]} : vector<8x512xf32> to vector<8x128xf32>
    %263 = math.tanh %262 : vector<8x128xf32>
    %264 = vector.extract_strided_slice %249 {offsets = [0, 384], sizes = [8, 128], strides = [1, 1]} : vector<8x512xf32> to vector<8x128xf32>
    %265 = arith.negf %264 : vector<8x128xf32>
    %266 = math.exp %265 : vector<8x128xf32>
    %cst_68 = arith.constant 1.000000e+00 : f32
    %267 = vector.broadcast %cst_68 : f32 to vector<8x128xf32>
    %268 = arith.addf %267, %266 : vector<8x128xf32>
    %269 = arith.divf %267, %268 : vector<8x128xf32>
    %270 = arith.mulf %261, %239 : vector<8x128xf32>
    %271 = arith.mulf %255, %263 : vector<8x128xf32>
    %272 = arith.addf %270, %271 : vector<8x128xf32>
    %273 = math.tanh %272 : vector<8x128xf32>
    %274 = arith.mulf %269, %273 : vector<8x128xf32>
    %275 = arith.index_cast %245 : i32 to index
    %c0_69 = arith.constant 0 : index
    %276 = vector.load %arg5[%275, %c0_69] : memref<64x128xf32, #tpu.memory_space<vmem>>, vector<8x128xf32>
    tpu.vector_store %arg5[%275, %c0_69], %274 {strides = array<i32>} : memref<64x128xf32, #tpu.memory_space<vmem>>, vector<8x128xf32>,
    %c8_i32_70 = arith.constant 8 : i32
    %c0_71 = arith.constant 0 : index
    %c0_72 = arith.constant 0 : index
    %277 = vector.load %arg6[%c0_71, %c0_72] : memref<8x128xf32, #tpu.memory_space<vmem>>, vector<8x128xf32>
    tpu.vector_store %arg6[%c0_71, %c0_72], %274 {strides = array<i32>} : memref<8x128xf32, #tpu.memory_space<vmem>>, vector<8x128xf32>,
    %c0_73 = arith.constant 0 : index
    %c0_74 = arith.constant 0 : index
    %278 = vector.load %arg7[%c0_73, %c0_74] : memref<8x128xf32, #tpu.memory_space<vmem>>, vector<8x128xf32>
    tpu.vector_store %arg7[%c0_73, %c0_74], %272 {strides = array<i32>} : memref<8x128xf32, #tpu.memory_space<vmem>>, vector<8x128xf32>,
    return
  }
  func.func @transform_0(%arg0: i32) -> (i32, i32) {
    %c0_i32 = arith.constant 0 : i32
    %c0_i32_0 = arith.constant 0 : i32
    return %arg0, %c0_i32 : i32, i32
  }
  func.func @transform_1(%arg0: i32) -> (i32, i32) {
    %c0_i32 = arith.constant 0 : i32
    %c0_i32_0 = arith.constant 0 : i32
    %c0_i32_1 = arith.constant 0 : i32
    return %c0_i32, %c0_i32_0 : i32, i32
  }
  func.func @transform_2(%arg0: i32) -> (i32, i32) {
    %c0_i32 = arith.constant 0 : i32
    %c0_i32_0 = arith.constant 0 : i32
    %c0_i32_1 = arith.constant 0 : i32
    return %c0_i32, %c0_i32_0 : i32, i32
  }
  func.func @transform_3(%arg0: i32) -> (i32, i32) {
    %c0_i32 = arith.constant 0 : i32
    %c0_i32_0 = arith.constant 0 : i32
    %c0_i32_1 = arith.constant 0 : i32
    return %c0_i32, %c0_i32_0 : i32, i32
  }
  func.func @transform_4(%arg0: i32) -> (i32, i32) {
    %c0_i32 = arith.constant 0 : i32
    %c0_i32_0 = arith.constant 0 : i32
    return %arg0, %c0_i32 : i32, i32
  }
}

module attributes {stable_mosaic.version = 11 : i64} {
  func.func @head_kernel(%arg0: i32, %arg1: memref<32x16xf32, #tpu.memory_space<vmem>>, %arg2: memref<4x32xf32, #tpu.memory_space<vmem>>, %arg3: memref<4x1xf32, #tpu.memory_space<vmem>>, %arg4: memref<4x4xf32, #tpu.memory_space<vmem>>, %arg5: memref<4x1xf32, #tpu.memory_space<vmem>>, %arg6: memref<8x8xf32, #tpu.memory_space<vmem>>, %arg7: memref<1x8xf32, #tpu.memory_space<vmem>>, %arg8: memref<8x8xf32, #tpu.memory_space<vmem>>, %arg9: memref<1x8xf32, #tpu.memory_space<vmem>>, %arg10: memref<2x4x8xf32, #tpu.memory_space<vmem>>) attributes {dimension_semantics = [#tpu.dimension_semantics<arbitrary>], iteration_bounds = array<i64: 1>, scalar_prefetch = 0 : i64, scratch_operands = 0 : i64, tpu.core_type = #tpu.core_type<tc>, window_params = [{pipeline_mode = #tpu.pipeline_mode<synchronous>, transform_indices = @transform_0, window_bounds = array<i64: 32, 16>}, {pipeline_mode = #tpu.pipeline_mode<synchronous>, transform_indices = @transform_1, window_bounds = array<i64: 4, 32>}, {pipeline_mode = #tpu.pipeline_mode<synchronous>, transform_indices = @transform_2, window_bounds = array<i64: 4, 1>}, {pipeline_mode = #tpu.pipeline_mode<synchronous>, transform_indices = @transform_3, window_bounds = array<i64: 4, 4>}, {pipeline_mode = #tpu.pipeline_mode<synchronous>, transform_indices = @transform_4, window_bounds = array<i64: 4, 1>}, {pipeline_mode = #tpu.pipeline_mode<synchronous>, transform_indices = @transform_5, window_bounds = array<i64: 8, 8>}, {pipeline_mode = #tpu.pipeline_mode<synchronous>, transform_indices = @transform_6, window_bounds = array<i64: 1, 8>}, {pipeline_mode = #tpu.pipeline_mode<synchronous>, transform_indices = @transform_7, window_bounds = array<i64: 8, 8>}, {pipeline_mode = #tpu.pipeline_mode<synchronous>, transform_indices = @transform_8, window_bounds = array<i64: 1, 8>}, {pipeline_mode = #tpu.pipeline_mode<synchronous>, transform_indices = @transform_9, window_bounds = array<i64: 2, 4, 8>}]} {
    %c0 = arith.constant 0 : index
    %c0_0 = arith.constant 0 : index
    %0 = vector.load %arg1[%c0, %c0_0] : memref<32x16xf32, #tpu.memory_space<vmem>>, vector<32x16xf32>
    %c0_1 = arith.constant 0 : index
    %c0_2 = arith.constant 0 : index
    %1 = vector.load %arg2[%c0_1, %c0_2] : memref<4x32xf32, #tpu.memory_space<vmem>>, vector<4x32xf32>
    %cst = arith.constant dense<0.000000e+00> : vector<4x16xf32>
    %2 = tpu.matmul %1, %0, %cst {dimension_numbers = #tpu.dot_dimension_numbers<[1], [0], [0], [1], [0, 0, 1, 1], [], []>} : vector<4x32xf32>, vector<32x16xf32>, vector<4x16xf32> -> vector<4x16xf32>
    %c0_3 = arith.constant 0 : index
    %c0_4 = arith.constant 0 : index
    %3 = vector.load %arg3[%c0_3, %c0_4] : memref<4x1xf32, #tpu.memory_space<vmem>>, vector<4x1xf32>
    %4 = vector.broadcast %3 : vector<4x1xf32> to vector<4x16xf32>
    %5 = arith.addf %2, %4 : vector<4x16xf32>
    %6 = arith.negf %5 : vector<4x16xf32>
    %7 = math.exp %6 : vector<4x16xf32>
    %cst_5 = arith.constant 1.000000e+00 : f32
    %8 = vector.broadcast %cst_5 : f32 to vector<4x16xf32>
    %9 = arith.addf %8, %7 : vector<4x16xf32>
    %10 = arith.divf %8, %9 : vector<4x16xf32>
    %11 = arith.mulf %5, %10 : vector<4x16xf32>
    %c0_6 = arith.constant 0 : index
    %c0_7 = arith.constant 0 : index
    %12 = vector.load %arg4[%c0_6, %c0_7] : memref<4x4xf32, #tpu.memory_space<vmem>>, vector<4x4xf32>
    %cst_8 = arith.constant dense<0.000000e+00> : vector<4x16xf32>
    %13 = tpu.matmul %12, %11, %cst_8 {dimension_numbers = #tpu.dot_dimension_numbers<[1], [0], [0], [1], [0, 0, 1, 1], [], []>} : vector<4x4xf32>, vector<4x16xf32>, vector<4x16xf32> -> vector<4x16xf32>
    %c0_9 = arith.constant 0 : index
    %c0_10 = arith.constant 0 : index
    %14 = vector.load %arg5[%c0_9, %c0_10] : memref<4x1xf32, #tpu.memory_space<vmem>>, vector<4x1xf32>
    %15 = vector.broadcast %14 : vector<4x1xf32> to vector<4x16xf32>
    %16 = arith.addf %13, %15 : vector<4x16xf32>
    %17 = arith.negf %16 : vector<4x16xf32>
    %18 = math.exp %17 : vector<4x16xf32>
    %cst_11 = arith.constant 1.000000e+00 : f32
    %19 = vector.broadcast %cst_11 : f32 to vector<4x16xf32>
    %20 = arith.addf %19, %18 : vector<4x16xf32>
    %21 = arith.divf %19, %20 : vector<4x16xf32>
    %22 = arith.mulf %16, %21 : vector<4x16xf32>
    %23 = arith.addf %11, %22 : vector<4x16xf32>
    %c0_12 = arith.constant 0 : index
    %c0_13 = arith.constant 0 : index
    %24 = vector.load %arg6[%c0_12, %c0_13] : memref<8x8xf32, #tpu.memory_space<vmem>>, vector<8x8xf32>
    %c0_14 = arith.constant 0 : index
    %c0_15 = arith.constant 0 : index
    %25 = vector.load %arg7[%c0_14, %c0_15] : memref<1x8xf32, #tpu.memory_space<vmem>>, vector<1x8xf32>
    %c0_16 = arith.constant 0 : index
    %c0_17 = arith.constant 0 : index
    %26 = vector.load %arg8[%c0_16, %c0_17] : memref<8x8xf32, #tpu.memory_space<vmem>>, vector<8x8xf32>
    %c0_18 = arith.constant 0 : index
    %c0_19 = arith.constant 0 : index
    %27 = vector.load %arg9[%c0_18, %c0_19] : memref<1x8xf32, #tpu.memory_space<vmem>>, vector<1x8xf32>
    %28 = vector.extract_strided_slice %23 {offsets = [0, 0], sizes = [4, 8], strides = [1, 1]} : vector<4x16xf32> to vector<4x8xf32>
    %cst_20 = arith.constant dense<0.000000e+00> : vector<4x8xf32>
    %29 = tpu.matmul %28, %24, %cst_20 {dimension_numbers = #tpu.dot_dimension_numbers<[1], [0], [0], [1], [0, 0, 1, 1], [], []>} : vector<4x8xf32>, vector<8x8xf32>, vector<4x8xf32> -> vector<4x8xf32>
    %30 = vector.broadcast %25 : vector<1x8xf32> to vector<4x8xf32>
    %31 = arith.addf %29, %30 : vector<4x8xf32>
    %cst_21 = arith.constant dense<0.000000e+00> : vector<4x8xf32>
    %32 = tpu.matmul %31, %26, %cst_21 {dimension_numbers = #tpu.dot_dimension_numbers<[1], [0], [0], [1], [0, 0, 1, 1], [], []>} : vector<4x8xf32>, vector<8x8xf32>, vector<4x8xf32> -> vector<4x8xf32>
    %33 = vector.broadcast %27 : vector<1x8xf32> to vector<4x8xf32>
    %34 = arith.addf %32, %33 : vector<4x8xf32>
    %35 = arith.negf %34 : vector<4x8xf32>
    %36 = math.exp %35 : vector<4x8xf32>
    %cst_22 = arith.constant 1.000000e+00 : f32
    %37 = vector.broadcast %cst_22 : f32 to vector<4x8xf32>
    %38 = arith.addf %37, %36 : vector<4x8xf32>
    %39 = arith.divf %37, %38 : vector<4x8xf32>
    %40 = arith.mulf %34, %39 : vector<4x8xf32>
    %41 = arith.addf %31, %40 : vector<4x8xf32>
    %cst_23 = arith.constant dense<0xFF800000> : vector<4xf32>
    %42 = vector.multi_reduction <maximumf>, %41, %cst_23 [1] : vector<4x8xf32> to vector<4xf32>
    %43 = vector.shape_cast %42 : vector<4xf32> to vector<4x1xf32>
    %44 = vector.broadcast %43 : vector<4x1xf32> to vector<4x8xf32>
    %45 = arith.subf %41, %44 : vector<4x8xf32>
    %46 = math.exp %45 : vector<4x8xf32>
    %cst_24 = arith.constant dense<0.000000e+00> : vector<4xf32>
    %47 = vector.multi_reduction <add>, %46, %cst_24 [1] : vector<4x8xf32> to vector<4xf32>
    %48 = vector.shape_cast %47 : vector<4xf32> to vector<4x1xf32>
    %49 = vector.broadcast %48 : vector<4x1xf32> to vector<4x8xf32>
    %50 = arith.divf %46, %49 : vector<4x8xf32>
    %c0_25 = arith.constant 0 : index
    %c0_26 = arith.constant 0 : index
    %c0_27 = arith.constant 0 : index
    %51 = vector.load %arg10[%c0_25, %c0_26, %c0_27] : memref<2x4x8xf32, #tpu.memory_space<vmem>>, vector<1x4x8xf32>
    %52 = vector.shape_cast %51 : vector<1x4x8xf32> to vector<4x8xf32>
    %53 = vector.shape_cast %50 : vector<4x8xf32> to vector<1x4x8xf32>
    tpu.vector_store %arg10[%c0_25, %c0_26, %c0_27], %53 {strides = array<i32>} : memref<2x4x8xf32, #tpu.memory_space<vmem>>, vector<1x4x8xf32>,
    %54 = vector.extract_strided_slice %23 {offsets = [0, 8], sizes = [4, 8], strides = [1, 1]} : vector<4x16xf32> to vector<4x8xf32>
    %cst_28 = arith.constant dense<0.000000e+00> : vector<4x8xf32>
    %55 = tpu.matmul %54, %24, %cst_28 {dimension_numbers = #tpu.dot_dimension_numbers<[1], [0], [0], [1], [0, 0, 1, 1], [], []>} : vector<4x8xf32>, vector<8x8xf32>, vector<4x8xf32> -> vector<4x8xf32>
    %56 = vector.broadcast %25 : vector<1x8xf32> to vector<4x8xf32>
    %57 = arith.addf %55, %56 : vector<4x8xf32>
    %cst_29 = arith.constant dense<0.000000e+00> : vector<4x8xf32>
    %58 = tpu.matmul %57, %26, %cst_29 {dimension_numbers = #tpu.dot_dimension_numbers<[1], [0], [0], [1], [0, 0, 1, 1], [], []>} : vector<4x8xf32>, vector<8x8xf32>, vector<4x8xf32> -> vector<4x8xf32>
    %59 = vector.broadcast %27 : vector<1x8xf32> to vector<4x8xf32>
    %60 = arith.addf %58, %59 : vector<4x8xf32>
    %61 = arith.negf %60 : vector<4x8xf32>
    %62 = math.exp %61 : vector<4x8xf32>
    %cst_30 = arith.constant 1.000000e+00 : f32
    %63 = vector.broadcast %cst_30 : f32 to vector<4x8xf32>
    %64 = arith.addf %63, %62 : vector<4x8xf32>
    %65 = arith.divf %63, %64 : vector<4x8xf32>
    %66 = arith.mulf %60, %65 : vector<4x8xf32>
    %67 = arith.addf %57, %66 : vector<4x8xf32>
    %cst_31 = arith.constant dense<0xFF800000> : vector<4xf32>
    %68 = vector.multi_reduction <maximumf>, %67, %cst_31 [1] : vector<4x8xf32> to vector<4xf32>
    %69 = vector.shape_cast %68 : vector<4xf32> to vector<4x1xf32>
    %70 = vector.broadcast %69 : vector<4x1xf32> to vector<4x8xf32>
    %71 = arith.subf %67, %70 : vector<4x8xf32>
    %72 = math.exp %71 : vector<4x8xf32>
    %cst_32 = arith.constant dense<0.000000e+00> : vector<4xf32>
    %73 = vector.multi_reduction <add>, %72, %cst_32 [1] : vector<4x8xf32> to vector<4xf32>
    %74 = vector.shape_cast %73 : vector<4xf32> to vector<4x1xf32>
    %75 = vector.broadcast %74 : vector<4x1xf32> to vector<4x8xf32>
    %76 = arith.divf %72, %75 : vector<4x8xf32>
    %c1 = arith.constant 1 : index
    %c0_33 = arith.constant 0 : index
    %c0_34 = arith.constant 0 : index
    %77 = vector.load %arg10[%c1, %c0_33, %c0_34] : memref<2x4x8xf32, #tpu.memory_space<vmem>>, vector<1x4x8xf32>
    %78 = vector.shape_cast %77 : vector<1x4x8xf32> to vector<4x8xf32>
    %79 = vector.shape_cast %76 : vector<4x8xf32> to vector<1x4x8xf32>
    tpu.vector_store %arg10[%c1, %c0_33, %c0_34], %79 {strides = array<i32>} : memref<2x4x8xf32, #tpu.memory_space<vmem>>, vector<1x4x8xf32>,
    return
  }
  func.func @transform_0(%arg0: i32) -> (i32, i32) {
    %c0_i32 = arith.constant 0 : i32
    %c0_i32_0 = arith.constant 0 : i32
    %c0_i32_1 = arith.constant 0 : i32
    return %c0_i32, %c0_i32_0 : i32, i32
  }
  func.func @transform_1(%arg0: i32) -> (i32, i32) {
    %c0_i32 = arith.constant 0 : i32
    %c0_i32_0 = arith.constant 0 : i32
    %c0_i32_1 = arith.constant 0 : i32
    return %c0_i32, %c0_i32_0 : i32, i32
  }
  func.func @transform_2(%arg0: i32) -> (i32, i32) {
    %c0_i32 = arith.constant 0 : i32
    %c0_i32_0 = arith.constant 0 : i32
    %c0_i32_1 = arith.constant 0 : i32
    return %c0_i32, %c0_i32_0 : i32, i32
  }
  func.func @transform_3(%arg0: i32) -> (i32, i32) {
    %c0_i32 = arith.constant 0 : i32
    %c0_i32_0 = arith.constant 0 : i32
    %c0_i32_1 = arith.constant 0 : i32
    return %c0_i32, %c0_i32_0 : i32, i32
  }
  func.func @transform_4(%arg0: i32) -> (i32, i32) {
    %c0_i32 = arith.constant 0 : i32
    %c0_i32_0 = arith.constant 0 : i32
    %c0_i32_1 = arith.constant 0 : i32
    return %c0_i32, %c0_i32_0 : i32, i32
  }
  func.func @transform_5(%arg0: i32) -> (i32, i32) {
    %c0_i32 = arith.constant 0 : i32
    %c0_i32_0 = arith.constant 0 : i32
    %c0_i32_1 = arith.constant 0 : i32
    return %c0_i32, %c0_i32_0 : i32, i32
  }
  func.func @transform_6(%arg0: i32) -> (i32, i32) {
    %c0_i32 = arith.constant 0 : i32
    %c0_i32_0 = arith.constant 0 : i32
    %c0_i32_1 = arith.constant 0 : i32
    return %c0_i32, %c0_i32_0 : i32, i32
  }
  func.func @transform_7(%arg0: i32) -> (i32, i32) {
    %c0_i32 = arith.constant 0 : i32
    %c0_i32_0 = arith.constant 0 : i32
    %c0_i32_1 = arith.constant 0 : i32
    return %c0_i32, %c0_i32_0 : i32, i32
  }
  func.func @transform_8(%arg0: i32) -> (i32, i32) {
    %c0_i32 = arith.constant 0 : i32
    %c0_i32_0 = arith.constant 0 : i32
    %c0_i32_1 = arith.constant 0 : i32
    return %c0_i32, %c0_i32_0 : i32, i32
  }
  func.func @transform_9(%arg0: i32) -> (i32, i32, i32) {
    %c0_i32 = arith.constant 0 : i32
    %c0_i32_0 = arith.constant 0 : i32
    %c0_i32_1 = arith.constant 0 : i32
    %c0_i32_2 = arith.constant 0 : i32
    return %c0_i32, %c0_i32_0, %c0_i32_1 : i32, i32, i32
  }
}

</mosaic_0001>

<bundles_post_ra>
// kernel: _lambda_.5
= control target key start
LH: loop header
LB: loop body
LE: loop exit
PB: predicated region body
PF: predicated region fallthrough
CT: control target
= control target key end

     0   :  { %v429_v2 = vmov 0   ;;  %s533_s0 = inlined_call_operand.vmem [shape: f32[32,16], index: 0, kind: input, shape index: {}]   ;;  %s534_s1 = inlined_call_operand.vmem [shape: f32[4,32], index: 1, kind: input, shape index: {}]   ;;  %s535_s2 = inlined_call_operand.vmem [shape: f32[4,1], index: 2, kind: input, shape index: {}]   ;;  %s536_s3 = inlined_call_operand.vmem [shape: f32[4,4], index: 3, kind: input, shape index: {}]   ;;  %s537_s4 = inlined_call_operand.vmem [shape: f32[4,1], index: 4, kind: input, shape index: {}]   ;;  %s538_s5 = inlined_call_operand.vmem [shape: f32[8,8], index: 5, kind: input, shape index: {}]   ;;  %s539_s6 = inlined_call_operand.vmem [shape: f32[1,8], index: 6, kind: input, shape index: {}]   ;;  %s540_s7 = inlined_call_operand.vmem [shape: f32[8,8], index: 7, kind: input, shape index: {}]   ;;  %s541_s8 = inlined_call_operand.vmem [shape: f32[1,8], index: 8, kind: input, shape index: {}]   ;;  %s542_s9 = inlined_call_operand.hbm [shape: f32[2,4,8], index: 9, kind: output, shape index: {}]  }
   0x1   :  { %v36_v0 = vld [vmem:[%s533_s0 + $0x18] sm:$0xff]  ;;  %v35_v1 = vld [vmem:[%s533_s0 + $0x10] sm:$0xff]  ;;  %376 = vset.pattern.permute.xlu0 %v429_v2  ;;  %v38_v3 = vld [vmem:[%s535_s2] sm:$0xf] }
   0x2   :  { %60 = vmatpush.msra.mxu0 %v36_v0  ;;  %v34_v4 = vld [vmem:[%s533_s0 + $0x8] sm:$0xff]  ;;  %41 = vperm.xlu0 %376, %v38_v3  }
   0x4   :  { %61 = vmatpush.msra.mxu0 %v35_v1 }
   0x5   :  { %14 = vsyncpa [#allocation3], 0  ;;  %v33_v5 = vld [vmem:[%s533_s0] sm:$0xff]  ;;  %vm44_vm0 = vcmask 261120   ;;  %vm99_vm5 = vcmask 1043456   ;;  %vm95_vm6 = vcmask 31744  }
   0x6   :  { %62 = vmatpush.msra.mxu0 %v34_v4  ;;  %v37_v6 = vld [vmem:[%s534_s1] sm:$0xf]  ;;  %vm151_vm11 = vcmask 64512   ;;  %s348_s29 = sshll.u32 %s542_s9, 4  ;;  %s432_s30 = smov 64   ;;  %s349_s29 = int_to_ptr.hbm [resolvable:$true] %s348_s29 }
   0x7   :  { %v89_v7 = vld [vmem:[%s537_s4] sm:$0xf]  ;;  %s433_s10 = smov 4  }
   0x8   :  { %63 = vmatpush.msra.mxu0 %v33_v5  ;;  %v88_v25 = vld [vmem:[%s536_s3] sm:$0xf]  ;;  %s430_s3 = smov 120  }
   0x9   :  { %360 = vmatmul.msk.f32.vlgmr.msra.gmra.mxu0 %vm44_vm0, %v37_v6  ;;  %v144_v26 = vld [vmem:[%s538_s5] sm:$0xff]  ;;  %vm222_vm0 = vcmask 60416  }
   0xa   :  { %92 = vperm.xlu0 %376, %v89_v7   ;;  %170 = vmatpush.msra.mxu2 %v144_v26  ;;  %v146_v45 = vld [vmem:[%s540_s7] sm:$0xff] }
   0xb   :  { %196 = vmatpush.msra.mxu3 %v146_v45  ;;  %v377_v47 = vld [vmem:[%s539_s6] ss:$0 sm:$0xff]  ;;  %s431_s6 = smov [#allocation2]  }
   0xc   :  { %290 = vmatpush.msrb.mxu2 %v146_v45  ;;  %v378_v52 = vld [vmem:[%s541_s8] ss:$0 sm:$0xff]  ;;  %s346_s7 = sshll.u32 %s431_s6, 4  ;;  %s347_s7 = int_to_ptr.vmem [resolvable:$true] %s346_s7 }
  0x74   :  { %v42_v8 = vpop.permute.xlu0 %41 }
  0x7c   :  { %v93_v27 = vpop.permute.xlu0 %92 }
  0x86   :  { %v65_v9 = vpop.f32.mrf.mxu0 }
  0x87   :  { %v66_v10 = vadd.f32 %v65_v9, %v42_v8 }
  0x89   :  { %v361_v11 = vmul.f32 -1.442695, %v66_v10 }
  0x8b   :  { %379 = vpow2.f32 %v361_v11 }
  0x91   :  { %v380_v12 = vpop.eup %379 }
  0x92   :  { %v71_v13 = vadd.f32 1.0, %v380_v12 }
  0x94   :  { %381 = vrcp.f32 %v71_v13  ;;  %v83_v17 = vand.u32 2147483648, %v71_v13  ;;  %v81_v19 = vand.u32 2147483647, %v71_v13  ;;  %vm77_vm2 = vweird.f32 %v71_v13 }
  0x96   :  { %v84_v21 = vor.u32 1.1754944e-38, %v83_v17  ;;  %vm82_vm4 = vcmp.eq.f32.partialorder %v81_v19, 8.507059e+37 }
  0x9a   :  { %v382_v14 = vpop.eup %381 }
  0x9b   :  { %v73_v15 = vmul.f32 %v382_v14, %v71_v13  ;;  %vm78_vm1 = vweird.f32 %v382_v14 }
  0x9c   :  { %vm79_vm3 = vmor %vm77_vm2, %vm78_vm1 }
  0x9d   :  { %v74_v16 = vsub.f32 1.0, %v73_v15 }
  0x9f   :  { %v75_v18 = vmul.f32 %v382_v14, %v74_v16 }
  0xa1   :  { %v76_v20 = vadd.f32 %v382_v14, %v75_v18 }
  0xa3   :  { %v80_v22 = vsel %vm79_vm3, %v382_v14, %v76_v20 }
  0xa4   :  { %v85_v23 = vsel %vm82_vm4, %v84_v21, %v80_v22 }
  0xa5   :  { %v87_v24 = vmul.f32 %v85_v23, %v66_v10 }
  0xa7   :  { %362 = vmatpush.msk.msra.mxu1 %vm99_vm5, %v87_v24 }
  0xa8   :  { %363 = vmatmul.msk.f32.vlgmr.msra.gmra.mxu1 %vm95_vm6, %v88_v25 }
  0xa9   :  { %267 = vmatpush.msrb.mxu1 %v144_v26 }
 0x125   :  { %v120_v28 = vpop.f32.mrf.mxu1 }
 0x126   :  { %v121_v29 = vadd.f32 %v120_v28, %v93_v27 }
 0x128   :  { %v364_v30 = vmul.f32 -1.442695, %v121_v29 }
 0x12a   :  { %383 = vpow2.f32 %v364_v30 }
 0x130   :  { %v384_v31 = vpop.eup %383 }
 0x131   :  { %v126_v32 = vadd.f32 1.0, %v384_v31 }
 0x133   :  { %385 = vrcp.f32 %v126_v32  ;;  %v138_v36 = vand.u32 2147483648, %v126_v32  ;;  %v136_v38 = vand.u32 2147483647, %v126_v32  ;;  %vm132_vm8 = vweird.f32 %v126_v32 }
 0x135   :  { %v139_v40 = vor.u32 1.1754944e-38, %v138_v36  ;;  %vm137_vm10 = vcmp.eq.f32.partialorder %v136_v38, 8.507059e+37 }
 0x139   :  { %v386_v33 = vpop.eup %385 }
 0x13a   :  { %v128_v34 = vmul.f32 %v386_v33, %v126_v32  ;;  %vm133_vm7 = vweird.f32 %v386_v33 }
 0x13b   :  { %vm134_vm9 = vmor %vm132_vm8, %vm133_vm7 }
 0x13c   :  { %v129_v35 = vsub.f32 1.0, %v128_v34 }
 0x13e   :  { %v130_v37 = vmul.f32 %v386_v33, %v129_v35 }
 0x140   :  { %v131_v39 = vadd.f32 %v386_v33, %v130_v37 }
 0x142   :  { %v135_v41 = vsel %vm134_vm9, %v386_v33, %v131_v39 }
 0x143   :  { %v140_v42 = vsel %vm137_vm10, %v139_v40, %v135_v41 }
 0x144   :  { %v142_v43 = vmul.f32 %v140_v42, %v121_v29 }
 0x146   :  { %v143_v44 = vadd.f32 %v142_v43, %v87_v24 }
 0x148   :  { %248 = vrot.lane.b32.xlu1 %v143_v44, %s430_s3  ;;  %365 = vmatmul.msk.f32.vlgmr.msra.gmra.mxu2 %vm151_vm11, %v143_v44 }
 0x1ba   :  { %v249_v46 = vpop.permute.xlu1 %248 }
 0x1bb   :  { %368 = vmatmul.msk.f32.vlgmr.msrb.gmra.mxu1 %vm151_vm11, %v249_v46 }
 0x1cb   :  { %v172_v48 = vpop.f32.mrf.mxu2 }
 0x1cc   :  { %v173_v49 = vadd.f32 %v377_v47, %v172_v48 }
 0x1ce   :  { %366 = vmatmul.msk.f32.vlgmr.msra.gmra.mxu3 %vm151_vm11, %v173_v49 }
 0x238   :  { %v269_v50 = vpop.f32.mrf.mxu1 }
 0x239   :  { %v270_v51 = vadd.f32 %v377_v47, %v269_v50 }
 0x23b   :  { %369 = vmatmul.msk.f32.vlgmr.msrb.gmra.mxu2 %vm151_vm11, %v270_v51 }
 0x251   :  { %v198_v53 = vpop.f32.mrf.mxu3 }
 0x252   :  { %v199_v54 = vadd.f32 %v378_v52, %v198_v53 }
 0x254   :  { %v367_v55 = vmul.f32 -1.442695, %v199_v54 }
 0x256   :  { %387 = vpow2.f32 %v367_v55 }
 0x25c   :  { %v388_v56 = vpop.eup %387 }
 0x25d   :  { %v204_v57 = vadd.f32 1.0, %v388_v56 }
 0x25f   :  { %389 = vrcp.f32 %v204_v57  ;;  %v216_v61 = vand.u32 2147483648, %v204_v57  ;;  %v214_v63 = vand.u32 2147483647, %v204_v57  ;;  %vm210_vm13 = vweird.f32 %v204_v57 }
 0x261   :  { %v217_v1 = vor.u32 1.1754944e-38, %v216_v61  ;;  %vm215_vm15 = vcmp.eq.f32.partialorder %v214_v63, 8.507059e+37 }
 0x265   :  { %v390_v58 = vpop.eup %389 }
 0x266   :  { %v206_v59 = vmul.f32 %v390_v58, %v204_v57  ;;  %vm211_vm12 = vweird.f32 %v390_v58 }
 0x267   :  { %vm212_vm14 = vmor %vm210_vm13, %vm211_vm12 }
 0x268   :  { %v207_v60 = vsub.f32 1.0, %v206_v59 }
 0x26a   :  { %v208_v62 = vmul.f32 %v390_v58, %v207_v60 }
 0x26c   :  { %v209_v0 = vadd.f32 %v390_v58, %v208_v62 }
 0x26e   :  { %v213_v2 = vsel %vm212_vm14, %v390_v58, %v209_v0 }
 0x26f   :  { %v218_v3 = vsel %vm215_vm15, %v217_v1, %v213_v2 }
 0x270   :  { %v220_v4 = vmul.f32 %v218_v3, %v199_v54 }
 0x272   :  { %v221_v5 = vadd.f32 %v220_v4, %v173_v49 }
 0x274   :  { %v223_v6 = vsel %vm222_vm0, %v221_v5, -inf }
 0x275   :  { %224 = vmax.xlane.f32.xlu1 %v223_v6 }
 0x2be   :  { %v292_v7 = vpop.f32.mrf.mxu2 }
 0x2bf   :  { %v293_v8 = vadd.f32 %v378_v52, %v292_v7 }
 0x2c1   :  { %v370_v9 = vmul.f32 -1.442695, %v293_v8 }
 0x2c3   :  { %391 = vpow2.f32 %v370_v9 }
 0x2c9   :  { %v392_v10 = vpop.eup %391 }
 0x2ca   :  { %v298_v11 = vadd.f32 1.0, %v392_v10 }
 0x2cc   :  { %393 = vrcp.f32 %v298_v11  ;;  %v310_v15 = vand.u32 2147483648, %v298_v11  ;;  %v308_v17 = vand.u32 2147483647, %v298_v11  ;;  %vm304_vm2 = vweird.f32 %v298_v11 }
 0x2ce   :  { %v311_v19 = vor.u32 1.1754944e-38, %v310_v15  ;;  %vm309_vm4 = vcmp.eq.f32.partialorder %v308_v17, 8.507059e+37 }
 0x2d2   :  { %v394_v12 = vpop.eup %393 }
 0x2d3   :  { %v300_v13 = vmul.f32 %v394_v12, %v298_v11  ;;  %vm305_vm1 = vweird.f32 %v394_v12 }
 0x2d4   :  { %vm306_vm3 = vmor %vm304_vm2, %vm305_vm1 }
 0x2d5   :  { %v301_v14 = vsub.f32 1.0, %v300_v13 }
 0x2d7   :  { %v302_v16 = vmul.f32 %v394_v12, %v301_v14 }
 0x2d9   :  { %v303_v18 = vadd.f32 %v394_v12, %v302_v16 }
 0x2db   :  { %v307_v20 = vsel %vm306_vm3, %v394_v12, %v303_v18 }
 0x2dc   :  { %v312_v21 = vsel %vm309_vm4, %v311_v19, %v307_v20 }
 0x2dd   :  { %v314_v22 = vmul.f32 %v312_v21, %v293_v8 }
 0x2df   :  { %v315_v23 = vadd.f32 %v314_v22, %v270_v51 }
 0x2e1   :  { %v316_v24 = vsel %vm222_vm0, %v315_v23, -inf }
 0x2e2   :  { %317 = vmax.xlane.f32.xlu2 %v316_v24 }
 0x2e8   :  { %v225_v25 = vpop.xlane.xlu1 %224 }
 0x2e9   :  { %v226_v26 = vsub.f32 %v221_v5, %v225_v25 }
 0x2eb   :  { %v227_v27 = vmul.f32 1.442695, %v226_v26 }
 0x2ed   :  { %395 = vpow2.f32 %v227_v27 }
 0x2f3   :  { %v396_v28 = vpop.eup %395 }
 0x2f4   :  { %v229_v29 = vsel %vm222_vm0, %v396_v28, 0.0 }
 0x2f5   :  { %230 = vadd.xlane.f32.xlu2 %v229_v29 }
 0x355   :  { %v318_v30 = vpop.xlane.xlu2 %317 }
 0x356   :  { %v319_v31 = vsub.f32 %v315_v23, %v318_v30 }
 0x358   :  { %v320_v32 = vmul.f32 1.442695, %v319_v31 }
 0x35a   :  { %397 = vpow2.f32 %v320_v32 }
 0x360   :  { %v398_v33 = vpop.eup %397 }
 0x361   :  { %v322_v34 = vsel %vm222_vm0, %v398_v33, 0.0 }
 0x362   :  { %323 = vadd.xlane.f32.xlu0 %v322_v34 }
 0x368   :  { %v231_v35 = vpop.xlane.xlu2 %230 }
 0x369   :  { %399 = vrcp.f32 %v231_v35  ;;  %v243_v39 = vand.u32 2147483648, %v231_v35  ;;  %v241_v41 = vand.u32 2147483647, %v231_v35  ;;  %vm237_vm6 = vweird.f32 %v231_v35 }
 0x36b   :  { %v244_v43 = vor.u32 1.1754944e-38, %v243_v39  ;;  %vm242_vm8 = vcmp.eq.f32.partialorder %v241_v41, 8.507059e+37 }
 0x36f   :  { %v400_v36 = vpop.eup %399 }
 0x370   :  { %v233_v37 = vmul.f32 %v400_v36, %v231_v35  ;;  %vm238_vm5 = vweird.f32 %v400_v36 }
 0x371   :  { %vm239_vm7 = vmor %vm237_vm6, %vm238_vm5 }
 0x372   :  { %v234_v38 = vsub.f32 1.0, %v233_v37 }
 0x374   :  { %v235_v40 = vmul.f32 %v400_v36, %v234_v38 }
 0x376   :  { %v236_v42 = vadd.f32 %v400_v36, %v235_v40 }
 0x378   :  { %v240_v44 = vsel %vm239_vm7, %v400_v36, %v236_v42 }
 0x379   :  { %v245_v45 = vsel %vm242_vm8, %v244_v43, %v240_v44 }
 0x37a   :  { %v246_v46 = vmul.f32 %v396_v28, %v245_v45 }
 0x37c   :  { %247 = vst.msk [vmem:[#allocation2] sm:$0xf] %vm222_vm0, %v246_v46 }
 0x3d5   :  { %v324_v47 = vpop.xlane.xlu0 %323 }
 0x3d6   :  { %401 = vrcp.f32 %v324_v47  ;;  %v336_v51 = vand.u32 2147483648, %v324_v47  ;;  %v334_v53 = vand.u32 2147483647, %v324_v47  ;;  %vm330_vm10 = vweird.f32 %v324_v47 }
 0x3d8   :  { %v337_v55 = vor.u32 1.1754944e-38, %v336_v51  ;;  %vm335_vm12 = vcmp.eq.f32.partialorder %v334_v53, 8.507059e+37 }
 0x3dc   :  { %v402_v48 = vpop.eup %401 }
 0x3dd   :  { %v326_v49 = vmul.f32 %v402_v48, %v324_v47  ;;  %vm331_vm9 = vweird.f32 %v402_v48 }
 0x3de   :  { %vm332_vm11 = vmor %vm330_vm10, %vm331_vm9 }
 0x3df   :  { %v327_v50 = vsub.f32 1.0, %v326_v49 }
 0x3e1   :  { %v328_v52 = vmul.f32 %v402_v48, %v327_v50 }
 0x3e3   :  { %v329_v54 = vadd.f32 %v402_v48, %v328_v52 }
 0x3e5   :  { %v333_v56 = vsel %vm332_vm11, %v402_v48, %v329_v54 }
 0x3e6   :  { %v338_v57 = vsel %vm335_vm12, %v337_v55, %v333_v56 }
 0x3e7   :  { %v339_v58 = vmul.f32 %v398_v33, %v338_v57 }
 0x3e9   :  { %341 = vst.msk [vmem:[#allocation2 + $0x4] sm:$0xf] %vm222_vm0, %v339_v58 }
 0x3ea   :  { %354 = dma.vmem_to_hbm [thread:$0]  %s347_s7, 128, %s349_s29, [#allocation3], %s432_s30, %s432_s30, %s433_s10  }
 0x3eb   :  { %427 = dma.done.wait [#allocation3], 128  }
 0x3ec   :  { %428 = vsyncadd [#allocation3], 4294967168 }
 0x3ed   :  { %359 = vsyncpa [#allocation3], 1 }

// kernel: _lambda_.3
= control target key start
LH: loop header
LB: loop body
LE: loop exit
PB: predicated region body
PF: predicated region fallthrough
CT: control target
= control target key end

     0   :  { %9 = vsyncpa [#allocation6], 0  ;;  %s2924_s0 = inlined_call_operand.vmem [shape: f32[64,128], index: 0, kind: input, shape index: {}]   ;;  %s2925_s1 = inlined_call_operand.hbm [shape: f32[128,512], index: 1, kind: input, shape index: {}]   ;;  %s2926_s2 = inlined_call_operand.hbm [shape: f32[128,512], index: 2, kind: input, shape index: {}]   ;;  %s2927_s3 = inlined_call_operand.vmem [shape: f32[1,512], index: 3, kind: input, shape index: {}]   ;;  %s2928_s4 = inlined_call_operand.vmem [shape: f32[64,128], index: 4, kind: output, shape index: {}]  }
   0x1   :  { %s17_s17 = sshll.u32 %s2925_s1, 4  ;;  %s18_s17 = int_to_ptr.hbm [resolvable:$true] %s17_s17 }
   0x2   :  { %10 = vsyncpa [#allocation8], 0  ;;  %s1941_s18 = smov [#allocation5]   ;;  %s30_s22 = sshll.u32 %s2926_s2, 4  ;;  %s31_s22 = int_to_ptr.hbm [resolvable:$true] %s30_s22 }
   0x3   :  { %s19_s19 = sshll.u32 %s1941_s18, 4  ;;  %s1942_s23 = smov 512   ;;  %s20_s19 = int_to_ptr.vmem [resolvable:$true] %s19_s19 }
   0x4   :  { %s1943_s24 = smov 32   ;;  %s1944_s25 = smov [#allocation7]  }
   0x5   :  { %25 = dma.hbm_to_vmem [thread:$0]  %s18_s17, 8192, %s20_s19, [#allocation6], %s1942_s23, %s1942_s23, %s1943_s24  }
   0x6   :  { %s32_s26 = sshll.u32 %s1944_s25, 4  ;;  %s33_s26 = int_to_ptr.vmem [resolvable:$true] %s32_s26 }
   0x7   :  { %38 = dma.hbm_to_vmem [thread:$0]  %s31_s22, 8192, %s33_s26, [#allocation8], %s1942_s23, %s1942_s23, %s1943_s24  }
   0x8   :  { %1937 = dma.done.wait [#allocation6], 8192  }
   0x9   :  { %1938 = vsyncadd [#allocation6], 4294959104 }
   0xa   :  { %1939 = dma.done.wait [#allocation8], 8192  }
   0xb   :  { %1940 = vsyncadd [#allocation8], 4294959104  ;;  %v123_v0 = vld [vmem:[#allocation5 + $0x1e0] sm:$0xff]  ;;  %v124_v1 = vld [vmem:[#allocation5 + $0x1e8] sm:$0xff] }
   0xc   :  { %v125_v2 = vld [vmem:[#allocation5 + $0x1f0] sm:$0xff]  ;;  %137 = vmatpush.msra.mxu0 %v123_v0  ;;  %178 = vmatpush.msra.mxu1 %v124_v1  ;;  %v126_v3 = vld [vmem:[#allocation5 + $0x1f8] sm:$0xff]  ;;  %v119_v4 = vld [vmem:[#allocation5 + $0x1c0] sm:$0xff] }
   0xd   :  { %v120_v5 = vld [vmem:[#allocation5 + $0x1c8] sm:$0xff]  ;;  %219 = vmatpush.msra.mxu2 %v125_v2  ;;  %260 = vmatpush.msra.mxu3 %v126_v3  ;;  %v121_v6 = vld [vmem:[#allocation5 + $0x1d0] sm:$0xff]  ;;  %v122_v7 = vld [vmem:[#allocation5 + $0x1d8] sm:$0xff] }
   0xe   :  { %v115_v8 = vld [vmem:[#allocation5 + $0x1a0] sm:$0xff]  ;;  %138 = vmatpush.msra.mxu0 %v119_v4  ;;  %179 = vmatpush.msra.mxu1 %v120_v5  ;;  %v116_v9 = vld [vmem:[#allocation5 + $0x1a8] sm:$0xff]  ;;  %v117_v10 = vld [vmem:[#allocation5 + $0x1b0] sm:$0xff] }
   0xf   :  { %v118_v11 = vld [vmem:[#allocation5 + $0x1b8] sm:$0xff]  ;;  %220 = vmatpush.msra.mxu2 %v121_v6  ;;  %261 = vmatpush.msra.mxu3 %v122_v7  ;;  %v111_v12 = vld [vmem:[#allocation5 + $0x180] sm:$0xff]  ;;  %v112_v13 = vld [vmem:[#allocation5 + $0x188] sm:$0xff] }
  0x10   :  { %139 = vmatpush.msra.mxu0 %v115_v8  ;;  %180 = vmatpush.msra.mxu1 %v116_v9  ;;  %v113_v14 = vld [vmem:[#allocation5 + $0x190] sm:$0xff]  ;;  %v114_v15 = vld [vmem:[#allocation5 + $0x198] sm:$0xff]  ;;  %v107_v16 = vld [vmem:[#allocation5 + $0x160] sm:$0xff] }
  0x11   :  { %221 = vmatpush.msra.mxu2 %v117_v10  ;;  %262 = vmatpush.msra.mxu3 %v118_v11  ;;  %v108_v17 = vld [vmem:[#allocation5 + $0x168] sm:$0xff]  ;;  %v109_v18 = vld [vmem:[#allocation5 + $0x170] sm:$0xff]  ;;  %v110_v19 = vld [vmem:[#allocation5 + $0x178] sm:$0xff] }
  0x12   :  { %140 = vmatpush.msra.mxu0 %v111_v12  ;;  %181 = vmatpush.msra.mxu1 %v112_v13  ;;  %v103_v20 = vld [vmem:[#allocation5 + $0x140] sm:$0xff]  ;;  %v104_v21 = vld [vmem:[#allocation5 + $0x148] sm:$0xff]  ;;  %v105_v22 = vld [vmem:[#allocation5 + $0x150] sm:$0xff] }
  0x13   :  { %222 = vmatpush.msra.mxu2 %v113_v14  ;;  %263 = vmatpush.msra.mxu3 %v114_v15  ;;  %v106_v23 = vld [vmem:[#allocation5 + $0x158] sm:$0xff]  ;;  %v99_v24 = vld [vmem:[#allocation5 + $0x120] sm:$0xff]  ;;  %v100_v25 = vld [vmem:[#allocation5 + $0x128] sm:$0xff] }
  0x14   :  { %141 = vmatpush.msra.mxu0 %v107_v16  ;;  %182 = vmatpush.msra.mxu1 %v108_v17  ;;  %v101_v26 = vld [vmem:[#allocation5 + $0x130] sm:$0xff]  ;;  %v102_v27 = vld [vmem:[#allocation5 + $0x138] sm:$0xff]  ;;  %v95_v28 = vld [vmem:[#allocation5 + $0x100] sm:$0xff] }
  0x15   :  { %223 = vmatpush.msra.mxu2 %v109_v18  ;;  %264 = vmatpush.msra.mxu3 %v110_v19  ;;  %v96_v29 = vld [vmem:[#allocation5 + $0x108] sm:$0xff]  ;;  %v97_v30 = vld [vmem:[#allocation5 + $0x110] sm:$0xff]  ;;  %v98_v31 = vld [vmem:[#allocation5 + $0x118] sm:$0xff] }
  0x16   :  { %142 = vmatpush.msra.mxu0 %v103_v20  ;;  %183 = vmatpush.msra.mxu1 %v104_v21  ;;  %v91_v32 = vld [vmem:[#allocation5 + $0xe0] sm:$0xff]  ;;  %v92_v33 = vld [vmem:[#allocation5 + $0xe8] sm:$0xff]  ;;  %v93_v34 = vld [vmem:[#allocation5 + $0xf0] sm:$0xff] }
  0x17   :  { %224 = vmatpush.msra.mxu2 %v105_v22  ;;  %265 = vmatpush.msra.mxu3 %v106_v23  ;;  %v94_v35 = vld [vmem:[#allocation5 + $0xf8] sm:$0xff]  ;;  %v87_v36 = vld [vmem:[#allocation5 + $0xc0] sm:$0xff]  ;;  %v88_v37 = vld [vmem:[#allocation5 + $0xc8] sm:$0xff] }
  0x18   :  { %143 = vmatpush.msra.mxu0 %v99_v24  ;;  %184 = vmatpush.msra.mxu1 %v100_v25  ;;  %v89_v38 = vld [vmem:[#allocation5 + $0xd0] sm:$0xff]  ;;  %v90_v39 = vld [vmem:[#allocation5 + $0xd8] sm:$0xff]  ;;  %v83_v40 = vld [vmem:[#allocation5 + $0xa0] sm:$0xff] }
  0x19   :  { %225 = vmatpush.msra.mxu2 %v101_v26  ;;  %266 = vmatpush.msra.mxu3 %v102_v27  ;;  %v84_v41 = vld [vmem:[#allocation5 + $0xa8] sm:$0xff]  ;;  %v85_v42 = vld [vmem:[#allocation5 + $0xb0] sm:$0xff]  ;;  %v86_v43 = vld [vmem:[#allocation5 + $0xb8] sm:$0xff] }
  0x1a   :  { %144 = vmatpush.msra.mxu0 %v95_v28  ;;  %185 = vmatpush.msra.mxu1 %v96_v29  ;;  %v79_v44 = vld [vmem:[#allocation5 + $0x80] sm:$0xff]  ;;  %v80_v45 = vld [vmem:[#allocation5 + $0x88] sm:$0xff]  ;;  %v81_v46 = vld [vmem:[#allocation5 + $0x90] sm:$0xff] }
  0x1b   :  { %226 = vmatpush.msra.mxu2 %v97_v30  ;;  %267 = vmatpush.msra.mxu3 %v98_v31  ;;  %v82_v47 = vld [vmem:[#allocation5 + $0x98] sm:$0xff]  ;;  %v75_v48 = vld [vmem:[#allocation5 + $0x60] sm:$0xff]  ;;  %v76_v49 = vld [vmem:[#allocation5 + $0x68] sm:$0xff] }
  0x1c   :  { %145 = vmatpush.msra.mxu0 %v91_v32  ;;  %186 = vmatpush.msra.mxu1 %v92_v33  ;;  %v77_v50 = vld [vmem:[#allocation5 + $0x70] sm:$0xff]  ;;  %v78_v51 = vld [vmem:[#allocation5 + $0x78] sm:$0xff]  ;;  %v71_v52 = vld [vmem:[#allocation5 + $0x40] sm:$0xff] }
  0x1d   :  { %227 = vmatpush.msra.mxu2 %v93_v34  ;;  %268 = vmatpush.msra.mxu3 %v94_v35  ;;  %v72_v53 = vld [vmem:[#allocation5 + $0x48] sm:$0xff]  ;;  %v73_v54 = vld [vmem:[#allocation5 + $0x50] sm:$0xff]  ;;  %v74_v55 = vld [vmem:[#allocation5 + $0x58] sm:$0xff] }
  0x1e   :  { %146 = vmatpush.msra.mxu0 %v87_v36  ;;  %187 = vmatpush.msra.mxu1 %v88_v37  ;;  %v67_v56 = vld [vmem:[#allocation5 + $0x20] sm:$0xff]  ;;  %v68_v57 = vld [vmem:[#allocation5 + $0x28] sm:$0xff]  ;;  %v69_v58 = vld [vmem:[#allocation5 + $0x30] sm:$0xff] }
  0x1f   :  { %228 = vmatpush.msra.mxu2 %v89_v38  ;;  %269 = vmatpush.msra.mxu3 %v90_v39  ;;  %v70_v59 = vld [vmem:[#allocation5 + $0x38] sm:$0xff]  ;;  %v63_v60 = vld [vmem:[#allocation5] sm:$0xff]  ;;  %v64_v61 = vld [vmem:[#allocation5 + $0x8] sm:$0xff] }
  0x20   :  { %147 = vmatpush.msra.mxu0 %v83_v40  ;;  %188 = vmatpush.msra.mxu1 %v84_v41  ;;  %v65_v62 = vld [vmem:[#allocation5 + $0x10] sm:$0xff]  ;;  %v66_v63 = vld [vmem:[#allocation5 + $0x18] sm:$0xff]  ;;  %v55_v0 = vld [vmem:[%s2924_s0] sm:$0xff] }
  0x21   :  { %229 = vmatpush.msra.mxu2 %v85_v42  ;;  %270 = vmatpush.msra.mxu3 %v86_v43  ;;  %v1980_v1 = vld [vmem:[#allocation7 + $0x1e0] sm:$0xff]  ;;  %v1982_v2 = vld [vmem:[#allocation7 + $0x1e8] sm:$0xff]  ;;  %v1984_v3 = vld [vmem:[#allocation7 + $0x1f8] sm:$0xff] }
  0x22   :  { %148 = vmatpush.msra.mxu0 %v79_v44  ;;  %189 = vmatpush.msra.mxu1 %v80_v45  ;;  %v1986_v4 = vld [vmem:[#allocation7 + $0x1f0] sm:$0xff]  ;;  %v1988_v5 = vld [vmem:[#allocation7 + $0x1c0] sm:$0xff]  ;;  %v1990_v6 = vld [vmem:[#allocation7 + $0x1c8] sm:$0xff] }
  0x23   :  { %230 = vmatpush.msra.mxu2 %v81_v46  ;;  %271 = vmatpush.msra.mxu3 %v82_v47  ;;  %v1994_v7 = vld [vmem:[#allocation7 + $0x1d8] sm:$0xff]  ;;  %v1996_v8 = vld [vmem:[#allocation7 + $0x1d0] sm:$0xff]  ;;  %v1999_v9 = vld [vmem:[#allocation7 + $0x1a0] sm:$0xff] }
  0x24   :  { %149 = vmatpush.msra.mxu0 %v75_v48  ;;  %190 = vmatpush.msra.mxu1 %v76_v49  ;;  %v2001_v10 = vld [vmem:[#allocation7 + $0x1a8] sm:$0xff]  ;;  %v2006_v11 = vld [vmem:[#allocation7 + $0x1b8] sm:$0xff]  ;;  %v2008_v12 = vld [vmem:[#allocation7 + $0x1b0] sm:$0xff] }
  0x25   :  { %231 = vmatpush.msra.mxu2 %v77_v50  ;;  %272 = vmatpush.msra.mxu3 %v78_v51  ;;  %v56_v13 = vld [vmem:[%s2924_s0 + $0x8] sm:$0xff]  ;;  %v2017_v14 = vld [vmem:[#allocation7 + $0x180] sm:$0xff]  ;;  %v2023_v16 = vld [vmem:[#allocation7 + $0x198] sm:$0xff] }
  0x26   :  { %150 = vmatpush.msra.mxu0 %v71_v52  ;;  %191 = vmatpush.msra.mxu1 %v72_v53  ;;  %v2019_v15 = vld [vmem:[#allocation7 + $0x188] sm:$0xff]  ;;  %v2025_v17 = vld [vmem:[#allocation7 + $0x190] sm:$0xff]  ;;  %v2027_v18 = vld [vmem:[#allocation7 + $0x160] sm:$0xff] }
  0x27   :  { %232 = vmatpush.msra.mxu2 %v73_v54  ;;  %273 = vmatpush.msra.mxu3 %v74_v55  ;;  %v2029_v19 = vld [vmem:[#allocation7 + $0x168] sm:$0xff]  ;;  %v2033_v20 = vld [vmem:[#allocation7 + $0x178] sm:$0xff]  ;;  %v2035_v21 = vld [vmem:[#allocation7 + $0x170] sm:$0xff] }
  0x28   :  { %151 = vmatpush.msra.mxu0 %v67_v56  ;;  %192 = vmatpush.msra.mxu1 %v68_v57  ;;  %v2038_v22 = vld [vmem:[#allocation7 + $0x140] sm:$0xff]  ;;  %v2040_v23 = vld [vmem:[#allocation7 + $0x148] sm:$0xff]  ;;  %v2045_v24 = vld [vmem:[#allocation7 + $0x158] sm:$0xff] }
  0x29   :  { %233 = vmatpush.msra.mxu2 %v69_v58  ;;  %274 = vmatpush.msra.mxu3 %v70_v59  ;;  %v2047_v25 = vld [vmem:[#allocation7 + $0x150] sm:$0xff]  ;;  %v2056_v27 = vld [vmem:[#allocation7 + $0x120] sm:$0xff]  ;;  %v2058_v28 = vld [vmem:[#allocation7 + $0x128] sm:$0xff] }
  0x2a   :  { %152 = vmatpush.msra.mxu0 %v63_v60  ;;  %193 = vmatpush.msra.mxu1 %v64_v61  ;;  %v57_v26 = vld [vmem:[%s2924_s0 + $0x10] sm:$0xff]  ;;  %v2062_v29 = vld [vmem:[#allocation7 + $0x138] sm:$0xff]  ;;  %v2066_v31 = vld [vmem:[#allocation7 + $0x100] sm:$0xff] }
  0x2b   :  { %234 = vmatpush.msra.mxu2 %v65_v62  ;;  %275 = vmatpush.msra.mxu3 %v66_v63  ;;  %v2064_v30 = vld [vmem:[#allocation7 + $0x130] sm:$0xff]  ;;  %v2068_v32 = vld [vmem:[#allocation7 + $0x108] sm:$0xff]  ;;  %v2072_v33 = vld [vmem:[#allocation7 + $0x118] sm:$0xff] }
  0x2c   :  { %153 = vmatmul.f32.vlgmr.msra.gmra.mxu0 %v55_v0  ;;  %194 = vmatmul.f32.vlgmr.msra.gmra.mxu1 %v55_v0  ;;  %v2074_v34 = vld [vmem:[#allocation7 + $0x110] sm:$0xff]  ;;  %v2077_v35 = vld [vmem:[#allocation7 + $0xe0] sm:$0xff]  ;;  %v2079_v36 = vld [vmem:[#allocation7 + $0xe8] sm:$0xff] }
  0x2d   :  { %235 = vmatmul.f32.vlgmr.msra.gmra.mxu2 %v55_v0  ;;  %276 = vmatmul.f32.vlgmr.msra.gmra.mxu3 %v55_v0  ;;  %v2084_v37 = vld [vmem:[#allocation7 + $0xf8] sm:$0xff]  ;;  %v2086_v38 = vld [vmem:[#allocation7 + $0xf0] sm:$0xff]  ;;  %v2095_v40 = vld [vmem:[#allocation7 + $0xc0] sm:$0xff] }
  0x2e   :  { %406 = vmatpush.msrb.mxu0 %v1980_v1  ;;  %426 = vmatpush.msrb.mxu1 %v1982_v2  ;;  %v58_v39 = vld [vmem:[%s2924_s0 + $0x18] sm:$0xff]  ;;  %v2097_v41 = vld [vmem:[#allocation7 + $0xc8] sm:$0xff]  ;;  %v2103_v43 = vld [vmem:[#allocation7 + $0xd0] sm:$0xff] }
  0x2f   :  { %466 = vmatpush.msrb.mxu3 %v1984_v3  ;;  %446 = vmatpush.msrb.mxu2 %v1986_v4  ;;  %v2101_v42 = vld [vmem:[#allocation7 + $0xd8] sm:$0xff]  ;;  %3017 = vst [vmem:[#allocation12_spill] sm:$0xff] %v2103_v43  ;;  %v2105_v44 = vld [vmem:[#allocation7 + $0xa0] sm:$0xff]  ;;  %v2107_v45 = vld [vmem:[#allocation7 + $0xa8] sm:$0xff] }
  0x30   :  { %407 = vmatpush.msrb.mxu0 %v1988_v5  ;;  %427 = vmatpush.msrb.mxu1 %v1990_v6  ;;  %3016 = vst [vmem:[#allocation11_spill] sm:$0xff] %v2101_v42  ;;  %v2111_v46 = vld [vmem:[#allocation7 + $0xb8] sm:$0xff]  ;;  %v2113_v47 = vld [vmem:[#allocation7 + $0xb0] sm:$0xff]  ;;  %v2116_v48 = vld [vmem:[#allocation7 + $0x80] sm:$0xff] }
  0x31   :  { %467 = vmatpush.msrb.mxu3 %v1994_v7  ;;  %447 = vmatpush.msrb.mxu2 %v1996_v8  ;;  %3018 = vst [vmem:[#allocation13_spill] sm:$0xff] %v2105_v44  ;;  %v2118_v49 = vld [vmem:[#allocation7 + $0x88] sm:$0xff]  ;;  %v2123_v50 = vld [vmem:[#allocation7 + $0x98] sm:$0xff]  ;;  %v2125_v51 = vld [vmem:[#allocation7 + $0x90] sm:$0xff] }
  0x32   :  { %408 = vmatpush.msrb.mxu0 %v1999_v9  ;;  %428 = vmatpush.msrb.mxu1 %v2001_v10  ;;  %3019 = vst [vmem:[#allocation14_spill] sm:$0xff] %v2107_v45  ;;  %v59_v52 = vld [vmem:[%s2924_s0 + $0x20] sm:$0xff]  ;;  %v2136_v54 = vld [vmem:[#allocation7 + $0x68] sm:$0xff]  ;;  %v2140_v55 = vld [vmem:[#allocation7 + $0x78] sm:$0xff] }
  0x33   :  { %468 = vmatpush.msrb.mxu3 %v2006_v11  ;;  %448 = vmatpush.msrb.mxu2 %v2008_v12  ;;  %3020 = vst [vmem:[#allocation15_spill] sm:$0xff] %v2111_v46  ;;  %v2134_v53 = vld [vmem:[#allocation7 + $0x60] sm:$0xff]  ;;  %v2142_v56 = vld [vmem:[#allocation7 + $0x70] sm:$0xff]  ;;  %v2146_v58 = vld [vmem:[#allocation7 + $0x48] sm:$0xff] }
  0x34   :  { %156 = vmatmul.f32.gmra.mxu0 %v56_v13  ;;  %197 = vmatmul.f32.gmra.mxu1 %v56_v13  ;;  %3021 = vst [vmem:[#allocation16_spill] sm:$0xff] %v2113_v47  ;;  %v2144_v57 = vld [vmem:[#allocation7 + $0x40] sm:$0xff]  ;;  %v2150_v59 = vld [vmem:[#allocation7 + $0x58] sm:$0xff]  ;;  %v2152_v60 = vld [vmem:[#allocation7 + $0x50] sm:$0xff] }
  0x35   :  { %238 = vmatmul.f32.gmra.mxu2 %v56_v13  ;;  %279 = vmatmul.f32.gmra.mxu3 %v56_v13  ;;  %3022 = vst [vmem:[#allocation17_spill] sm:$0xff] %v2116_v48  ;;  %v2155_v61 = vld [vmem:[#allocation7 + $0x20] sm:$0xff]  ;;  %v2157_v62 = vld [vmem:[#allocation7 + $0x28] sm:$0xff]  ;;  %v2162_v63 = vld [vmem:[#allocation7 + $0x30] sm:$0xff] }
  0x36   :  { %409 = vmatpush.msrb.mxu0 %v2017_v14  ;;  %429 = vmatpush.msrb.mxu1 %v2019_v15  ;;  %3023 = vst [vmem:[#allocation18_spill] sm:$0xff] %v2118_v49  ;;  %v2164_v0 = vld [vmem:[#allocation7 + $0x38] sm:$0xff]  ;;  %v60_v13 = vld [vmem:[%s2924_s0 + $0x28] sm:$0xff] }
  0x37   :  { %469 = vmatpush.msrb.mxu3 %v2023_v16  ;;  %449 = vmatpush.msrb.mxu2 %v2025_v17  ;;  %3024 = vst [vmem:[#allocation19_spill] sm:$0xff] %v2123_v50 }
  0x38   :  { %410 = vmatpush.msrb.mxu0 %v2027_v18  ;;  %430 = vmatpush.msrb.mxu1 %v2029_v19  ;;  %3025 = vst [vmem:[#allocation20_spill] sm:$0xff] %v2125_v51 }
  0x39   :  { %470 = vmatpush.msrb.mxu3 %v2033_v20  ;;  %450 = vmatpush.msrb.mxu2 %v2035_v21  ;;  %3026 = vst [vmem:[#allocation21_spill] sm:$0xff] %v2134_v53 }
  0x3a   :  { %411 = vmatpush.msrb.mxu0 %v2038_v22  ;;  %431 = vmatpush.msrb.mxu1 %v2040_v23  ;;  %3027 = vst [vmem:[#allocation22_spill] sm:$0xff] %v2136_v54 }
  0x3b   :  { %471 = vmatpush.msrb.mxu3 %v2045_v24  ;;  %451 = vmatpush.msrb.mxu2 %v2047_v25  ;;  %3028 = vst [vmem:[#allocation23_spill] sm:$0xff] %v2140_v55 }
  0x3c   :  { %159 = vmatmul.f32.gmra.mxu0 %v57_v26  ;;  %200 = vmatmul.f32.gmra.mxu1 %v57_v26  ;;  %3029 = vst [vmem:[#allocation24_spill] sm:$0xff] %v2142_v56 }
  0x3d   :  { %241 = vmatmul.f32.gmra.mxu2 %v57_v26  ;;  %282 = vmatmul.f32.gmra.mxu3 %v57_v26  ;;  %3030 = vst [vmem:[#allocation25_spill] sm:$0xff] %v2144_v57  ;;  %v2173_v26 = vld [vmem:[#allocation7] sm:$0xff] }
  0x3e   :  { %412 = vmatpush.msrb.mxu0 %v2056_v27  ;;  %432 = vmatpush.msrb.mxu1 %v2058_v28  ;;  %3031 = vst [vmem:[#allocation26_spill] sm:$0xff] %v2146_v58 }
  0x3f   :  { %472 = vmatpush.msrb.mxu3 %v2062_v29  ;;  %452 = vmatpush.msrb.mxu2 %v2064_v30  ;;  %3032 = vst [vmem:[#allocation27_spill] sm:$0xff] %v2150_v59 }
  0x40   :  { %413 = vmatpush.msrb.mxu0 %v2066_v31  ;;  %433 = vmatpush.msrb.mxu1 %v2068_v32  ;;  %3033 = vst [vmem:[#allocation28_spill] sm:$0xff] %v2152_v60 }
  0x41   :  { %473 = vmatpush.msrb.mxu3 %v2072_v33  ;;  %453 = vmatpush.msrb.mxu2 %v2074_v34  ;;  %3034 = vst [vmem:[#allocation29_spill] sm:$0xff] %v2155_v61 }
  0x42   :  { %414 = vmatpush.msrb.mxu0 %v2077_v35  ;;  %434 = vmatpush.msrb.mxu1 %v2079_v36  ;;  %3035 = vst [vmem:[#allocation30_spill] sm:$0xff] %v2157_v62 }
  0x43   :  { %474 = vmatpush.msrb.mxu3 %v2084_v37  ;;  %454 = vmatpush.msrb.mxu2 %v2086_v38  ;;  %3036 = vst [vmem:[#allocation31_spill] sm:$0xff] %v2162_v63 }
  0x44   :  { %162 = vmatmul.f32.gmra.mxu0 %v58_v39  ;;  %203 = vmatmul.f32.gmra.mxu1 %v58_v39  ;;  %3037 = vst [vmem:[#allocation32_spill] sm:$0xff] %v2164_v0 }
  0x45   :  { %244 = vmatmul.f32.gmra.mxu2 %v58_v39  ;;  %285 = vmatmul.f32.gmra.mxu3 %v58_v39  ;;  %3038 = vst [vmem:[#allocation33_spill] sm:$0xff] %v2173_v26  ;;  %v2175_v39 = vld [vmem:[#allocation7 + $0x8] sm:$0xff] }
  0x46   :  { %415 = vmatpush.msrb.mxu0 %v2095_v40  ;;  %435 = vmatpush.msrb.mxu1 %v2097_v41  ;;  %3039 = vst [vmem:[#allocation34_spill] sm:$0xff] %v2175_v39 }
  0x47   :  { %475 = vmatpush.msrb.mxu3 %v2101_v42  ;;  %455 = vmatpush.msrb.mxu2 %v2103_v43 }
  0x48   :  { %416 = vmatpush.msrb.mxu0 %v2105_v44  ;;  %436 = vmatpush.msrb.mxu1 %v2107_v45 }
  0x49   :  { %476 = vmatpush.msrb.mxu3 %v2111_v46  ;;  %456 = vmatpush.msrb.mxu2 %v2113_v47 }
  0x4a   :  { %417 = vmatpush.msrb.mxu0 %v2116_v48  ;;  %437 = vmatpush.msrb.mxu1 %v2118_v49 }
  0x4b   :  { %477 = vmatpush.msrb.mxu3 %v2123_v50  ;;  %457 = vmatpush.msrb.mxu2 %v2125_v51 }
  0x4c   :  { %165 = vmatmul.f32.gmra.mxu0 %v59_v52  ;;  %206 = vmatmul.f32.gmra.mxu1 %v59_v52 }
  0x4d   :  { %247 = vmatmul.f32.gmra.mxu2 %v59_v52  ;;  %288 = vmatmul.f32.gmra.mxu3 %v59_v52  ;;  %v2179_v52 = vld [vmem:[#allocation7 + $0x10] sm:$0xff] }
  0x4e   :  { %418 = vmatpush.msrb.mxu0 %v2134_v53  ;;  %438 = vmatpush.msrb.mxu1 %v2136_v54  ;;  %3040 = vst [vmem:[#allocation35_spill] sm:$0xff] %v2179_v52 }
  0x4f   :  { %478 = vmatpush.msrb.mxu3 %v2140_v55  ;;  %458 = vmatpush.msrb.mxu2 %v2142_v56 }
  0x50   :  { %419 = vmatpush.msrb.mxu0 %v2144_v57  ;;  %439 = vmatpush.msrb.mxu1 %v2146_v58  ;;  %v2181_v58 = vld [vmem:[#allocation7 + $0x18] sm:$0xff] }
  0x51   :  { %479 = vmatpush.msrb.mxu3 %v2150_v59  ;;  %459 = vmatpush.msrb.mxu2 %v2152_v60  ;;  %3041 = vst [vmem:[#allocation36_spill] sm:$0xff] %v2181_v58 }
  0x52   :  { %420 = vmatpush.msrb.mxu0 %v2155_v61  ;;  %440 = vmatpush.msrb.mxu1 %v2157_v62 }
  0x53   :  { %460 = vmatpush.msrb.mxu2 %v2162_v63  ;;  %480 = vmatpush.msrb.mxu3 %v2164_v0  ;;  %v61_v0 = vld [vmem:[%s2924_s0 + $0x30] sm:$0xff] }
  0x54   :  { %168 = vmatmul.f32.gmra.mxu0 %v60_v13  ;;  %209 = vmatmul.f32.gmra.mxu1 %v60_v13 }
  0x55   :  { %250 = vmatmul.f32.gmra.mxu2 %v60_v13  ;;  %291 = vmatmul.f32.gmra.mxu3 %v60_v13  ;;  %v62_v13 = vld [vmem:[%s2924_s0 + $0x38] sm:$0xff] }
  0x56   :  { %421 = vmatpush.msrb.mxu0 %v2173_v26  ;;  %441 = vmatpush.msrb.mxu1 %v2175_v39 }
  0x57   :  { %461 = vmatpush.msrb.mxu2 %v2179_v52  ;;  %481 = vmatpush.msrb.mxu3 %v2181_v58 }
  0x58   :  { %561 = vmatpush.msra.mxu0 %v1980_v1  ;;  %581 = vmatpush.msra.mxu1 %v1982_v2 }
  0x59   :  { %601 = vmatpush.msra.mxu2 %v1986_v4  ;;  %621 = vmatpush.msra.mxu3 %v1984_v3 }
  0x5a   :  { %562 = vmatpush.msra.mxu0 %v1988_v5  ;;  %582 = vmatpush.msra.mxu1 %v1990_v6 }
  0x5b   :  { %602 = vmatpush.msra.mxu2 %v1996_v8  ;;  %622 = vmatpush.msra.mxu3 %v1994_v7 }
  0x5c   :  { %171 = vmatmul.f32.gmra.mxu0 %v61_v0  ;;  %212 = vmatmul.f32.gmra.mxu1 %v61_v0 }
  0x5d   :  { %253 = vmatmul.f32.gmra.mxu2 %v61_v0  ;;  %294 = vmatmul.f32.gmra.mxu3 %v61_v0  ;;  %v1945_v0 = vmov 0.0  }
  0x5e   :  { %563 = vmatpush.msra.mxu0 %v1999_v9  ;;  %583 = vmatpush.msra.mxu1 %v2001_v10 }
  0x5f   :  { %603 = vmatpush.msra.mxu2 %v2008_v12  ;;  %623 = vmatpush.msra.mxu3 %v2006_v11 }
  0x60   :  { %564 = vmatpush.msra.mxu0 %v2017_v14  ;;  %584 = vmatpush.msra.mxu1 %v2019_v15 }
  0x61   :  { %604 = vmatpush.msra.mxu2 %v2025_v17  ;;  %624 = vmatpush.msra.mxu3 %v2023_v16 }
  0x62   :  { %565 = vmatpush.msra.mxu0 %v2027_v18  ;;  %585 = vmatpush.msra.mxu1 %v2029_v19 }
  0x63   :  { %605 = vmatpush.msra.mxu2 %v2035_v21  ;;  %625 = vmatpush.msra.mxu3 %v2033_v20 }
  0x64   :  { %174 = vmatmul.f32.gmra.mxu0 %v62_v13  ;;  %215 = vmatmul.f32.gmra.mxu1 %v62_v13 }
  0x65   :  { %256 = vmatmul.f32.gmra.mxu2 %v62_v13  ;;  %297 = vmatmul.f32.gmra.mxu3 %v62_v13  ;;  %v3042_v13 = vld [vmem:[#allocation26_spill] sm:$0xff] }
  0x66   :  { %566 = vmatpush.msra.mxu0 %v2038_v22  ;;  %586 = vmatpush.msra.mxu1 %v2040_v23 }
  0x67   :  { %606 = vmatpush.msra.mxu2 %v2047_v25  ;;  %626 = vmatpush.msra.mxu3 %v2045_v24 }
  0x68   :  { %567 = vmatpush.msra.mxu0 %v2056_v27  ;;  %587 = vmatpush.msra.mxu1 %v2058_v28 }
  0x69   :  { %607 = vmatpush.msra.mxu2 %v2064_v30  ;;  %627 = vmatpush.msra.mxu3 %v2062_v29 }
  0x6a   :  { %568 = vmatpush.msra.mxu0 %v2066_v31  ;;  %588 = vmatpush.msra.mxu1 %v2068_v32 }
  0x6b   :  { %608 = vmatpush.msra.mxu2 %v2074_v34  ;;  %628 = vmatpush.msra.mxu3 %v2072_v33 }
  0x6c   :  { %422 = vmatmul.f32.vlgmr.msrb.gmra.mxu0 %v1945_v0  ;;  %442 = vmatmul.f32.vlgmr.msrb.gmra.mxu1 %v1945_v0 }
  0x6d   :  { %462 = vmatmul.f32.vlgmr.msrb.gmra.mxu2 %v1945_v0  ;;  %482 = vmatmul.f32.vlgmr.msrb.gmra.mxu3 %v1945_v0  ;;  %v3043_v0 = vld [vmem:[#allocation32_spill] sm:$0xff] }
  0x6e   :  { %569 = vmatpush.msra.mxu0 %v2077_v35  ;;  %589 = vmatpush.msra.mxu1 %v2079_v36 }
  0x6f   :  { %609 = vmatpush.msra.mxu2 %v2086_v38  ;;  %629 = vmatpush.msra.mxu3 %v2084_v37 }
  0x70   :  { %570 = vmatpush.msra.mxu0 %v2095_v40  ;;  %590 = vmatpush.msra.mxu1 %v2097_v41 }
  0x71   :  { %610 = vmatpush.msra.mxu2 %v2103_v43  ;;  %630 = vmatpush.msra.mxu3 %v2101_v42 }
  0x72   :  { %571 = vmatpush.msra.mxu0 %v2105_v44  ;;  %591 = vmatpush.msra.mxu1 %v2107_v45 }
  0x73   :  { %611 = vmatpush.msra.mxu2 %v2113_v47  ;;  %631 = vmatpush.msra.mxu3 %v2111_v46 }
  0x74   :  { %572 = vmatpush.msra.mxu0 %v2116_v48  ;;  %592 = vmatpush.msra.mxu1 %v2118_v49 }
  0x75   :  { %612 = vmatpush.msra.mxu2 %v2125_v51  ;;  %632 = vmatpush.msra.mxu3 %v2123_v50 }
  0x76   :  { %573 = vmatpush.msra.mxu0 %v2134_v53  ;;  %593 = vmatpush.msra.mxu1 %v2136_v54 }
  0x77   :  { %613 = vmatpush.msra.mxu2 %v2142_v56  ;;  %633 = vmatpush.msra.mxu3 %v2140_v55 }
  0x78   :  { %574 = vmatpush.msra.mxu0 %v2144_v57  ;;  %594 = vmatpush.msra.mxu1 %v3042_v13 }
  0x79   :  { %614 = vmatpush.msra.mxu2 %v2152_v60  ;;  %634 = vmatpush.msra.mxu3 %v2150_v59 }
  0x7a   :  { %575 = vmatpush.msra.mxu0 %v2155_v61  ;;  %595 = vmatpush.msra.mxu1 %v2157_v62 }
  0x7b   :  { %615 = vmatpush.msra.mxu2 %v2162_v63  ;;  %635 = vmatpush.msra.mxu3 %v3043_v0 }
  0x7c   :  { %576 = vmatpush.msra.mxu0 %v2173_v26  ;;  %596 = vmatpush.msra.mxu1 %v2175_v39 }
  0x7d   :  { %616 = vmatpush.msra.mxu2 %v2179_v52  ;;  %636 = vmatpush.msra.mxu3 %v2181_v58 }
  0x7e   :  { %717 = vmatpush.msrb.mxu0 %v1980_v1  ;;  %737 = vmatpush.msrb.mxu1 %v1982_v2 }
  0x7f   :  { %757 = vmatpush.msrb.mxu2 %v1986_v4  ;;  %777 = vmatpush.msrb.mxu3 %v1984_v3 }
  0x80   :  { %718 = vmatpush.msrb.mxu0 %v1988_v5  ;;  %738 = vmatpush.msrb.mxu1 %v1990_v6 }
  0x81   :  { %758 = vmatpush.msrb.mxu2 %v1996_v8  ;;  %778 = vmatpush.msrb.mxu3 %v1994_v7 }
  0x82   :  { %719 = vmatpush.msrb.mxu0 %v1999_v9  ;;  %739 = vmatpush.msrb.mxu1 %v2001_v10 }
  0x83   :  { %759 = vmatpush.msrb.mxu2 %v2008_v12  ;;  %779 = vmatpush.msrb.mxu3 %v2006_v11 }
  0x84   :  { %720 = vmatpush.msrb.mxu0 %v2017_v14  ;;  %740 = vmatpush.msrb.mxu1 %v2019_v15 }
  0x85   :  { %760 = vmatpush.msrb.mxu2 %v2025_v17  ;;  %780 = vmatpush.msrb.mxu3 %v2023_v16 }
  0x86   :  { %721 = vmatpush.msrb.mxu0 %v2027_v18  ;;  %741 = vmatpush.msrb.mxu1 %v2029_v19 }
  0x87   :  { %761 = vmatpush.msrb.mxu2 %v2035_v21  ;;  %781 = vmatpush.msrb.mxu3 %v2033_v20 }
  0x88   :  { %722 = vmatpush.msrb.mxu0 %v2038_v22  ;;  %742 = vmatpush.msrb.mxu1 %v2040_v23 }
  0x89   :  { %762 = vmatpush.msrb.mxu2 %v2047_v25  ;;  %782 = vmatpush.msrb.mxu3 %v2045_v24 }
  0x8a   :  { %723 = vmatpush.msrb.mxu0 %v2056_v27  ;;  %743 = vmatpush.msrb.mxu1 %v2058_v28 }
  0x8b   :  { %763 = vmatpush.msrb.mxu2 %v2064_v30  ;;  %783 = vmatpush.msrb.mxu3 %v2062_v29 }
  0x8c   :  { %724 = vmatpush.msrb.mxu0 %v2066_v31  ;;  %744 = vmatpush.msrb.mxu1 %v2068_v32 }
  0x8d   :  { %764 = vmatpush.msrb.mxu2 %v2074_v34  ;;  %784 = vmatpush.msrb.mxu3 %v2072_v33 }
  0x8e   :  { %725 = vmatpush.msrb.mxu0 %v2077_v35  ;;  %745 = vmatpush.msrb.mxu1 %v2079_v36 }
  0x8f   :  { %765 = vmatpush.msrb.mxu2 %v2086_v38  ;;  %785 = vmatpush.msrb.mxu3 %v2084_v37 }
  0x90   :  { %726 = vmatpush.msrb.mxu0 %v2095_v40  ;;  %746 = vmatpush.msrb.mxu1 %v2097_v41 }
  0x91   :  { %766 = vmatpush.msrb.mxu2 %v2103_v43  ;;  %786 = vmatpush.msrb.mxu3 %v2101_v42 }
  0x92   :  { %727 = vmatpush.msrb.mxu0 %v2105_v44  ;;  %747 = vmatpush.msrb.mxu1 %v2107_v45 }
  0x93   :  { %767 = vmatpush.msrb.mxu2 %v2113_v47  ;;  %787 = vmatpush.msrb.mxu3 %v2111_v46 }
  0x94   :  { %728 = vmatpush.msrb.mxu0 %v2116_v48  ;;  %748 = vmatpush.msrb.mxu1 %v2118_v49 }
  0x95   :  { %768 = vmatpush.msrb.mxu2 %v2125_v51  ;;  %788 = vmatpush.msrb.mxu3 %v2123_v50 }
  0x96   :  { %729 = vmatpush.msrb.mxu0 %v2134_v53  ;;  %749 = vmatpush.msrb.mxu1 %v2136_v54 }
  0x97   :  { %769 = vmatpush.msrb.mxu2 %v2142_v56  ;;  %789 = vmatpush.msrb.mxu3 %v2140_v55 }
  0x98   :  { %730 = vmatpush.msrb.mxu0 %v2144_v57  ;;  %750 = vmatpush.msrb.mxu1 %v3042_v13 }
  0x99   :  { %770 = vmatpush.msrb.mxu2 %v2152_v60  ;;  %790 = vmatpush.msrb.mxu3 %v2150_v59 }
  0x9a   :  { %731 = vmatpush.msrb.mxu0 %v2155_v61  ;;  %751 = vmatpush.msrb.mxu1 %v2157_v62  ;;  %v127_v61 = vld [vmem:[%s2927_s3] sm:$0xf] }
  0x9b   :  { %771 = vmatpush.msrb.mxu2 %v2162_v63  ;;  %791 = vmatpush.msrb.mxu3 %v3043_v0  ;;  %v129_v59 = vperm.slane %v127_v61, 0  ;;  %v130_v62 = vperm.slane %v127_v61, 1 }
  0x9c   :  { %732 = vmatpush.msrb.mxu0 %v2173_v26  ;;  %752 = vmatpush.msrb.mxu1 %v2175_v39 }
  0x9d   :  { %772 = vmatpush.msrb.mxu2 %v2179_v52  ;;  %792 = vmatpush.msrb.mxu3 %v2181_v58  ;;  %v2332_v52 = vperm.slane %v127_v61, 2  ;;  %v132_v58 = vperm.slane %v127_v61, 3 }
  0xa9   :  { %v154_v13 = vpop.f32.mrf.mxu0  ;;  %v195_v60 = vpop.f32.mrf.mxu1 }
  0xb0   :  { %v2324_v57 = vpop.f32.mrf.mxu2  ;;  %v2326_v63 = vpop.f32.mrf.mxu3 }
  0xb1   :  { %v157_v0 = vpop.f32.mrf.mxu0  ;;  %v198_v26 = vpop.f32.mrf.mxu1 }
  0xb2   :  { %v2328_v55 = vadd.f32 %v157_v0, %v129_v59  ;;  %v2330_v39 = vadd.f32 %v198_v26, %v130_v62 }
  0xb4   :  { %3044 = vst [vmem:[#allocation37_spill] sm:$0xff] %v2328_v55 }
  0xb5   :  { %3045 = vst [vmem:[#allocation38_spill] sm:$0xff] %v2330_v39 }
  0xb8   :  { %v239_v56 = vpop.f32.mrf.mxu2  ;;  %v280_v54 = vpop.f32.mrf.mxu3 }
  0xb9   :  { %v2335_v53 = vadd.f32 %v239_v56, %v2332_v52  ;;  %v2337_v50 = vadd.f32 %v280_v54, %v132_v58  ;;  %v160_v51 = vpop.f32.mrf.mxu0  ;;  %v201_v49 = vpop.f32.mrf.mxu1 }
  0xba   :  { %v2339_v48 = vadd.f32 %v160_v51, %v129_v59  ;;  %v2341_v46 = vadd.f32 %v201_v49, %v130_v62 }
  0xbb   :  { %3046 = vst [vmem:[#allocation39_spill] sm:$0xff] %v2335_v53 }
  0xbc   :  { %3047 = vst [vmem:[#allocation40_spill] sm:$0xff] %v2337_v50 }
  0xbd   :  { %3048 = vst [vmem:[#allocation41_spill] sm:$0xff] %v2339_v48 }
  0xbe   :  { %3049 = vst [vmem:[#allocation42_spill] sm:$0xff] %v2341_v46 }
  0xc0   :  { %v242_v0 = vpop.f32.mrf.mxu2  ;;  %v283_v55 = vpop.f32.mrf.mxu3 }
  0xc1   :  { %v2344_v26 = vadd.f32 %v242_v0, %v2332_v52  ;;  %v2346_v39 = vadd.f32 %v283_v55, %v132_v58  ;;  %v163_v61 = vpop.f32.mrf.mxu0  ;;  %v204_v47 = vpop.f32.mrf.mxu1 }
  0xc2   :  { %v2348_v45 = vadd.f32 %v163_v61, %v129_v59  ;;  %v2350_v56 = vadd.f32 %v204_v47, %v130_v62 }
  0xc3   :  { %3050 = vst [vmem:[#allocation43_spill] sm:$0xff] %v2344_v26 }
  0xc4   :  { %3051 = vst [vmem:[#allocation44_spill] sm:$0xff] %v2346_v39 }
  0xc5   :  { %3052 = vst [vmem:[#allocation45_spill] sm:$0xff] %v2348_v45 }
  0xc6   :  { %3053 = vst [vmem:[#allocation46_spill] sm:$0xff] %v2350_v56 }
  0xc8   :  { %v245_v54 = vpop.f32.mrf.mxu2  ;;  %v286_v53 = vpop.f32.mrf.mxu3 }
  0xc9   :  { %v2353_v51 = vadd.f32 %v245_v54, %v2332_v52  ;;  %v2355_v49 = vadd.f32 %v286_v53, %v132_v58  ;;  %v166_v46 = vpop.f32.mrf.mxu0  ;;  %v207_v48 = vpop.f32.mrf.mxu1 }
  0xca   :  { %v2357_v50 = vadd.f32 %v166_v46, %v129_v59  ;;  %v2359_v0 = vadd.f32 %v207_v48, %v130_v62 }
  0xcb   :  { %3054 = vst [vmem:[#allocation47_spill] sm:$0xff] %v2353_v51 }
  0xcc   :  { %3055 = vst [vmem:[#allocation48_spill] sm:$0xff] %v2355_v49 }
  0xcd   :  { %3056 = vst [vmem:[#allocation49_spill] sm:$0xff] %v2357_v50 }
  0xce   :  { %3057 = vst [vmem:[#allocation50_spill] sm:$0xff] %v2359_v0 }
  0xd0   :  { %v248_v55 = vpop.f32.mrf.mxu2  ;;  %v289_v26 = vpop.f32.mrf.mxu3 }
  0xd1   :  { %v2362_v61 = vadd.f32 %v248_v55, %v2332_v52  ;;  %v2364_v47 = vadd.f32 %v289_v26, %v132_v58  ;;  %v169_v56 = vpop.f32.mrf.mxu0  ;;  %v210_v45 = vpop.f32.mrf.mxu1 }
  0xd2   :  { %v2366_v39 = vadd.f32 %v169_v56, %v129_v59  ;;  %v2368_v54 = vadd.f32 %v210_v45, %v130_v62 }
  0xd3   :  { %3058 = vst [vmem:[#allocation51_spill] sm:$0xff] %v2362_v61 }
  0xd4   :  { %3059 = vst [vmem:[#allocation52_spill] sm:$0xff] %v2364_v47 }
  0xd5   :  { %3060 = vst [vmem:[#allocation53_spill] sm:$0xff] %v2366_v39 }
  0xd6   :  { %3061 = vst [vmem:[#allocation54_spill] sm:$0xff] %v2368_v54 }
  0xd8   :  { %v251_v53 = vpop.f32.mrf.mxu2  ;;  %v292_v51 = vpop.f32.mrf.mxu3 }
  0xd9   :  { %v2371_v46 = vadd.f32 %v251_v53, %v2332_v52  ;;  %v2373_v48 = vadd.f32 %v292_v51, %v132_v58  ;;  %v172_v0 = vpop.f32.mrf.mxu0  ;;  %v213_v50 = vpop.f32.mrf.mxu1  ;;  %v155_v51 = vadd.f32 %v154_v13, %v129_v59 }
  0xda   :  { %v2375_v49 = vadd.f32 %v172_v0, %v129_v59  ;;  %v2377_v55 = vadd.f32 %v213_v50, %v130_v62 }
  0xdb   :  { %3062 = vst [vmem:[#allocation55_spill] sm:$0xff] %v2371_v46  ;;  %v196_v46 = vadd.f32 %v195_v60, %v130_v62 }
  0xdc   :  { %3063 = vst [vmem:[#allocation56_spill] sm:$0xff] %v2373_v48 }
  0xdd   :  { %3064 = vst [vmem:[#allocation57_spill] sm:$0xff] %v2375_v49 }
  0xde   :  { %3065 = vst [vmem:[#allocation58_spill] sm:$0xff] %v2377_v55 }
  0xe0   :  { %v254_v26 = vpop.f32.mrf.mxu2  ;;  %v295_v61 = vpop.f32.mrf.mxu3 }
  0xe1   :  { %v2380_v56 = vadd.f32 %v254_v26, %v2332_v52  ;;  %v2382_v45 = vadd.f32 %v295_v61, %v132_v58  ;;  %v175_v54 = vpop.f32.mrf.mxu0  ;;  %v216_v39 = vpop.f32.mrf.mxu1 }
  0xe2   :  { %v2384_v47 = vadd.f32 %v175_v54, %v129_v59  ;;  %v2386_v53 = vadd.f32 %v216_v39, %v130_v62  ;;  %v278_v54 = vadd.f32 %v2326_v63, %v132_v58 }
  0xe3   :  { %3066 = vst [vmem:[#allocation59_spill] sm:$0xff] %v2380_v56 }
  0xe4   :  { %3067 = vst [vmem:[#allocation60_spill] sm:$0xff] %v2382_v45 }
  0xe5   :  { %3068 = vst [vmem:[#allocation61_spill] sm:$0xff] %v2384_v47 }
  0xe6   :  { %3069 = vst [vmem:[#allocation62_spill] sm:$0xff] %v2386_v53 }
  0xe8   :  { %v257_v48 = vpop.f32.mrf.mxu2  ;;  %v298_v0 = vpop.f32.mrf.mxu3 }
  0xe9   :  { %v2389_v50 = vadd.f32 %v257_v48, %v2332_v52  ;;  %v2391_v55 = vadd.f32 %v298_v0, %v132_v58  ;;  %v423_v49 = vpop.f32.mrf.mxu0  ;;  %v443_v26 = vpop.f32.mrf.mxu1 }
  0xea   :  { %v486_v56 = vadd.f32 %v423_v49, %v155_v51  ;;  %v487_v61 = vadd.f32 %v443_v26, %v196_v46  ;;  %v237_v49 = vadd.f32 %v2324_v57, %v2332_v52 }
  0xeb   :  { %3070 = vst [vmem:[#allocation63_spill] sm:$0xff] %v2389_v50 }
  0xec   :  { %3071 = vst [vmem:[#allocation64_spill] sm:$0xff] %v2391_v55  ;;  %v1661_v45 = vmul.f32 -1.442695, %v486_v56  ;;  %v1662_v44 = vmul.f32 -1.442695, %v487_v61 }
  0xee   :  { %1697 = vpow2.f32 %v1661_v45 }
  0xef   :  { %1699 = vpow2.f32 %v1662_v44 }
  0xf0   :  { %v483_v39 = vpop.f32.mrf.mxu3  ;;  %v463_v0 = vpop.f32.mrf.mxu2 }
  0xf1   :  { %v489_v59 = vadd.f32 %v483_v39, %v278_v54  ;;  %v488_v45 = vadd.f32 %v463_v0, %v237_v49 }
  0xf3   :  { %v1663_v60 = vmul.f32 -1.442695, %v489_v59 }
  0xf4   :  { %v1698_v62 = vpop.eup %1697 }
  0xf5   :  { %v1700_v13 = vpop.eup %1699  ;;  %v493_v53 = vadd.f32 1.0, %v1698_v62  ;;  %1701 = vpow2.f32 %v1663_v60 }
  0xf6   :  { %v512_v48 = vadd.f32 1.0, %v1700_v13 }
  0xf7   :  { %1703 = vrcp.f32 %v493_v53  ;;  %v505_v61 = vand.u32 2147483648, %v493_v53  ;;  %v503_v59 = vand.u32 2147483647, %v493_v53  ;;  %vm499_vm2 = vweird.f32 %v493_v53 }
  0xf8   :  { %1705 = vrcp.f32 %v512_v48  ;;  %v524_v54 = vand.u32 2147483648, %v512_v48  ;;  %v522_v62 = vand.u32 2147483647, %v512_v48  ;;  %vm518_vm3 = vweird.f32 %v512_v48 }
  0xf9   :  { %v506_v52 = vor.u32 1.1754944e-38, %v505_v61  ;;  %vm504_vm5 = vcmp.eq.f32.partialorder %v503_v59, 8.507059e+37 }
  0xfa   :  { %v525_v49 = vor.u32 1.1754944e-38, %v524_v54  ;;  %vm523_vm7 = vcmp.eq.f32.partialorder %v522_v62, 8.507059e+37 }
  0xfb   :  { %v1702_v50 = vpop.eup %1701 }
  0xfc   :  { %v532_v46 = vadd.f32 1.0, %v1702_v50 }
  0xfd   :  { %v1704_v56 = vpop.eup %1703 }
  0xfe   :  { %v1706_v58 = vpop.eup %1705  ;;  %v495_v44 = vmul.f32 %v1704_v56, %v493_v53  ;;  %1707 = vrcp.f32 %v532_v46  ;;  %vm500_vm0 = vweird.f32 %v1704_v56  ;;  %vm538_vm9 = vweird.f32 %v532_v46 }
  0xff   :  { %v514_v63 = vmul.f32 %v1706_v58, %v512_v48  ;;  %1709 = vtanh.f32 %v488_v45  ;;  %vm519_vm1 = vweird.f32 %v1706_v58  ;;  %vm501_vm4 = vmor %vm499_vm2, %vm500_vm0  ;;  %v544_v48 = vand.u32 2147483648, %v532_v46 }
 0x100   :  { %v496_v51 = vsub.f32 1.0, %v495_v44  ;;  %vm520_vm6 = vmor %vm518_vm3, %vm519_vm1 }
 0x101   :  { %v515_v26 = vsub.f32 1.0, %v514_v63  ;;  %v545_v54 = vor.u32 1.1754944e-38, %v544_v48 }
 0x102   :  { %v497_v39 = vmul.f32 %v1704_v56, %v496_v51 }
 0x103   :  { %v516_v60 = vmul.f32 %v1706_v58, %v515_v26 }
 0x104   :  { %v1708_v13 = vpop.eup %1707  ;;  %v498_v57 = vadd.f32 %v1704_v56, %v497_v39 }
 0x105   :  { %v517_v50 = vadd.f32 %v1706_v58, %v516_v60  ;;  %v534_v0 = vmul.f32 %v1708_v13, %v532_v46  ;;  %v1710_v45 = vpop.eup %1709  ;;  %vm539_vm8 = vweird.f32 %v1708_v13 }
 0x106   :  { %v502_v44 = vsel %vm501_vm4, %v1704_v56, %v498_v57  ;;  %v542_v56 = vand.u32 2147483647, %v532_v46  ;;  %vm540_vm10 = vmor %vm538_vm9, %vm539_vm8 }
 0x107   :  { %v507_v63 = vsel %vm504_vm5, %v506_v52, %v502_v44  ;;  %v521_v51 = vsel %vm520_vm6, %v1706_v58, %v517_v50  ;;  %v535_v55 = vsub.f32 1.0, %v534_v0  ;;  %v3101_v52 = vld [vmem:[#allocation39_spill] sm:$0xff] }
 0x108   :  { %v526_v26 = vsel %vm523_vm7, %v525_v49, %v521_v51  ;;  %v549_v47 = vmul.f32 %v1710_v45, %v507_v63  ;;  %vm543_vm11 = vcmp.eq.f32.partialorder %v542_v56, 8.507059e+37 }
 0x109   :  { %v548_v42 = vmul.f32 0.0, %v526_v26  ;;  %v536_v43 = vmul.f32 %v1708_v13, %v535_v55 }
 0x10b   :  { %v2396_v39 = vadd.f32 %v549_v47, %v548_v42  ;;  %v537_v53 = vadd.f32 %v1708_v13, %v536_v43 }
 0x10d   :  { %1711 = vtanh.f32 %v2396_v39  ;;  %v541_v61 = vsel %vm540_vm10, %v1708_v13, %v537_v53 }
 0x10e   :  { %v546_v59 = vsel %vm543_vm11, %v545_v54, %v541_v61 }
 0x113   :  { %v1712_v58 = vpop.eup %1711 }
 0x114   :  { %v552_v60 = vmul.f32 %v1712_v58, %v546_v59 }
 0x116   :  { %553 = vst [vmem:[%s2928_s4] sm:$0xff] %v552_v60  ;;  %577 = vmatmul.f32.vlgmr.msra.gmra.mxu0 %v552_v60  ;;  %597 = vmatmul.f32.vlgmr.msra.gmra.mxu1 %v552_v60 }
 0x117   :  { %617 = vmatmul.f32.vlgmr.msra.gmra.mxu2 %v552_v60  ;;  %637 = vmatmul.f32.vlgmr.msra.gmra.mxu3 %v552_v60 }
 0x118   :  { %873 = vmatpush.msra.mxu0 %v1980_v1  ;;  %893 = vmatpush.msra.mxu1 %v1982_v2  ;;  %v3072_v1 = vld [vmem:[#allocation12_spill] sm:$0xff]  ;;  %v3073_v2 = vld [vmem:[#allocation11_spill] sm:$0xff] }
 0x119   :  { %913 = vmatpush.msra.mxu2 %v1986_v4  ;;  %933 = vmatpush.msra.mxu3 %v1984_v3  ;;  %v3074_v3 = vld [vmem:[#allocation13_spill] sm:$0xff]  ;;  %v3075_v4 = vld [vmem:[#allocation14_spill] sm:$0xff] }
 0x11a   :  { %874 = vmatpush.msra.mxu0 %v1988_v5  ;;  %894 = vmatpush.msra.mxu1 %v1990_v6  ;;  %v3076_v5 = vld [vmem:[#allocation16_spill] sm:$0xff]  ;;  %v3077_v6 = vld [vmem:[#allocation15_spill] sm:$0xff] }
 0x11b   :  { %914 = vmatpush.msra.mxu2 %v1996_v8  ;;  %934 = vmatpush.msra.mxu3 %v1994_v7  ;;  %v3078_v7 = vld [vmem:[#allocation17_spill] sm:$0xff]  ;;  %v3079_v8 = vld [vmem:[#allocation18_spill] sm:$0xff] }
 0x11c   :  { %875 = vmatpush.msra.mxu0 %v1999_v9  ;;  %895 = vmatpush.msra.mxu1 %v2001_v10  ;;  %v3080_v9 = vld [vmem:[#allocation20_spill] sm:$0xff]  ;;  %v3081_v10 = vld [vmem:[#allocation19_spill] sm:$0xff] }
 0x11d   :  { %915 = vmatpush.msra.mxu2 %v2008_v12  ;;  %935 = vmatpush.msra.mxu3 %v2006_v11  ;;  %v3082_v11 = vld [vmem:[#allocation21_spill] sm:$0xff]  ;;  %v3083_v12 = vld [vmem:[#allocation22_spill] sm:$0xff] }
 0x11e   :  { %876 = vmatpush.msra.mxu0 %v2017_v14  ;;  %896 = vmatpush.msra.mxu1 %v2019_v15  ;;  %v3084_v14 = vld [vmem:[#allocation24_spill] sm:$0xff]  ;;  %v3085_v15 = vld [vmem:[#allocation23_spill] sm:$0xff] }
 0x11f   :  { %916 = vmatpush.msra.mxu2 %v2025_v17  ;;  %936 = vmatpush.msra.mxu3 %v2023_v16  ;;  %v3086_v16 = vld [vmem:[#allocation25_spill] sm:$0xff]  ;;  %v3087_v17 = vld [vmem:[#allocation26_spill] sm:$0xff] }
 0x120   :  { %877 = vmatpush.msra.mxu0 %v2027_v18  ;;  %897 = vmatpush.msra.mxu1 %v2029_v19  ;;  %v3088_v18 = vld [vmem:[#allocation28_spill] sm:$0xff]  ;;  %v3089_v19 = vld [vmem:[#allocation27_spill] sm:$0xff] }
 0x121   :  { %917 = vmatpush.msra.mxu2 %v2035_v21  ;;  %937 = vmatpush.msra.mxu3 %v2033_v20  ;;  %v3090_v20 = vld [vmem:[#allocation29_spill] sm:$0xff]  ;;  %v3091_v21 = vld [vmem:[#allocation30_spill] sm:$0xff] }
 0x122   :  { %878 = vmatpush.msra.mxu0 %v2038_v22  ;;  %898 = vmatpush.msra.mxu1 %v2040_v23  ;;  %v3092_v22 = vld [vmem:[#allocation31_spill] sm:$0xff]  ;;  %v3093_v23 = vld [vmem:[#allocation32_spill] sm:$0xff] }
 0x123   :  { %918 = vmatpush.msra.mxu2 %v2047_v25  ;;  %938 = vmatpush.msra.mxu3 %v2045_v24  ;;  %v3094_v24 = vld [vmem:[#allocation33_spill] sm:$0xff]  ;;  %v3095_v25 = vld [vmem:[#allocation34_spill] sm:$0xff] }
 0x124   :  { %879 = vmatpush.msra.mxu0 %v2056_v27  ;;  %899 = vmatpush.msra.mxu1 %v2058_v28  ;;  %v3096_v27 = vld [vmem:[#allocation35_spill] sm:$0xff]  ;;  %v3097_v28 = vld [vmem:[#allocation36_spill] sm:$0xff] }
 0x125   :  { %919 = vmatpush.msra.mxu2 %v2064_v30  ;;  %939 = vmatpush.msra.mxu3 %v2062_v29 }
 0x126   :  { %880 = vmatpush.msra.mxu0 %v2066_v31  ;;  %900 = vmatpush.msra.mxu1 %v2068_v32  ;;  %v3098_v31 = vld [vmem:[#allocation37_spill] sm:$0xff] }
 0x127   :  { %920 = vmatpush.msra.mxu2 %v2074_v34  ;;  %940 = vmatpush.msra.mxu3 %v2072_v33  ;;  %v3099_v33 = vld [vmem:[#allocation38_spill] sm:$0xff] }
 0x128   :  { %881 = vmatpush.msra.mxu0 %v2077_v35  ;;  %901 = vmatpush.msra.mxu1 %v2079_v36 }
 0x129   :  { %921 = vmatpush.msra.mxu2 %v2086_v38  ;;  %941 = vmatpush.msra.mxu3 %v2084_v37  ;;  %v3100_v38 = vld [vmem:[#allocation40_spill] sm:$0xff] }
 0x12a   :  { %882 = vmatpush.msra.mxu0 %v2095_v40  ;;  %902 = vmatpush.msra.mxu1 %v2097_v41 }
 0x12b   :  { %922 = vmatpush.msra.mxu2 %v3072_v1  ;;  %942 = vmatpush.msra.mxu3 %v3073_v2 }
 0x12c   :  { %883 = vmatpush.msra.mxu0 %v3074_v3  ;;  %903 = vmatpush.msra.mxu1 %v3075_v4 }
 0x12d   :  { %923 = vmatpush.msra.mxu2 %v3076_v5  ;;  %943 = vmatpush.msra.mxu3 %v3077_v6 }
 0x12e   :  { %884 = vmatpush.msra.mxu0 %v3078_v7  ;;  %904 = vmatpush.msra.mxu1 %v3079_v8 }
 0x12f   :  { %924 = vmatpush.msra.mxu2 %v3080_v9  ;;  %944 = vmatpush.msra.mxu3 %v3081_v10 }
 0x130   :  { %885 = vmatpush.msra.mxu0 %v3082_v11  ;;  %905 = vmatpush.msra.mxu1 %v3083_v12 }
 0x131   :  { %925 = vmatpush.msra.mxu2 %v3084_v14  ;;  %945 = vmatpush.msra.mxu3 %v3085_v15 }
 0x132   :  { %886 = vmatpush.msra.mxu0 %v3086_v16  ;;  %906 = vmatpush.msra.mxu1 %v3087_v17 }
 0x133   :  { %926 = vmatpush.msra.mxu2 %v3088_v18  ;;  %946 = vmatpush.msra.mxu3 %v3089_v19 }
 0x134   :  { %887 = vmatpush.msra.mxu0 %v3090_v20  ;;  %907 = vmatpush.msra.mxu1 %v3091_v21 }
 0x135   :  { %927 = vmatpush.msra.mxu2 %v3092_v22  ;;  %947 = vmatpush.msra.mxu3 %v3093_v23 }
 0x136   :  { %888 = vmatpush.msra.mxu0 %v3094_v24  ;;  %908 = vmatpush.msra.mxu1 %v3095_v25 }
 0x137   :  { %928 = vmatpush.msra.mxu2 %v3096_v27  ;;  %948 = vmatpush.msra.mxu3 %v3097_v28 }
 0x193   :  { %v578_v29 = vpop.f32.mrf.mxu0  ;;  %v598_v30 = vpop.f32.mrf.mxu1 }
 0x194   :  { %v641_v32 = vadd.f32 %v578_v29, %v3098_v31  ;;  %v642_v34 = vadd.f32 %v598_v30, %v3099_v33  ;;  %v2480_v29 = vld [vmem:[#allocation7 + $0x1e8] sm:$0xff]  ;;  %v2483_v30 = vld [vmem:[#allocation7 + $0x1f0] sm:$0xff]  ;;  %v2486_v31 = vld [vmem:[#allocation7 + $0x1f8] sm:$0xff] }
 0x195   :  { %v2492_v33 = vld [vmem:[#allocation7 + $0x1c8] sm:$0xff] }
 0x196   :  { %v1664_v35 = vmul.f32 -1.442695, %v641_v32  ;;  %v1665_v36 = vmul.f32 -1.442695, %v642_v34  ;;  %v2489_v32 = vld [vmem:[#allocation7 + $0x1c0] sm:$0xff]  ;;  %v2495_v34 = vld [vmem:[#allocation7 + $0x1d0] sm:$0xff] }
 0x198   :  { %1713 = vpow2.f32 %v1664_v35  ;;  %v2498_v35 = vld [vmem:[#allocation7 + $0x1d8] sm:$0xff] }
 0x199   :  { %1715 = vpow2.f32 %v1665_v36  ;;  %v2501_v36 = vld [vmem:[#allocation7 + $0x1a0] sm:$0xff] }
 0x19a   :  { %v638_v37 = vpop.f32.mrf.mxu3  ;;  %v618_v46 = vpop.f32.mrf.mxu2 }
 0x19b   :  { %v644_v40 = vadd.f32 %v638_v37, %v3100_v38  ;;  %v643_v50 = vadd.f32 %v618_v46, %v3101_v52  ;;  %v2504_v37 = vld [vmem:[#allocation7 + $0x1a8] sm:$0xff]  ;;  %v2507_v38 = vld [vmem:[#allocation7 + $0x1b0] sm:$0xff] }
 0x19c   :  { %v2528_v46 = vld [vmem:[#allocation7 + $0x168] sm:$0xff] }
 0x19d   :  { %v1666_v41 = vmul.f32 -1.442695, %v644_v40  ;;  %v2510_v40 = vld [vmem:[#allocation7 + $0x1b8] sm:$0xff]  ;;  %v2540_v52 = vld [vmem:[#allocation7 + $0x148] sm:$0xff] }
 0x19e   :  { %v1714_v42 = vpop.eup %1713 }
 0x19f   :  { %v1716_v43 = vpop.eup %1715  ;;  %v648_v47 = vadd.f32 1.0, %v1714_v42  ;;  %1717 = vpow2.f32 %v1666_v41  ;;  %v2513_v41 = vld [vmem:[#allocation7 + $0x180] sm:$0xff]  ;;  %v2516_v42 = vld [vmem:[#allocation7 + $0x188] sm:$0xff] }
 0x1a0   :  { %v667_v55 = vadd.f32 1.0, %v1716_v43  ;;  %v2519_v43 = vld [vmem:[#allocation7 + $0x190] sm:$0xff] }
 0x1a1   :  { %1719 = vrcp.f32 %v648_v47  ;;  %v660_v51 = vand.u32 2147483648, %v648_v47  ;;  %v658_v48 = vand.u32 2147483647, %v648_v47  ;;  %vm654_vm14 = vweird.f32 %v648_v47 }
 0x1a2   :  { %1721 = vrcp.f32 %v667_v55  ;;  %v679_v26 = vand.u32 2147483648, %v667_v55  ;;  %v677_v61 = vand.u32 2147483647, %v667_v55  ;;  %vm673_vm15 = vweird.f32 %v667_v55 }
 0x1a3   :  { %v661_v59 = vor.u32 1.1754944e-38, %v660_v51  ;;  %vm659_vm2 = vcmp.eq.f32.partialorder %v658_v48, 8.507059e+37  ;;  %v2561_v51 = vld [vmem:[#allocation7 + $0x100] sm:$0xff]  ;;  %v2570_v48 = vld [vmem:[#allocation7 + $0x118] sm:$0xff] }
 0x1a4   :  { %v680_v2 = vor.u32 1.1754944e-38, %v679_v26  ;;  %vm678_vm3 = vcmp.eq.f32.partialorder %v677_v61, 8.507059e+37  ;;  %v2564_v26 = vld [vmem:[#allocation7 + $0x108] sm:$0xff] }
 0x1a5   :  { %v1718_v62 = vpop.eup %1717  ;;  %v2576_v61 = vld [vmem:[#allocation7 + $0xe8] sm:$0xff] }
 0x1a6   :  { %v687_v13 = vadd.f32 1.0, %v1718_v62  ;;  %v2531_v62 = vld [vmem:[#allocation7 + $0x170] sm:$0xff] }
 0x1a7   :  { %v1720_v57 = vpop.eup %1719 }
 0x1a8   :  { %v1722_v0 = vpop.eup %1721  ;;  %v650_v49 = vmul.f32 %v1720_v57, %v648_v47  ;;  %1723 = vrcp.f32 %v687_v13  ;;  %vm655_vm12 = vweird.f32 %v1720_v57  ;;  %v699_v15 = vand.u32 2147483648, %v687_v13  ;;  %v2522_v47 = vld [vmem:[#allocation7 + $0x198] sm:$0xff] }
 0x1a9   :  { %v669_v44 = vmul.f32 %v1722_v0, %v667_v55  ;;  %1725 = vtanh.f32 %v643_v50  ;;  %vm674_vm13 = vweird.f32 %v1722_v0  ;;  %vm656_vm0 = vmor %vm654_vm14, %vm655_vm12  ;;  %vm693_vm5 = vweird.f32 %v687_v13  ;;  %v2525_v55 = vld [vmem:[#allocation7 + $0x160] sm:$0xff]  ;;  %v2543_v50 = vld [vmem:[#allocation7 + $0x150] sm:$0xff] }
 0x1aa   :  { %v651_v45 = vsub.f32 1.0, %v650_v49  ;;  %vm675_vm1 = vmor %vm673_vm15, %vm674_vm13  ;;  %v697_v16 = vand.u32 2147483647, %v687_v13  ;;  %v700_v18 = vor.u32 1.1754944e-38, %v699_v15  ;;  %v2549_v49 = vld [vmem:[#allocation7 + $0x120] sm:$0xff]  ;;  %v2627_v15 = vld [vmem:[#allocation7 + $0x70] sm:$0xff] }
 0x1ab   :  { %v670_v63 = vsub.f32 1.0, %v669_v44  ;;  %v2552_v44 = vld [vmem:[#allocation7 + $0x128] sm:$0xff]  ;;  %3114 = vst [vmem:[#allocation24_spill] sm:$0xff] %v2627_v15 }
 0x1ac   :  { %v652_v53 = vmul.f32 %v1720_v57, %v651_v45  ;;  %vm698_vm7 = vcmp.eq.f32.partialorder %v697_v16, 8.507059e+37  ;;  %v2555_v45 = vld [vmem:[#allocation7 + $0x130] sm:$0xff]  ;;  %v2630_v16 = vld [vmem:[#allocation7 + $0x78] sm:$0xff] }
 0x1ad   :  { %v671_v56 = vmul.f32 %v1722_v0, %v670_v63  ;;  %v2558_v63 = vld [vmem:[#allocation7 + $0x138] sm:$0xff]  ;;  %3115 = vst [vmem:[#allocation23_spill] sm:$0xff] %v2630_v16 }
 0x1ae   :  { %v1724_v54 = vpop.eup %1723  ;;  %v653_v58 = vadd.f32 %v1720_v57, %v652_v53  ;;  %v2567_v53 = vld [vmem:[#allocation7 + $0x110] sm:$0xff] }
 0x1af   :  { %v672_v60 = vadd.f32 %v1722_v0, %v671_v56  ;;  %v689_v1 = vmul.f32 %v1724_v54, %v687_v13  ;;  %v1726_v4 = vpop.eup %1725  ;;  %vm694_vm4 = vweird.f32 %v1724_v54  ;;  %v2534_v13 = vld [vmem:[#allocation7 + $0x178] sm:$0xff]  ;;  %v2573_v56 = vld [vmem:[#allocation7 + $0xe0] sm:$0xff] }
 0x1b0   :  { %v657_v3 = vsel %vm656_vm0, %v1720_v57, %v653_v58  ;;  %vm695_vm6 = vmor %vm693_vm5, %vm694_vm4  ;;  %v2537_v57 = vld [vmem:[#allocation7 + $0x140] sm:$0xff]  ;;  %v2582_v58 = vld [vmem:[#allocation7 + $0xf8] sm:$0xff] }
 0x1b1   :  { %v662_v5 = vsel %vm659_vm2, %v661_v59, %v657_v3  ;;  %v676_v6 = vsel %vm675_vm1, %v1722_v0, %v672_v60  ;;  %v690_v7 = vsub.f32 1.0, %v689_v1  ;;  %v2546_v0 = vld [vmem:[#allocation7 + $0x158] sm:$0xff]  ;;  %v2585_v59 = vld [vmem:[#allocation7 + $0xc0] sm:$0xff]  ;;  %v2588_v60 = vld [vmem:[#allocation7 + $0xc8] sm:$0xff] }
 0x1b2   :  { %v681_v8 = vsel %vm678_vm3, %v680_v2, %v676_v6  ;;  %v704_v9 = vmul.f32 %v1726_v4, %v662_v5  ;;  %v2591_v1 = vld [vmem:[#allocation7 + $0xd0] sm:$0xff]  ;;  %v2594_v2 = vld [vmem:[#allocation7 + $0xd8] sm:$0xff]  ;;  %v2597_v3 = vld [vmem:[#allocation7 + $0xa0] sm:$0xff] }
 0x1b3   :  { %v703_v10 = vmul.f32 %v681_v8, %v2396_v39  ;;  %v691_v11 = vmul.f32 %v1724_v54, %v690_v7  ;;  %v2477_v39 = vld [vmem:[#allocation7 + $0x1e0] sm:$0xff]  ;;  %3102 = vst [vmem:[#allocation12_spill] sm:$0xff] %v2591_v1  ;;  %v2600_v4 = vld [vmem:[#allocation7 + $0xa8] sm:$0xff]  ;;  %v2603_v5 = vld [vmem:[#allocation7 + $0xb0] sm:$0xff] }
 0x1b4   :  { %3103 = vst [vmem:[#allocation11_spill] sm:$0xff] %v2594_v2  ;;  %v2606_v6 = vld [vmem:[#allocation7 + $0xb8] sm:$0xff]  ;;  %v2609_v7 = vld [vmem:[#allocation7 + $0x80] sm:$0xff]  ;;  %v2612_v8 = vld [vmem:[#allocation7 + $0x88] sm:$0xff] }
 0x1b5   :  { %v2471_v12 = vadd.f32 %v704_v9, %v703_v10  ;;  %v692_v14 = vadd.f32 %v1724_v54, %v691_v11  ;;  %3104 = vst [vmem:[#allocation13_spill] sm:$0xff] %v2597_v3  ;;  %v2615_v9 = vld [vmem:[#allocation7 + $0x90] sm:$0xff]  ;;  %v2618_v10 = vld [vmem:[#allocation7 + $0x98] sm:$0xff]  ;;  %v2621_v11 = vld [vmem:[#allocation7 + $0x60] sm:$0xff] }
 0x1b6   :  { %3105 = vst [vmem:[#allocation14_spill] sm:$0xff] %v2600_v4 }
 0x1b7   :  { %1727 = vtanh.f32 %v2471_v12  ;;  %v696_v17 = vsel %vm695_vm6, %v1724_v54, %v692_v14  ;;  %v2579_v54 = vld [vmem:[#allocation7 + $0xf0] sm:$0xff]  ;;  %3106 = vst [vmem:[#allocation16_spill] sm:$0xff] %v2603_v5  ;;  %v2624_v14 = vld [vmem:[#allocation7 + $0x68] sm:$0xff] }
 0x1b8   :  { %v701_v20 = vsel %vm698_vm7, %v700_v18, %v696_v17  ;;  %3107 = vst [vmem:[#allocation15_spill] sm:$0xff] %v2606_v6  ;;  %v2633_v17 = vld [vmem:[#allocation7 + $0x40] sm:$0xff]  ;;  %v2636_v18 = vld [vmem:[#allocation7 + $0x48] sm:$0xff] }
 0x1b9   :  { %3108 = vst [vmem:[#allocation17_spill] sm:$0xff] %v2609_v7 }
 0x1ba   :  { %3109 = vst [vmem:[#allocation18_spill] sm:$0xff] %v2612_v8 }
 0x1bb   :  { %3110 = vst [vmem:[#allocation20_spill] sm:$0xff] %v2615_v9 }
 0x1bc   :  { %3111 = vst [vmem:[#allocation19_spill] sm:$0xff] %v2618_v10 }
 0x1bd   :  { %v1728_v19 = vpop.eup %1727  ;;  %3112 = vst [vmem:[#allocation21_spill] sm:$0xff] %v2621_v11 }
 0x1be   :  { %v707_v21 = vmul.f32 %v1728_v19, %v701_v20  ;;  %3113 = vst [vmem:[#allocation22_spill] sm:$0xff] %v2624_v14  ;;  %v2639_v19 = vld [vmem:[#allocation7 + $0x50] sm:$0xff]  ;;  %v2642_v20 = vld [vmem:[#allocation7 + $0x58] sm:$0xff] }
 0x1bf   :  { %3116 = vst [vmem:[#allocation25_spill] sm:$0xff] %v2633_v17 }
 0x1c0   :  { %1667 = vst [vmem:[%s2928_s4 + $0x8] sm:$0xff] %v707_v21  ;;  %733 = vmatmul.f32.vlgmr.msrb.gmra.mxu0 %v707_v21  ;;  %753 = vmatmul.f32.vlgmr.msrb.gmra.mxu1 %v707_v21 }
 0x1c1   :  { %773 = vmatmul.f32.vlgmr.msrb.gmra.mxu2 %v707_v21  ;;  %793 = vmatmul.f32.vlgmr.msrb.gmra.mxu3 %v707_v21  ;;  %3117 = vst [vmem:[#allocation26_spill] sm:$0xff] %v2636_v18  ;;  %v2645_v21 = vld [vmem:[#allocation7 + $0x20] sm:$0xff] }
 0x1c2   :  { %1029 = vmatpush.msrb.mxu0 %v2477_v39  ;;  %1049 = vmatpush.msrb.mxu1 %v2480_v29  ;;  %3118 = vst [vmem:[#allocation28_spill] sm:$0xff] %v2639_v19 }
 0x1c3   :  { %1069 = vmatpush.msrb.mxu2 %v2483_v30  ;;  %1089 = vmatpush.msrb.mxu3 %v2486_v31  ;;  %3119 = vst [vmem:[#allocation27_spill] sm:$0xff] %v2642_v20 }
 0x1c4   :  { %1030 = vmatpush.msrb.mxu0 %v2489_v32  ;;  %1050 = vmatpush.msrb.mxu1 %v2492_v33  ;;  %3120 = vst [vmem:[#allocation29_spill] sm:$0xff] %v2645_v21 }
 0x1c5   :  { %1070 = vmatpush.msrb.mxu2 %v2495_v34  ;;  %1090 = vmatpush.msrb.mxu3 %v2498_v35 }
 0x1c6   :  { %1031 = vmatpush.msrb.mxu0 %v2501_v36  ;;  %1051 = vmatpush.msrb.mxu1 %v2504_v37 }
 0x1c7   :  { %1071 = vmatpush.msrb.mxu2 %v2507_v38  ;;  %1091 = vmatpush.msrb.mxu3 %v2510_v40 }
 0x1c8   :  { %1032 = vmatpush.msrb.mxu0 %v2513_v41  ;;  %1052 = vmatpush.msrb.mxu1 %v2516_v42 }
 0x1c9   :  { %1072 = vmatpush.msrb.mxu2 %v2519_v43  ;;  %1092 = vmatpush.msrb.mxu3 %v2522_v47 }
 0x1ca   :  { %1033 = vmatpush.msrb.mxu0 %v2525_v55  ;;  %1053 = vmatpush.msrb.mxu1 %v2528_v46 }
 0x1cb   :  { %1073 = vmatpush.msrb.mxu2 %v2531_v62  ;;  %1093 = vmatpush.msrb.mxu3 %v2534_v13 }
 0x1cc   :  { %1034 = vmatpush.msrb.mxu0 %v2537_v57  ;;  %1054 = vmatpush.msrb.mxu1 %v2540_v52 }
 0x1cd   :  { %1074 = vmatpush.msrb.mxu2 %v2543_v50  ;;  %1094 = vmatpush.msrb.mxu3 %v2546_v0 }
 0x1ce   :  { %1035 = vmatpush.msrb.mxu0 %v2549_v49  ;;  %1055 = vmatpush.msrb.mxu1 %v2552_v44 }
 0x1cf   :  { %1075 = vmatpush.msrb.mxu2 %v2555_v45  ;;  %1095 = vmatpush.msrb.mxu3 %v2558_v63 }
 0x1d0   :  { %1036 = vmatpush.msrb.mxu0 %v2561_v51  ;;  %1056 = vmatpush.msrb.mxu1 %v2564_v26 }
 0x1d1   :  { %1076 = vmatpush.msrb.mxu2 %v2567_v53  ;;  %1096 = vmatpush.msrb.mxu3 %v2570_v48 }
 0x1d2   :  { %1037 = vmatpush.msrb.mxu0 %v2573_v56  ;;  %1057 = vmatpush.msrb.mxu1 %v2576_v61 }
 0x1d3   :  { %1077 = vmatpush.msrb.mxu2 %v2579_v54  ;;  %1097 = vmatpush.msrb.mxu3 %v2582_v58 }
 0x1d4   :  { %1038 = vmatpush.msrb.mxu0 %v2585_v59  ;;  %1058 = vmatpush.msrb.mxu1 %v2588_v60 }
 0x1d5   :  { %1078 = vmatpush.msrb.mxu2 %v2591_v1  ;;  %1098 = vmatpush.msrb.mxu3 %v2594_v2 }
 0x1d6   :  { %1039 = vmatpush.msrb.mxu0 %v2597_v3  ;;  %1059 = vmatpush.msrb.mxu1 %v2600_v4 }
 0x1d7   :  { %1079 = vmatpush.msrb.mxu2 %v2603_v5  ;;  %1099 = vmatpush.msrb.mxu3 %v2606_v6 }
 0x1d8   :  { %1040 = vmatpush.msrb.mxu0 %v2609_v7  ;;  %1060 = vmatpush.msrb.mxu1 %v2612_v8 }
 0x1d9   :  { %1080 = vmatpush.msrb.mxu2 %v2615_v9  ;;  %1100 = vmatpush.msrb.mxu3 %v2618_v10 }
 0x1da   :  { %1041 = vmatpush.msrb.mxu0 %v2621_v11  ;;  %1061 = vmatpush.msrb.mxu1 %v2624_v14 }
 0x1db   :  { %1081 = vmatpush.msrb.mxu2 %v2627_v15  ;;  %1101 = vmatpush.msrb.mxu3 %v2630_v16  ;;  %v2648_v16 = vld [vmem:[#allocation7 + $0x28] sm:$0xff] }
 0x1dc   :  { %1042 = vmatpush.msrb.mxu0 %v2633_v17  ;;  %1062 = vmatpush.msrb.mxu1 %v2636_v18  ;;  %3121 = vst [vmem:[#allocation30_spill] sm:$0xff] %v2648_v16  ;;  %v3122_v18 = vld [vmem:[#allocation41_spill] sm:$0xff]  ;;  %v3123_v17 = vld [vmem:[#allocation42_spill] sm:$0xff] }
 0x1dd   :  { %1082 = vmatpush.msrb.mxu2 %v2639_v19  ;;  %1102 = vmatpush.msrb.mxu3 %v2642_v20 }
 0x1de   :  { %1043 = vmatpush.msrb.mxu0 %v2645_v21  ;;  %1063 = vmatpush.msrb.mxu1 %v2648_v16 }
 0x1df   :  { %1083 = vmatpush.msrb.mxu2 %v3092_v22  ;;  %1103 = vmatpush.msrb.mxu3 %v3093_v23  ;;  %v3124_v23 = vld [vmem:[#allocation44_spill] sm:$0xff] }
 0x1e0   :  { %1044 = vmatpush.msrb.mxu0 %v3094_v24  ;;  %1064 = vmatpush.msrb.mxu1 %v3095_v25 }
 0x1e1   :  { %1084 = vmatpush.msrb.mxu2 %v3096_v27  ;;  %1104 = vmatpush.msrb.mxu3 %v3097_v28 }
 0x23d   :  { %v734_v20 = vpop.f32.mrf.mxu0  ;;  %v754_v19 = vpop.f32.mrf.mxu1 }
 0x23e   :  { %v797_v21 = vadd.f32 %v734_v20, %v3122_v18  ;;  %v798_v15 = vadd.f32 %v754_v19, %v3123_v17  ;;  %v3125_v17 = vld [vmem:[#allocation43_spill] sm:$0xff] }
 0x240   :  { %v1668_v14 = vmul.f32 -1.442695, %v797_v21  ;;  %v1669_v16 = vmul.f32 -1.442695, %v798_v15 }
 0x242   :  { %1729 = vpow2.f32 %v1668_v14 }
 0x243   :  { %1731 = vpow2.f32 %v1669_v16 }
 0x244   :  { %v794_v22 = vpop.f32.mrf.mxu3  ;;  %v774_v28 = vpop.f32.mrf.mxu2 }
 0x245   :  { %v800_v11 = vadd.f32 %v794_v22, %v3124_v23  ;;  %v799_v19 = vadd.f32 %v774_v28, %v3125_v17 }
 0x247   :  { %v1670_v24 = vmul.f32 -1.442695, %v800_v11 }
 0x248   :  { %v1730_v10 = vpop.eup %1729 }
 0x249   :  { %v1732_v25 = vpop.eup %1731  ;;  %v804_v9 = vadd.f32 1.0, %v1730_v10  ;;  %1733 = vpow2.f32 %v1670_v24 }
 0x24a   :  { %v823_v27 = vadd.f32 1.0, %v1732_v25 }
 0x24b   :  { %1735 = vrcp.f32 %v804_v9  ;;  %v816_v11 = vand.u32 2147483648, %v804_v9  ;;  %v814_v24 = vand.u32 2147483647, %v804_v9  ;;  %vm810_vm10 = vweird.f32 %v804_v9 }
 0x24c   :  { %1737 = vrcp.f32 %v823_v27  ;;  %v835_v23 = vand.u32 2147483648, %v823_v27  ;;  %v833_v7 = vand.u32 2147483647, %v823_v27  ;;  %vm829_vm11 = vweird.f32 %v823_v27 }
 0x24d   :  { %v817_v28 = vor.u32 1.1754944e-38, %v816_v11  ;;  %vm815_vm14 = vcmp.eq.f32.partialorder %v814_v24, 8.507059e+37 }
 0x24e   :  { %vm834_vm15 = vcmp.eq.f32.partialorder %v833_v7, 8.507059e+37 }
 0x24f   :  { %v1734_v8 = vpop.eup %1733 }
 0x250   :  { %v843_v18 = vadd.f32 1.0, %v1734_v8 }
 0x251   :  { %v1736_v20 = vpop.eup %1735 }
 0x252   :  { %v1738_v15 = vpop.eup %1737  ;;  %v806_v14 = vmul.f32 %v1736_v20, %v804_v9  ;;  %1739 = vrcp.f32 %v843_v18  ;;  %vm811_vm8 = vweird.f32 %v1736_v20  ;;  %v855_v11 = vand.u32 2147483648, %v843_v18 }
 0x253   :  { %v825_v16 = vmul.f32 %v1738_v15, %v823_v27  ;;  %1741 = vtanh.f32 %v799_v19  ;;  %vm830_vm9 = vweird.f32 %v1738_v15  ;;  %vm812_vm12 = vmor %vm810_vm10, %vm811_vm8  ;;  %vm849_vm1 = vweird.f32 %v843_v18 }
 0x254   :  { %v807_v21 = vsub.f32 1.0, %v806_v14  ;;  %vm831_vm13 = vmor %vm829_vm11, %vm830_vm9  ;;  %v836_v14 = vor.u32 1.1754944e-38, %v835_v23  ;;  %v856_v24 = vor.u32 1.1754944e-38, %v855_v11  ;;  %v3144_v11 = vld [vmem:[#allocation29_spill] sm:$0xff] }
 0x255   :  { %v826_v22 = vsub.f32 1.0, %v825_v16 }
 0x256   :  { %v808_v10 = vmul.f32 %v1736_v20, %v807_v21 }
 0x257   :  { %v827_v25 = vmul.f32 %v1738_v15, %v826_v22 }
 0x258   :  { %v1740_v6 = vpop.eup %1739  ;;  %v809_v8 = vadd.f32 %v1736_v20, %v808_v10 }
 0x259   :  { %v828_v17 = vadd.f32 %v1738_v15, %v827_v25  ;;  %v845_v5 = vmul.f32 %v1740_v6, %v843_v18  ;;  %v1742_v19 = vpop.eup %1741  ;;  %vm850_vm0 = vweird.f32 %v1740_v6  ;;  %v3133_v25 = vld [vmem:[#allocation18_spill] sm:$0xff] }
 0x25a   :  { %v813_v16 = vsel %vm812_vm12, %v1736_v20, %v809_v8  ;;  %v853_v20 = vand.u32 2147483647, %v843_v18  ;;  %vm851_vm2 = vmor %vm849_vm1, %vm850_vm0  ;;  %v3132_v18 = vld [vmem:[#allocation17_spill] sm:$0xff]  ;;  %v3134_v8 = vld [vmem:[#allocation20_spill] sm:$0xff] }
 0x25b   :  { %v818_v4 = vsel %vm815_vm14, %v817_v28, %v813_v16  ;;  %v832_v21 = vsel %vm831_vm13, %v1738_v15, %v828_v17  ;;  %v846_v3 = vsub.f32 1.0, %v845_v5  ;;  %v3135_v28 = vld [vmem:[#allocation19_spill] sm:$0xff]  ;;  %v3136_v17 = vld [vmem:[#allocation21_spill] sm:$0xff]  ;;  %v3138_v16 = vld [vmem:[#allocation24_spill] sm:$0xff] }
 0x25c   :  { %v837_v22 = vsel %vm834_vm15, %v836_v14, %v832_v21  ;;  %v860_v2 = vmul.f32 %v1742_v19, %v818_v4  ;;  %vm854_vm3 = vcmp.eq.f32.partialorder %v853_v20, 8.507059e+37  ;;  %v3130_v4 = vld [vmem:[#allocation16_spill] sm:$0xff]  ;;  %v3137_v14 = vld [vmem:[#allocation22_spill] sm:$0xff]  ;;  %v3139_v19 = vld [vmem:[#allocation23_spill] sm:$0xff] }
 0x25d   :  { %v859_v1 = vmul.f32 %v837_v22, %v2471_v12  ;;  %v847_v10 = vmul.f32 %v1740_v6, %v846_v3  ;;  %v3126_v12 = vld [vmem:[#allocation12_spill] sm:$0xff]  ;;  %v3129_v3 = vld [vmem:[#allocation14_spill] sm:$0xff]  ;;  %v3140_v21 = vld [vmem:[#allocation25_spill] sm:$0xff] }
 0x25e   :  { %v3141_v22 = vld [vmem:[#allocation26_spill] sm:$0xff] }
 0x25f   :  { %v2662_v9 = vadd.f32 %v860_v2, %v859_v1  ;;  %v848_v27 = vadd.f32 %v1740_v6, %v847_v10  ;;  %v3127_v1 = vld [vmem:[#allocation11_spill] sm:$0xff]  ;;  %v3128_v2 = vld [vmem:[#allocation13_spill] sm:$0xff]  ;;  %v3142_v10 = vld [vmem:[#allocation28_spill] sm:$0xff] }
 0x260   :  { %v3145_v20 = vld [vmem:[#allocation30_spill] sm:$0xff] }
 0x261   :  { %1743 = vtanh.f32 %v2662_v9  ;;  %v852_v23 = vsel %vm851_vm2, %v1740_v6, %v848_v27  ;;  %v3131_v6 = vld [vmem:[#allocation15_spill] sm:$0xff] }
 0x262   :  { %v857_v5 = vsel %vm854_vm3, %v856_v24, %v852_v23  ;;  %v3143_v27 = vld [vmem:[#allocation27_spill] sm:$0xff]  ;;  %v2726_v23 = vld [vmem:[#allocation7 + $0x30] sm:$0xff]  ;;  %v2729_v24 = vld [vmem:[#allocation7 + $0x38] sm:$0xff] }
 0x263   :  { %3146 = vst [vmem:[#allocation31_spill] sm:$0xff] %v2726_v23 }
 0x264   :  { %3147 = vst [vmem:[#allocation32_spill] sm:$0xff] %v2729_v24 }
 0x267   :  { %v1744_v7 = vpop.eup %1743 }
 0x268   :  { %v863_v15 = vmul.f32 %v1744_v7, %v857_v5  ;;  %v2732_v7 = vld [vmem:[#allocation7] sm:$0xff]  ;;  %v2735_v5 = vld [vmem:[#allocation7 + $0x8] sm:$0xff] }
 0x269   :  { %3148 = vst [vmem:[#allocation33_spill] sm:$0xff] %v2732_v7 }
 0x26a   :  { %1671 = vst [vmem:[%s2928_s4 + $0x10] sm:$0xff] %v863_v15  ;;  %889 = vmatmul.f32.vlgmr.msra.gmra.mxu0 %v863_v15  ;;  %909 = vmatmul.f32.vlgmr.msra.gmra.mxu1 %v863_v15 }
 0x26b   :  { %929 = vmatmul.f32.vlgmr.msra.gmra.mxu2 %v863_v15  ;;  %949 = vmatmul.f32.vlgmr.msra.gmra.mxu3 %v863_v15  ;;  %3149 = vst [vmem:[#allocation34_spill] sm:$0xff] %v2735_v5  ;;  %v2738_v15 = vld [vmem:[#allocation7 + $0x10] sm:$0xff] }
 0x26c   :  { %1185 = vmatpush.msra.mxu0 %v2477_v39  ;;  %1205 = vmatpush.msra.mxu1 %v2480_v29  ;;  %3150 = vst [vmem:[#allocation35_spill] sm:$0xff] %v2738_v15 }
 0x26d   :  { %1225 = vmatpush.msra.mxu2 %v2483_v30  ;;  %1245 = vmatpush.msra.mxu3 %v2486_v31 }
 0x26e   :  { %1186 = vmatpush.msra.mxu0 %v2489_v32  ;;  %1206 = vmatpush.msra.mxu1 %v2492_v33 }
 0x26f   :  { %1226 = vmatpush.msra.mxu2 %v2495_v34  ;;  %1246 = vmatpush.msra.mxu3 %v2498_v35 }
 0x270   :  { %1187 = vmatpush.msra.mxu0 %v2501_v36  ;;  %1207 = vmatpush.msra.mxu1 %v2504_v37 }
 0x271   :  { %1227 = vmatpush.msra.mxu2 %v2507_v38  ;;  %1247 = vmatpush.msra.mxu3 %v2510_v40 }
 0x272   :  { %1188 = vmatpush.msra.mxu0 %v2513_v41  ;;  %1208 = vmatpush.msra.mxu1 %v2516_v42 }
 0x273   :  { %1228 = vmatpush.msra.mxu2 %v2519_v43  ;;  %1248 = vmatpush.msra.mxu3 %v2522_v47 }
 0x274   :  { %1189 = vmatpush.msra.mxu0 %v2525_v55  ;;  %1209 = vmatpush.msra.mxu1 %v2528_v46 }
 0x275   :  { %1229 = vmatpush.msra.mxu2 %v2531_v62  ;;  %1249 = vmatpush.msra.mxu3 %v2534_v13 }
 0x276   :  { %1190 = vmatpush.msra.mxu0 %v2537_v57  ;;  %1210 = vmatpush.msra.mxu1 %v2540_v52 }
 0x277   :  { %1230 = vmatpush.msra.mxu2 %v2543_v50  ;;  %1250 = vmatpush.msra.mxu3 %v2546_v0 }
 0x278   :  { %1191 = vmatpush.msra.mxu0 %v2549_v49  ;;  %1211 = vmatpush.msra.mxu1 %v2552_v44 }
 0x279   :  { %1231 = vmatpush.msra.mxu2 %v2555_v45  ;;  %1251 = vmatpush.msra.mxu3 %v2558_v63 }
 0x27a   :  { %1192 = vmatpush.msra.mxu0 %v2561_v51  ;;  %1212 = vmatpush.msra.mxu1 %v2564_v26 }
 0x27b   :  { %1232 = vmatpush.msra.mxu2 %v2567_v53  ;;  %1252 = vmatpush.msra.mxu3 %v2570_v48 }
 0x27c   :  { %1193 = vmatpush.msra.mxu0 %v2573_v56  ;;  %1213 = vmatpush.msra.mxu1 %v2576_v61 }
 0x27d   :  { %1233 = vmatpush.msra.mxu2 %v2579_v54  ;;  %1253 = vmatpush.msra.mxu3 %v2582_v58 }
 0x27e   :  { %1194 = vmatpush.msra.mxu0 %v2585_v59  ;;  %1214 = vmatpush.msra.mxu1 %v2588_v60 }
 0x27f   :  { %1234 = vmatpush.msra.mxu2 %v3126_v12  ;;  %1254 = vmatpush.msra.mxu3 %v3127_v1 }
 0x280   :  { %1195 = vmatpush.msra.mxu0 %v3128_v2  ;;  %1215 = vmatpush.msra.mxu1 %v3129_v3 }
 0x281   :  { %1235 = vmatpush.msra.mxu2 %v3130_v4  ;;  %1255 = vmatpush.msra.mxu3 %v3131_v6 }
 0x282   :  { %1196 = vmatpush.msra.mxu0 %v3132_v18  ;;  %1216 = vmatpush.msra.mxu1 %v3133_v25 }
 0x283   :  { %1236 = vmatpush.msra.mxu2 %v3134_v8  ;;  %1256 = vmatpush.msra.mxu3 %v3135_v28 }
 0x284   :  { %1197 = vmatpush.msra.mxu0 %v3136_v17  ;;  %1217 = vmatpush.msra.mxu1 %v3137_v14 }
 0x285   :  { %1237 = vmatpush.msra.mxu2 %v3138_v16  ;;  %1257 = vmatpush.msra.mxu3 %v3139_v19 }
 0x286   :  { %1198 = vmatpush.msra.mxu0 %v3140_v21  ;;  %1218 = vmatpush.msra.mxu1 %v3141_v22 }
 0x287   :  { %1238 = vmatpush.msra.mxu2 %v3142_v10  ;;  %1258 = vmatpush.msra.mxu3 %v3143_v27  ;;  %v3152_v27 = vld [vmem:[#allocation45_spill] sm:$0xff]  ;;  %v3153_v10 = vld [vmem:[#allocation46_spill] sm:$0xff] }
 0x288   :  { %1199 = vmatpush.msra.mxu0 %v3144_v11  ;;  %1219 = vmatpush.msra.mxu1 %v3145_v20  ;;  %v2741_v20 = vld [vmem:[#allocation7 + $0x18] sm:$0xff] }
 0x289   :  { %1239 = vmatpush.msra.mxu2 %v2726_v23  ;;  %1259 = vmatpush.msra.mxu3 %v2729_v24  ;;  %3151 = vst [vmem:[#allocation36_spill] sm:$0xff] %v2741_v20 }
 0x28a   :  { %1200 = vmatpush.msra.mxu0 %v2732_v7  ;;  %1220 = vmatpush.msra.mxu1 %v2735_v5  ;;  %v3154_v5 = vld [vmem:[#allocation48_spill] sm:$0xff] }
 0x28b   :  { %1240 = vmatpush.msra.mxu2 %v2738_v15  ;;  %1260 = vmatpush.msra.mxu3 %v2741_v20 }
 0x2e7   :  { %v890_v23 = vpop.f32.mrf.mxu0  ;;  %v910_v11 = vpop.f32.mrf.mxu1 }
 0x2e8   :  { %v953_v24 = vadd.f32 %v890_v23, %v3152_v27  ;;  %v954_v22 = vadd.f32 %v910_v11, %v3153_v10  ;;  %v3155_v10 = vld [vmem:[#allocation47_spill] sm:$0xff] }
 0x2ea   :  { %v1672_v21 = vmul.f32 -1.442695, %v953_v24  ;;  %v1673_v7 = vmul.f32 -1.442695, %v954_v22 }
 0x2ec   :  { %1745 = vpow2.f32 %v1672_v21 }
 0x2ed   :  { %1747 = vpow2.f32 %v1673_v7 }
 0x2ee   :  { %v950_v19 = vpop.f32.mrf.mxu3  ;;  %v930_v20 = vpop.f32.mrf.mxu2 }
 0x2ef   :  { %v956_v16 = vadd.f32 %v950_v19, %v3154_v5  ;;  %v955_v11 = vadd.f32 %v930_v20, %v3155_v10 }
 0x2f1   :  { %v1674_v14 = vmul.f32 -1.442695, %v956_v16 }
 0x2f2   :  { %v1746_v17 = vpop.eup %1745 }
 0x2f3   :  { %v1748_v15 = vpop.eup %1747  ;;  %v960_v28 = vadd.f32 1.0, %v1746_v17  ;;  %1749 = vpow2.f32 %v1674_v14 }
 0x2f4   :  { %v979_v8 = vadd.f32 1.0, %v1748_v15 }
 0x2f5   :  { %1751 = vrcp.f32 %v960_v28  ;;  %v972_v16 = vand.u32 2147483648, %v960_v28  ;;  %v970_v14 = vand.u32 2147483647, %v960_v28  ;;  %vm966_vm6 = vweird.f32 %v960_v28 }
 0x2f6   :  { %1753 = vrcp.f32 %v979_v8  ;;  %v991_v5 = vand.u32 2147483648, %v979_v8  ;;  %v989_v18 = vand.u32 2147483647, %v979_v8  ;;  %vm985_vm7 = vweird.f32 %v979_v8 }
 0x2f7   :  { %v973_v20 = vor.u32 1.1754944e-38, %v972_v16  ;;  %vm971_vm10 = vcmp.eq.f32.partialorder %v970_v14, 8.507059e+37 }
 0x2f8   :  { %vm990_vm11 = vcmp.eq.f32.partialorder %v989_v18, 8.507059e+37 }
 0x2f9   :  { %v1750_v25 = vpop.eup %1749 }
 0x2fa   :  { %v999_v27 = vadd.f32 1.0, %v1750_v25 }
 0x2fb   :  { %v1752_v23 = vpop.eup %1751 }
 0x2fc   :  { %v1754_v22 = vpop.eup %1753  ;;  %v962_v21 = vmul.f32 %v1752_v23, %v960_v28  ;;  %1755 = vrcp.f32 %v999_v27  ;;  %vm967_vm4 = vweird.f32 %v1752_v23  ;;  %v1011_v16 = vand.u32 2147483648, %v999_v27 }
 0x2fd   :  { %v981_v24 = vmul.f32 %v1754_v22, %v979_v8  ;;  %1757 = vtanh.f32 %v955_v11  ;;  %vm986_vm5 = vweird.f32 %v1754_v22  ;;  %vm968_vm8 = vmor %vm966_vm6, %vm967_vm4  ;;  %vm1005_vm13 = vweird.f32 %v999_v27 }
 0x2fe   :  { %v963_v7 = vsub.f32 1.0, %v962_v21  ;;  %vm987_vm9 = vmor %vm985_vm7, %vm986_vm5  ;;  %v992_v21 = vor.u32 1.1754944e-38, %v991_v5  ;;  %v1012_v14 = vor.u32 1.1754944e-38, %v1011_v16  ;;  %v3174_v16 = vld [vmem:[#allocation29_spill] sm:$0xff] }
 0x2ff   :  { %v982_v19 = vsub.f32 1.0, %v981_v24 }
 0x300   :  { %v964_v17 = vmul.f32 %v1752_v23, %v963_v7 }
 0x301   :  { %v983_v15 = vmul.f32 %v1754_v22, %v982_v19 }
 0x302   :  { %v1756_v6 = vpop.eup %1755  ;;  %v965_v25 = vadd.f32 %v1752_v23, %v964_v17 }
 0x303   :  { %v984_v10 = vadd.f32 %v1754_v22, %v983_v15  ;;  %v1001_v4 = vmul.f32 %v1756_v6, %v999_v27  ;;  %v1758_v11 = vpop.eup %1757  ;;  %vm1006_vm12 = vweird.f32 %v1756_v6  ;;  %v3163_v15 = vld [vmem:[#allocation18_spill] sm:$0xff] }
 0x304   :  { %v969_v24 = vsel %vm968_vm8, %v1752_v23, %v965_v25  ;;  %v1009_v23 = vand.u32 2147483647, %v999_v27  ;;  %vm1007_vm14 = vmor %vm1005_vm13, %vm1006_vm12  ;;  %v3162_v27 = vld [vmem:[#allocation17_spill] sm:$0xff]  ;;  %v3164_v25 = vld [vmem:[#allocation20_spill] sm:$0xff] }
 0x305   :  { %v974_v3 = vsel %vm971_vm10, %v973_v20, %v969_v24  ;;  %v988_v7 = vsel %vm987_vm9, %v1754_v22, %v984_v10  ;;  %v1002_v2 = vsub.f32 1.0, %v1001_v4  ;;  %v3165_v20 = vld [vmem:[#allocation19_spill] sm:$0xff]  ;;  %v3166_v10 = vld [vmem:[#allocation21_spill] sm:$0xff]  ;;  %v3168_v24 = vld [vmem:[#allocation24_spill] sm:$0xff] }
 0x306   :  { %v993_v19 = vsel %vm990_vm11, %v992_v21, %v988_v7  ;;  %v1016_v1 = vmul.f32 %v1758_v11, %v974_v3  ;;  %vm1010_vm15 = vcmp.eq.f32.partialorder %v1009_v23, 8.507059e+37  ;;  %v3160_v3 = vld [vmem:[#allocation16_spill] sm:$0xff]  ;;  %v3167_v21 = vld [vmem:[#allocation22_spill] sm:$0xff]  ;;  %v3169_v11 = vld [vmem:[#allocation23_spill] sm:$0xff] }
 0x307   :  { %v1015_v12 = vmul.f32 %v993_v19, %v2662_v9  ;;  %v1003_v17 = vmul.f32 %v1756_v6, %v1002_v2  ;;  %v3156_v9 = vld [vmem:[#allocation12_spill] sm:$0xff]  ;;  %v3159_v2 = vld [vmem:[#allocation14_spill] sm:$0xff]  ;;  %v3170_v7 = vld [vmem:[#allocation25_spill] sm:$0xff] }
 0x308   :  { %v3171_v19 = vld [vmem:[#allocation26_spill] sm:$0xff] }
 0x309   :  { %v2749_v28 = vadd.f32 %v1016_v1, %v1015_v12  ;;  %v1004_v8 = vadd.f32 %v1756_v6, %v1003_v17  ;;  %v3157_v12 = vld [vmem:[#allocation11_spill] sm:$0xff]  ;;  %v3158_v1 = vld [vmem:[#allocation13_spill] sm:$0xff]  ;;  %v3172_v17 = vld [vmem:[#allocation28_spill] sm:$0xff] }
 0x30a   :  { %v3175_v23 = vld [vmem:[#allocation30_spill] sm:$0xff] }
 0x30b   :  { %1759 = vtanh.f32 %v2749_v28  ;;  %v1008_v5 = vsel %vm1007_vm14, %v1756_v6, %v1004_v8  ;;  %v3161_v6 = vld [vmem:[#allocation15_spill] sm:$0xff] }
 0x30c   :  { %v1013_v4 = vsel %vm1010_vm15, %v1012_v14, %v1008_v5  ;;  %v3173_v8 = vld [vmem:[#allocation27_spill] sm:$0xff]  ;;  %v3177_v14 = vld [vmem:[#allocation32_spill] sm:$0xff] }
 0x30d   :  { %v3176_v5 = vld [vmem:[#allocation31_spill] sm:$0xff] }
 0x311   :  { %v1760_v18 = vpop.eup %1759 }
 0x312   :  { %v1019_v22 = vmul.f32 %v1760_v18, %v1013_v4  ;;  %v3178_v18 = vld [vmem:[#allocation33_spill] sm:$0xff]  ;;  %v3179_v4 = vld [vmem:[#allocation34_spill] sm:$0xff] }
 0x314   :  { %1675 = vst [vmem:[%s2928_s4 + $0x18] sm:$0xff] %v1019_v22  ;;  %1045 = vmatmul.f32.vlgmr.msrb.gmra.mxu0 %v1019_v22  ;;  %1065 = vmatmul.f32.vlgmr.msrb.gmra.mxu1 %v1019_v22 }
 0x315   :  { %1085 = vmatmul.f32.vlgmr.msrb.gmra.mxu2 %v1019_v22  ;;  %1105 = vmatmul.f32.vlgmr.msrb.gmra.mxu3 %v1019_v22  ;;  %v3180_v22 = vld [vmem:[#allocation35_spill] sm:$0xff] }
 0x316   :  { %1341 = vmatpush.msrb.mxu0 %v2477_v39  ;;  %1361 = vmatpush.msrb.mxu1 %v2480_v29 }
 0x317   :  { %1381 = vmatpush.msrb.mxu2 %v2483_v30  ;;  %1401 = vmatpush.msrb.mxu3 %v2486_v31 }
 0x318   :  { %1342 = vmatpush.msrb.mxu0 %v2489_v32  ;;  %1362 = vmatpush.msrb.mxu1 %v2492_v33 }
 0x319   :  { %1382 = vmatpush.msrb.mxu2 %v2495_v34  ;;  %1402 = vmatpush.msrb.mxu3 %v2498_v35 }
 0x31a   :  { %1343 = vmatpush.msrb.mxu0 %v2501_v36  ;;  %1363 = vmatpush.msrb.mxu1 %v2504_v37 }
 0x31b   :  { %1383 = vmatpush.msrb.mxu2 %v2507_v38  ;;  %1403 = vmatpush.msrb.mxu3 %v2510_v40 }
 0x31c   :  { %1344 = vmatpush.msrb.mxu0 %v2513_v41  ;;  %1364 = vmatpush.msrb.mxu1 %v2516_v42 }
 0x31d   :  { %1384 = vmatpush.msrb.mxu2 %v2519_v43  ;;  %1404 = vmatpush.msrb.mxu3 %v2522_v47 }
 0x31e   :  { %1345 = vmatpush.msrb.mxu0 %v2525_v55  ;;  %1365 = vmatpush.msrb.mxu1 %v2528_v46 }
 0x31f   :  { %1385 = vmatpush.msrb.mxu2 %v2531_v62  ;;  %1405 = vmatpush.msrb.mxu3 %v2534_v13 }
 0x320   :  { %1346 = vmatpush.msrb.mxu0 %v2537_v57  ;;  %1366 = vmatpush.msrb.mxu1 %v2540_v52 }
 0x321   :  { %1386 = vmatpush.msrb.mxu2 %v2543_v50  ;;  %1406 = vmatpush.msrb.mxu3 %v2546_v0 }
 0x322   :  { %1347 = vmatpush.msrb.mxu0 %v2549_v49  ;;  %1367 = vmatpush.msrb.mxu1 %v2552_v44 }
 0x323   :  { %1387 = vmatpush.msrb.mxu2 %v2555_v45  ;;  %1407 = vmatpush.msrb.mxu3 %v2558_v63 }
 0x324   :  { %1348 = vmatpush.msrb.mxu0 %v2561_v51  ;;  %1368 = vmatpush.msrb.mxu1 %v2564_v26 }
 0x325   :  { %1388 = vmatpush.msrb.mxu2 %v2567_v53  ;;  %1408 = vmatpush.msrb.mxu3 %v2570_v48 }
 0x326   :  { %1349 = vmatpush.msrb.mxu0 %v2573_v56  ;;  %1369 = vmatpush.msrb.mxu1 %v2576_v61 }
 0x327   :  { %1389 = vmatpush.msrb.mxu2 %v2579_v54  ;;  %1409 = vmatpush.msrb.mxu3 %v2582_v58 }
 0x328   :  { %1350 = vmatpush.msrb.mxu0 %v2585_v59  ;;  %1370 = vmatpush.msrb.mxu1 %v2588_v60 }
 0x329   :  { %1390 = vmatpush.msrb.mxu2 %v3156_v9  ;;  %1410 = vmatpush.msrb.mxu3 %v3157_v12 }
 0x32a   :  { %1351 = vmatpush.msrb.mxu0 %v3158_v1  ;;  %1371 = vmatpush.msrb.mxu1 %v3159_v2 }
 0x32b   :  { %1391 = vmatpush.msrb.mxu2 %v3160_v3  ;;  %1411 = vmatpush.msrb.mxu3 %v3161_v6 }
 0x32c   :  { %1352 = vmatpush.msrb.mxu0 %v3162_v27  ;;  %1372 = vmatpush.msrb.mxu1 %v3163_v15 }
 0x32d   :  { %1392 = vmatpush.msrb.mxu2 %v3164_v25  ;;  %1412 = vmatpush.msrb.mxu3 %v3165_v20 }
 0x32e   :  { %1353 = vmatpush.msrb.mxu0 %v3166_v10  ;;  %1373 = vmatpush.msrb.mxu1 %v3167_v21 }
 0x32f   :  { %1393 = vmatpush.msrb.mxu2 %v3168_v24  ;;  %1413 = vmatpush.msrb.mxu3 %v3169_v11  ;;  %v3182_v11 = vld [vmem:[#allocation49_spill] sm:$0xff]  ;;  %v3183_v24 = vld [vmem:[#allocation50_spill] sm:$0xff] }
 0x330   :  { %1354 = vmatpush.msrb.mxu0 %v3170_v7  ;;  %1374 = vmatpush.msrb.mxu1 %v3171_v19  ;;  %v3181_v7 = vld [vmem:[#allocation36_spill] sm:$0xff] }
 0x331   :  { %1394 = vmatpush.msrb.mxu2 %v3172_v17  ;;  %1414 = vmatpush.msrb.mxu3 %v3173_v8 }
 0x332   :  { %1355 = vmatpush.msrb.mxu0 %v3174_v16  ;;  %1375 = vmatpush.msrb.mxu1 %v3175_v23 }
 0x333   :  { %1395 = vmatpush.msrb.mxu2 %v3176_v5  ;;  %1415 = vmatpush.msrb.mxu3 %v3177_v14  ;;  %v3184_v14 = vld [vmem:[#allocation52_spill] sm:$0xff] }
 0x334   :  { %1356 = vmatpush.msrb.mxu0 %v3178_v18  ;;  %1376 = vmatpush.msrb.mxu1 %v3179_v4 }
 0x335   :  { %1396 = vmatpush.msrb.mxu2 %v3180_v22  ;;  %1416 = vmatpush.msrb.mxu3 %v3181_v7 }
 0x391   :  { %v1046_v19 = vpop.f32.mrf.mxu0  ;;  %v1066_v17 = vpop.f32.mrf.mxu1 }
 0x392   :  { %v1109_v8 = vadd.f32 %v1046_v19, %v3182_v11  ;;  %v1110_v16 = vadd.f32 %v1066_v17, %v3183_v24  ;;  %v3185_v24 = vld [vmem:[#allocation51_spill] sm:$0xff] }
 0x394   :  { %v1676_v21 = vmul.f32 -1.442695, %v1109_v8  ;;  %v1677_v23 = vmul.f32 -1.442695, %v1110_v16 }
 0x396   :  { %1761 = vpow2.f32 %v1676_v21 }
 0x397   :  { %1763 = vpow2.f32 %v1677_v23 }
 0x398   :  { %v1106_v5 = vpop.f32.mrf.mxu3  ;;  %v1086_v7 = vpop.f32.mrf.mxu2 }
 0x399   :  { %v1112_v10 = vadd.f32 %v1106_v5, %v3184_v14  ;;  %v1111_v17 = vadd.f32 %v1086_v7, %v3185_v24 }
 0x39b   :  { %v1678_v18 = vmul.f32 -1.442695, %v1112_v10 }
 0x39c   :  { %v1762_v20 = vpop.eup %1761 }
 0x39d   :  { %v1764_v4 = vpop.eup %1763  ;;  %v1116_v25 = vadd.f32 1.0, %v1762_v20  ;;  %1765 = vpow2.f32 %v1678_v18 }
 0x39e   :  { %v1135_v22 = vadd.f32 1.0, %v1764_v4 }
 0x39f   :  { %1767 = vrcp.f32 %v1116_v25  ;;  %v1128_v10 = vand.u32 2147483648, %v1116_v25  ;;  %v1126_v18 = vand.u32 2147483647, %v1116_v25  ;;  %vm1122_vm2 = vweird.f32 %v1116_v25 }
 0x3a0   :  { %1769 = vrcp.f32 %v1135_v22  ;;  %v1147_v14 = vand.u32 2147483648, %v1135_v22  ;;  %v1145_v27 = vand.u32 2147483647, %v1135_v22  ;;  %vm1141_vm3 = vweird.f32 %v1135_v22 }
 0x3a1   :  { %v1129_v7 = vor.u32 1.1754944e-38, %v1128_v10  ;;  %vm1127_vm6 = vcmp.eq.f32.partialorder %v1126_v18, 8.507059e+37 }
 0x3a2   :  { %vm1146_vm7 = vcmp.eq.f32.partialorder %v1145_v27, 8.507059e+37 }
 0x3a3   :  { %v1766_v15 = vpop.eup %1765 }
 0x3a4   :  { %v1155_v11 = vadd.f32 1.0, %v1766_v15 }
 0x3a5   :  { %v1768_v19 = vpop.eup %1767 }
 0x3a6   :  { %v1770_v8 = vpop.eup %1769  ;;  %v1118_v21 = vmul.f32 %v1768_v19, %v1116_v25  ;;  %1771 = vrcp.f32 %v1155_v11  ;;  %vm1123_vm0 = vweird.f32 %v1768_v19  ;;  %v1167_v10 = vand.u32 2147483648, %v1155_v11 }
 0x3a7   :  { %v1137_v16 = vmul.f32 %v1770_v8, %v1135_v22  ;;  %1773 = vtanh.f32 %v1111_v17  ;;  %vm1142_vm1 = vweird.f32 %v1770_v8  ;;  %vm1124_vm4 = vmor %vm1122_vm2, %vm1123_vm0  ;;  %vm1161_vm9 = vweird.f32 %v1155_v11 }
 0x3a8   :  { %v1119_v23 = vsub.f32 1.0, %v1118_v21  ;;  %vm1143_vm5 = vmor %vm1141_vm3, %vm1142_vm1  ;;  %v1148_v21 = vor.u32 1.1754944e-38, %v1147_v14  ;;  %v1168_v18 = vor.u32 1.1754944e-38, %v1167_v10 }
 0x3a9   :  { %v1138_v5 = vsub.f32 1.0, %v1137_v16 }
 0x3aa   :  { %v1120_v20 = vmul.f32 %v1768_v19, %v1119_v23 }
 0x3ab   :  { %v1139_v4 = vmul.f32 %v1770_v8, %v1138_v5 }
 0x3ac   :  { %v1772_v6 = vpop.eup %1771  ;;  %v1121_v15 = vadd.f32 %v1768_v19, %v1120_v20 }
 0x3ad   :  { %v1140_v24 = vadd.f32 %v1770_v8, %v1139_v4  ;;  %v1157_v3 = vmul.f32 %v1772_v6, %v1155_v11  ;;  %v1774_v17 = vpop.eup %1773  ;;  %vm1162_vm8 = vweird.f32 %v1772_v6 }
 0x3ae   :  { %v1125_v16 = vsel %vm1124_vm4, %v1768_v19, %v1121_v15  ;;  %v1165_v19 = vand.u32 2147483647, %v1155_v11  ;;  %vm1163_vm10 = vmor %vm1161_vm9, %vm1162_vm8  ;;  %v3215_v15 = vld [vmem:[#allocation55_spill] sm:$0xff] }
 0x3af   :  { %v1130_v2 = vsel %vm1127_vm6, %v1129_v7, %v1125_v16  ;;  %v1144_v23 = vsel %vm1143_vm5, %v1770_v8, %v1140_v24  ;;  %v1158_v1 = vsub.f32 1.0, %v1157_v3 }
 0x3b0   :  { %v1149_v5 = vsel %vm1146_vm7, %v1148_v21, %v1144_v23  ;;  %v1172_v12 = vmul.f32 %v1774_v17, %v1130_v2  ;;  %vm1166_vm11 = vcmp.eq.f32.partialorder %v1165_v19, 8.507059e+37 }
 0x3b1   :  { %v1171_v9 = vmul.f32 %v1149_v5, %v2749_v28  ;;  %v1159_v20 = vmul.f32 %v1772_v6, %v1158_v1 }
 0x3b3   :  { %v2824_v25 = vadd.f32 %v1172_v12, %v1171_v9  ;;  %v1160_v22 = vadd.f32 %v1772_v6, %v1159_v20 }
 0x3b5   :  { %1775 = vtanh.f32 %v2824_v25  ;;  %v1164_v14 = vsel %vm1163_vm10, %v1772_v6, %v1160_v22 }
 0x3b6   :  { %v1169_v3 = vsel %vm1166_vm11, %v1168_v18, %v1164_v14 }
 0x3bb   :  { %v1776_v27 = vpop.eup %1775 }
 0x3bc   :  { %v1175_v8 = vmul.f32 %v1776_v27, %v1169_v3 }
 0x3be   :  { %1679 = vst [vmem:[%s2928_s4 + $0x20] sm:$0xff] %v1175_v8  ;;  %1201 = vmatmul.f32.vlgmr.msra.gmra.mxu0 %v1175_v8  ;;  %1221 = vmatmul.f32.vlgmr.msra.gmra.mxu1 %v1175_v8 }
 0x3bf   :  { %1241 = vmatmul.f32.vlgmr.msra.gmra.mxu2 %v1175_v8  ;;  %1261 = vmatmul.f32.vlgmr.msra.gmra.mxu3 %v1175_v8 }
 0x3c0   :  { %1497 = vmatpush.msra.mxu0 %v2477_v39  ;;  %1517 = vmatpush.msra.mxu1 %v2480_v29  ;;  %v3186_v39 = vld [vmem:[#allocation12_spill] sm:$0xff]  ;;  %v3187_v29 = vld [vmem:[#allocation11_spill] sm:$0xff] }
 0x3c1   :  { %1537 = vmatpush.msra.mxu2 %v2483_v30  ;;  %1557 = vmatpush.msra.mxu3 %v2486_v31  ;;  %v3188_v30 = vld [vmem:[#allocation13_spill] sm:$0xff]  ;;  %v3189_v31 = vld [vmem:[#allocation14_spill] sm:$0xff] }
 0x3c2   :  { %1498 = vmatpush.msra.mxu0 %v2489_v32  ;;  %1518 = vmatpush.msra.mxu1 %v2492_v33  ;;  %v3190_v32 = vld [vmem:[#allocation16_spill] sm:$0xff]  ;;  %v3191_v33 = vld [vmem:[#allocation15_spill] sm:$0xff] }
 0x3c3   :  { %1538 = vmatpush.msra.mxu2 %v2495_v34  ;;  %1558 = vmatpush.msra.mxu3 %v2498_v35  ;;  %v3192_v34 = vld [vmem:[#allocation17_spill] sm:$0xff]  ;;  %v3193_v35 = vld [vmem:[#allocation18_spill] sm:$0xff] }
 0x3c4   :  { %1499 = vmatpush.msra.mxu0 %v2501_v36  ;;  %1519 = vmatpush.msra.mxu1 %v2504_v37  ;;  %v3194_v36 = vld [vmem:[#allocation20_spill] sm:$0xff]  ;;  %v3195_v37 = vld [vmem:[#allocation19_spill] sm:$0xff] }
 0x3c5   :  { %1539 = vmatpush.msra.mxu2 %v2507_v38  ;;  %1559 = vmatpush.msra.mxu3 %v2510_v40  ;;  %v3196_v38 = vld [vmem:[#allocation21_spill] sm:$0xff]  ;;  %v3197_v40 = vld [vmem:[#allocation22_spill] sm:$0xff] }
 0x3c6   :  { %1500 = vmatpush.msra.mxu0 %v2513_v41  ;;  %1520 = vmatpush.msra.mxu1 %v2516_v42  ;;  %v3198_v41 = vld [vmem:[#allocation24_spill] sm:$0xff]  ;;  %v3199_v42 = vld [vmem:[#allocation23_spill] sm:$0xff] }
 0x3c7   :  { %1540 = vmatpush.msra.mxu2 %v2519_v43  ;;  %1560 = vmatpush.msra.mxu3 %v2522_v47  ;;  %v3200_v43 = vld [vmem:[#allocation25_spill] sm:$0xff]  ;;  %v3201_v47 = vld [vmem:[#allocation26_spill] sm:$0xff] }
 0x3c8   :  { %1501 = vmatpush.msra.mxu0 %v2525_v55  ;;  %1521 = vmatpush.msra.mxu1 %v2528_v46  ;;  %v3202_v55 = vld [vmem:[#allocation28_spill] sm:$0xff]  ;;  %v3203_v46 = vld [vmem:[#allocation27_spill] sm:$0xff] }
 0x3c9   :  { %1541 = vmatpush.msra.mxu2 %v2531_v62  ;;  %1561 = vmatpush.msra.mxu3 %v2534_v13  ;;  %v3204_v62 = vld [vmem:[#allocation29_spill] sm:$0xff]  ;;  %v3205_v13 = vld [vmem:[#allocation30_spill] sm:$0xff] }
 0x3ca   :  { %1502 = vmatpush.msra.mxu0 %v2537_v57  ;;  %1522 = vmatpush.msra.mxu1 %v2540_v52  ;;  %v3206_v57 = vld [vmem:[#allocation31_spill] sm:$0xff]  ;;  %v3207_v52 = vld [vmem:[#allocation32_spill] sm:$0xff] }
 0x3cb   :  { %1542 = vmatpush.msra.mxu2 %v2543_v50  ;;  %1562 = vmatpush.msra.mxu3 %v2546_v0  ;;  %v3208_v50 = vld [vmem:[#allocation33_spill] sm:$0xff]  ;;  %v3209_v0 = vld [vmem:[#allocation34_spill] sm:$0xff] }
 0x3cc   :  { %1503 = vmatpush.msra.mxu0 %v2549_v49  ;;  %1523 = vmatpush.msra.mxu1 %v2552_v44  ;;  %v3210_v49 = vld [vmem:[#allocation35_spill] sm:$0xff]  ;;  %v3211_v44 = vld [vmem:[#allocation36_spill] sm:$0xff] }
 0x3cd   :  { %1543 = vmatpush.msra.mxu2 %v2555_v45  ;;  %1563 = vmatpush.msra.mxu3 %v2558_v63 }
 0x3ce   :  { %1504 = vmatpush.msra.mxu0 %v2561_v51  ;;  %1524 = vmatpush.msra.mxu1 %v2564_v26  ;;  %v3212_v51 = vld [vmem:[#allocation53_spill] sm:$0xff] }
 0x3cf   :  { %1544 = vmatpush.msra.mxu2 %v2567_v53  ;;  %1564 = vmatpush.msra.mxu3 %v2570_v48  ;;  %v3213_v53 = vld [vmem:[#allocation54_spill] sm:$0xff] }
 0x3d0   :  { %1505 = vmatpush.msra.mxu0 %v2573_v56  ;;  %1525 = vmatpush.msra.mxu1 %v2576_v61 }
 0x3d1   :  { %1545 = vmatpush.msra.mxu2 %v2579_v54  ;;  %1565 = vmatpush.msra.mxu3 %v2582_v58  ;;  %v3214_v58 = vld [vmem:[#allocation56_spill] sm:$0xff] }
 0x3d2   :  { %1506 = vmatpush.msra.mxu0 %v2585_v59  ;;  %1526 = vmatpush.msra.mxu1 %v2588_v60 }
 0x3d3   :  { %1546 = vmatpush.msra.mxu2 %v3186_v39  ;;  %1566 = vmatpush.msra.mxu3 %v3187_v29 }
 0x3d4   :  { %1507 = vmatpush.msra.mxu0 %v3188_v30  ;;  %1527 = vmatpush.msra.mxu1 %v3189_v31 }
 0x3d5   :  { %1547 = vmatpush.msra.mxu2 %v3190_v32  ;;  %1567 = vmatpush.msra.mxu3 %v3191_v33 }
 0x3d6   :  { %1508 = vmatpush.msra.mxu0 %v3192_v34  ;;  %1528 = vmatpush.msra.mxu1 %v3193_v35 }
 0x3d7   :  { %1548 = vmatpush.msra.mxu2 %v3194_v36  ;;  %1568 = vmatpush.msra.mxu3 %v3195_v37 }
 0x3d8   :  { %1509 = vmatpush.msra.mxu0 %v3196_v38  ;;  %1529 = vmatpush.msra.mxu1 %v3197_v40 }
 0x3d9   :  { %1549 = vmatpush.msra.mxu2 %v3198_v41  ;;  %1569 = vmatpush.msra.mxu3 %v3199_v42 }
 0x3da   :  { %1510 = vmatpush.msra.mxu0 %v3200_v43  ;;  %1530 = vmatpush.msra.mxu1 %v3201_v47 }
 0x3db   :  { %1550 = vmatpush.msra.mxu2 %v3202_v55  ;;  %1570 = vmatpush.msra.mxu3 %v3203_v46 }
 0x3dc   :  { %1511 = vmatpush.msra.mxu0 %v3204_v62  ;;  %1531 = vmatpush.msra.mxu1 %v3205_v13 }
 0x3dd   :  { %1551 = vmatpush.msra.mxu2 %v3206_v57  ;;  %1571 = vmatpush.msra.mxu3 %v3207_v52  ;;  %v3216_v52 = vld [vmem:[#allocation57_spill] sm:$0xff] }
 0x3de   :  { %1512 = vmatpush.msra.mxu0 %v3208_v50  ;;  %1532 = vmatpush.msra.mxu1 %v3209_v0  ;;  %v3217_v0 = vld [vmem:[#allocation58_spill] sm:$0xff] }
 0x3df   :  { %1552 = vmatpush.msra.mxu2 %v3210_v49  ;;  %1572 = vmatpush.msra.mxu3 %v3211_v44 }
 0x43b   :  { %v1202_v45 = vpop.f32.mrf.mxu0  ;;  %v1222_v63 = vpop.f32.mrf.mxu1 }
 0x43c   :  { %v1265_v26 = vadd.f32 %v1202_v45, %v3212_v51  ;;  %v1266_v48 = vadd.f32 %v1222_v63, %v3213_v53  ;;  %v3218_v51 = vld [vmem:[#allocation60_spill] sm:$0xff] }
 0x43e   :  { %v1680_v56 = vmul.f32 -1.442695, %v1265_v26  ;;  %v1681_v61 = vmul.f32 -1.442695, %v1266_v48 }
 0x440   :  { %1777 = vpow2.f32 %v1680_v56 }
 0x441   :  { %1779 = vpow2.f32 %v1681_v61 }
 0x442   :  { %v1262_v54 = vpop.f32.mrf.mxu3  ;;  %v1242_v2 = vpop.f32.mrf.mxu2 }
 0x443   :  { %v1268_v59 = vadd.f32 %v1262_v54, %v3214_v58  ;;  %v1267_v7 = vadd.f32 %v1242_v2, %v3215_v15 }
 0x445   :  { %v1682_v60 = vmul.f32 -1.442695, %v1268_v59 }
 0x446   :  { %v1778_v28 = vpop.eup %1777 }
 0x447   :  { %v1780_v9 = vpop.eup %1779  ;;  %v1272_v12 = vadd.f32 1.0, %v1778_v28  ;;  %1781 = vpow2.f32 %v1682_v60 }
 0x448   :  { %v1291_v1 = vadd.f32 1.0, %v1780_v9  ;;  %v3219_v9 = vld [vmem:[#allocation59_spill] sm:$0xff] }
 0x449   :  { %1783 = vrcp.f32 %v1272_v12  ;;  %v1284_v5 = vand.u32 2147483648, %v1272_v12  ;;  %v1282_v10 = vand.u32 2147483647, %v1272_v12  ;;  %vm1278_vm14 = vweird.f32 %v1272_v12 }
 0x44a   :  { %1785 = vrcp.f32 %v1291_v1  ;;  %v1303_v20 = vand.u32 2147483648, %v1291_v1  ;;  %v1301_v14 = vand.u32 2147483647, %v1291_v1  ;;  %vm1297_vm15 = vweird.f32 %v1291_v1 }
 0x44b   :  { %v1285_v3 = vor.u32 1.1754944e-38, %v1284_v5  ;;  %vm1283_vm2 = vcmp.eq.f32.partialorder %v1282_v10, 8.507059e+37 }
 0x44c   :  { %v1304_v29 = vor.u32 1.1754944e-38, %v1303_v20  ;;  %vm1302_vm3 = vcmp.eq.f32.partialorder %v1301_v14, 8.507059e+37 }
 0x44d   :  { %v1782_v6 = vpop.eup %1781 }
 0x44e   :  { %v1311_v11 = vadd.f32 1.0, %v1782_v6 }
 0x44f   :  { %v1784_v4 = vpop.eup %1783 }
 0x450   :  { %v1786_v24 = vpop.eup %1785  ;;  %v1274_v21 = vmul.f32 %v1784_v4, %v1272_v12  ;;  %1787 = vrcp.f32 %v1311_v11  ;;  %vm1279_vm12 = vweird.f32 %v1784_v4  ;;  %v1323_v42 = vand.u32 2147483648, %v1311_v11 }
 0x451   :  { %v1293_v16 = vmul.f32 %v1786_v24, %v1291_v1  ;;  %1789 = vtanh.f32 %v1267_v7  ;;  %vm1298_vm13 = vweird.f32 %v1786_v24  ;;  %vm1280_vm0 = vmor %vm1278_vm14, %vm1279_vm12  ;;  %vm1317_vm5 = vweird.f32 %v1311_v11 }
 0x452   :  { %v1275_v17 = vsub.f32 1.0, %v1274_v21  ;;  %vm1299_vm1 = vmor %vm1297_vm15, %vm1298_vm13  ;;  %v1321_v43 = vand.u32 2147483647, %v1311_v11  ;;  %v1324_v55 = vor.u32 1.1754944e-38, %v1323_v42 }
 0x453   :  { %v1294_v23 = vsub.f32 1.0, %v1293_v16 }
 0x454   :  { %v1276_v22 = vmul.f32 %v1784_v4, %v1275_v17  ;;  %vm1322_vm7 = vcmp.eq.f32.partialorder %v1321_v43, 8.507059e+37 }
 0x455   :  { %v1295_v19 = vmul.f32 %v1786_v24, %v1294_v23 }
 0x456   :  { %v1788_v18 = vpop.eup %1787  ;;  %v1277_v27 = vadd.f32 %v1784_v4, %v1276_v22 }
 0x457   :  { %v1296_v8 = vadd.f32 %v1786_v24, %v1295_v19  ;;  %v1313_v39 = vmul.f32 %v1788_v18, %v1311_v11  ;;  %v1790_v31 = vpop.eup %1789  ;;  %vm1318_vm4 = vweird.f32 %v1788_v18 }
 0x458   :  { %v1281_v30 = vsel %vm1280_vm0, %v1784_v4, %v1277_v27  ;;  %vm1319_vm6 = vmor %vm1317_vm5, %vm1318_vm4 }
 0x459   :  { %v1286_v32 = vsel %vm1283_vm2, %v1285_v3, %v1281_v30  ;;  %v1300_v33 = vsel %vm1299_vm1, %v1786_v24, %v1296_v8  ;;  %v1314_v34 = vsub.f32 1.0, %v1313_v39 }
 0x45a   :  { %v1305_v35 = vsel %vm1302_vm3, %v1304_v29, %v1300_v33  ;;  %v1328_v36 = vmul.f32 %v1790_v31, %v1286_v32 }
 0x45b   :  { %v1327_v37 = vmul.f32 %v1305_v35, %v2824_v25  ;;  %v1315_v38 = vmul.f32 %v1788_v18, %v1314_v34 }
 0x45d   :  { %v2899_v40 = vadd.f32 %v1328_v36, %v1327_v37  ;;  %v1316_v41 = vadd.f32 %v1788_v18, %v1315_v38 }
 0x45f   :  { %1791 = vtanh.f32 %v2899_v40  ;;  %v1320_v47 = vsel %vm1319_vm6, %v1788_v18, %v1316_v41 }
 0x460   :  { %v1325_v62 = vsel %vm1322_vm7, %v1324_v55, %v1320_v47  ;;  %v3220_v47 = vld [vmem:[#allocation61_spill] sm:$0xff] }
 0x465   :  { %v1792_v46 = vpop.eup %1791 }
 0x466   :  { %v1331_v13 = vmul.f32 %v1792_v46, %v1325_v62  ;;  %v3221_v46 = vld [vmem:[#allocation62_spill] sm:$0xff] }
 0x468   :  { %1683 = vst [vmem:[%s2928_s4 + $0x28] sm:$0xff] %v1331_v13  ;;  %1357 = vmatmul.f32.vlgmr.msrb.gmra.mxu0 %v1331_v13  ;;  %1377 = vmatmul.f32.vlgmr.msrb.gmra.mxu1 %v1331_v13 }
 0x469   :  { %1397 = vmatmul.f32.vlgmr.msrb.gmra.mxu2 %v1331_v13  ;;  %1417 = vmatmul.f32.vlgmr.msrb.gmra.mxu3 %v1331_v13 }
 0x4e5   :  { %v1358_v25 = vpop.f32.mrf.mxu0  ;;  %v1378_v57 = vpop.f32.mrf.mxu1 }
 0x4e6   :  { %v1421_v50 = vadd.f32 %v1358_v25, %v3216_v52  ;;  %v1422_v49 = vadd.f32 %v1378_v57, %v3217_v0  ;;  %v3222_v52 = vld [vmem:[#allocation64_spill] sm:$0xff] }
 0x4e8   :  { %v1684_v44 = vmul.f32 -1.442695, %v1421_v50  ;;  %v1685_v45 = vmul.f32 -1.442695, %v1422_v49 }
 0x4ea   :  { %1793 = vpow2.f32 %v1684_v44 }
 0x4eb   :  { %1795 = vpow2.f32 %v1685_v45 }
 0x4ec   :  { %v1418_v63 = vpop.f32.mrf.mxu3  ;;  %v1398_v58 = vpop.f32.mrf.mxu2 }
 0x4ed   :  { %v1424_v26 = vadd.f32 %v1418_v63, %v3218_v51  ;;  %v1423_v12 = vadd.f32 %v1398_v58, %v3219_v9 }
 0x4ef   :  { %v1686_v53 = vmul.f32 -1.442695, %v1424_v26 }
 0x4f0   :  { %v1794_v48 = vpop.eup %1793 }
 0x4f1   :  { %v1796_v56 = vpop.eup %1795  ;;  %v1428_v61 = vadd.f32 1.0, %v1794_v48  ;;  %1797 = vpow2.f32 %v1686_v53 }
 0x4f2   :  { %v1447_v54 = vadd.f32 1.0, %v1796_v56  ;;  %v3223_v56 = vld [vmem:[#allocation63_spill] sm:$0xff] }
 0x4f3   :  { %1799 = vrcp.f32 %v1428_v61  ;;  %v1440_v15 = vand.u32 2147483648, %v1428_v61  ;;  %v1438_v21 = vand.u32 2147483647, %v1428_v61  ;;  %vm1434_vm10 = vweird.f32 %v1428_v61 }
 0x4f4   :  { %1801 = vrcp.f32 %v1447_v54  ;;  %v1459_v7 = vand.u32 2147483648, %v1447_v54  ;;  %v1457_v17 = vand.u32 2147483647, %v1447_v54  ;;  %vm1453_vm11 = vweird.f32 %v1447_v54 }
 0x4f5   :  { %v1441_v20 = vor.u32 1.1754944e-38, %v1440_v15  ;;  %vm1439_vm14 = vcmp.eq.f32.partialorder %v1438_v21, 8.507059e+37 }
 0x4f6   :  { %v1460_v19 = vor.u32 1.1754944e-38, %v1459_v7  ;;  %vm1458_vm15 = vcmp.eq.f32.partialorder %v1457_v17, 8.507059e+37 }
 0x4f7   :  { %v1798_v59 = vpop.eup %1797 }
 0x4f8   :  { %v1467_v60 = vadd.f32 1.0, %v1798_v59 }
 0x4f9   :  { %v1800_v28 = vpop.eup %1799 }
 0x4fa   :  { %v1802_v1 = vpop.eup %1801  ;;  %v1430_v2 = vmul.f32 %v1800_v28, %v1428_v61  ;;  %1803 = vrcp.f32 %v1467_v60  ;;  %vm1435_vm8 = vweird.f32 %v1800_v28  ;;  %v1479_v34 = vand.u32 2147483648, %v1467_v60 }
 0x4fb   :  { %v1449_v6 = vmul.f32 %v1802_v1, %v1447_v54  ;;  %1805 = vtanh.f32 %v1423_v12  ;;  %vm1454_vm9 = vweird.f32 %v1802_v1  ;;  %vm1436_vm12 = vmor %vm1434_vm10, %vm1435_vm8  ;;  %vm1473_vm1 = vweird.f32 %v1467_v60 }
 0x4fc   :  { %v1431_v11 = vsub.f32 1.0, %v1430_v2  ;;  %vm1455_vm13 = vmor %vm1453_vm11, %vm1454_vm9  ;;  %v1477_v35 = vand.u32 2147483647, %v1467_v60  ;;  %v1480_v37 = vor.u32 1.1754944e-38, %v1479_v34 }
 0x4fd   :  { %v1450_v4 = vsub.f32 1.0, %v1449_v6 }
 0x4fe   :  { %v1432_v24 = vmul.f32 %v1800_v28, %v1431_v11  ;;  %vm1478_vm3 = vcmp.eq.f32.partialorder %v1477_v35, 8.507059e+37 }
 0x4ff   :  { %v1451_v16 = vmul.f32 %v1802_v1, %v1450_v4 }
 0x500   :  { %v1804_v23 = vpop.eup %1803  ;;  %v1433_v5 = vadd.f32 %v1800_v28, %v1432_v24 }
 0x501   :  { %v1452_v22 = vadd.f32 %v1802_v1, %v1451_v16  ;;  %v1469_v10 = vmul.f32 %v1804_v23, %v1467_v60  ;;  %v1806_v18 = vpop.eup %1805  ;;  %vm1474_vm0 = vweird.f32 %v1804_v23 }
 0x502   :  { %v1437_v14 = vsel %vm1436_vm12, %v1800_v28, %v1433_v5  ;;  %vm1475_vm2 = vmor %vm1473_vm1, %vm1474_vm0 }
 0x503   :  { %v1442_v27 = vsel %vm1439_vm14, %v1441_v20, %v1437_v14  ;;  %v1456_v3 = vsel %vm1455_vm13, %v1802_v1, %v1452_v22  ;;  %v1470_v8 = vsub.f32 1.0, %v1469_v10 }
 0x504   :  { %v1461_v39 = vsel %vm1458_vm15, %v1460_v19, %v1456_v3  ;;  %v1484_v29 = vmul.f32 %v1806_v18, %v1442_v27 }
 0x505   :  { %v1483_v30 = vmul.f32 %v1461_v39, %v2899_v40  ;;  %v1471_v31 = vmul.f32 %v1804_v23, %v1470_v8 }
 0x507   :  { %v2910_v32 = vadd.f32 %v1484_v29, %v1483_v30  ;;  %v1472_v33 = vadd.f32 %v1804_v23, %v1471_v31 }
 0x509   :  { %1807 = vtanh.f32 %v2910_v32  ;;  %v1476_v36 = vsel %vm1475_vm2, %v1804_v23, %v1472_v33 }
 0x50a   :  { %v1481_v41 = vsel %vm1478_vm3, %v1480_v37, %v1476_v36 }
 0x50f   :  { %v1808_v38 = vpop.eup %1807 }
 0x510   :  { %v1487_v42 = vmul.f32 %v1808_v38, %v1481_v41 }
 0x512   :  { %1687 = vst [vmem:[%s2928_s4 + $0x30] sm:$0xff] %v1487_v42  ;;  %1513 = vmatmul.f32.vlgmr.msra.gmra.mxu0 %v1487_v42  ;;  %1533 = vmatmul.f32.vlgmr.msra.gmra.mxu1 %v1487_v42 }
 0x513   :  { %1553 = vmatmul.f32.vlgmr.msra.gmra.mxu2 %v1487_v42  ;;  %1573 = vmatmul.f32.vlgmr.msra.gmra.mxu3 %v1487_v42 }
 0x58f   :  { %v1514_v40 = vpop.f32.mrf.mxu0  ;;  %v1534_v43 = vpop.f32.mrf.mxu1 }
 0x590   :  { %v1577_v55 = vadd.f32 %v1514_v40, %v3220_v47  ;;  %v1578_v62 = vadd.f32 %v1534_v43, %v3221_v46 }
 0x592   :  { %v1688_v13 = vmul.f32 -1.442695, %v1577_v55  ;;  %v1689_v25 = vmul.f32 -1.442695, %v1578_v62 }
 0x594   :  { %1809 = vpow2.f32 %v1688_v13 }
 0x595   :  { %1811 = vpow2.f32 %v1689_v25 }
 0x596   :  { %v1574_v57 = vpop.f32.mrf.mxu3  ;;  %v1554_v51 = vpop.f32.mrf.mxu2 }
 0x597   :  { %v1580_v50 = vadd.f32 %v1574_v57, %v3222_v52  ;;  %v1579_v61 = vadd.f32 %v1554_v51, %v3223_v56 }
 0x599   :  { %v1690_v0 = vmul.f32 -1.442695, %v1580_v50 }
 0x59a   :  { %v1810_v49 = vpop.eup %1809 }
 0x59b   :  { %v1812_v44 = vpop.eup %1811  ;;  %v1584_v45 = vadd.f32 1.0, %v1810_v49  ;;  %1813 = vpow2.f32 %v1690_v0 }
 0x59c   :  { %v1603_v63 = vadd.f32 1.0, %v1812_v44 }
 0x59d   :  { %1815 = vrcp.f32 %v1584_v45  ;;  %v1596_v9 = vand.u32 2147483648, %v1584_v45  ;;  %v1594_v2 = vand.u32 2147483647, %v1584_v45  ;;  %vm1590_vm6 = vweird.f32 %v1584_v45 }
 0x59e   :  { %1817 = vrcp.f32 %v1603_v63  ;;  %v1615_v12 = vand.u32 2147483648, %v1603_v63  ;;  %v1613_v11 = vand.u32 2147483647, %v1603_v63  ;;  %vm1609_vm7 = vweird.f32 %v1603_v63 }
 0x59f   :  { %v1597_v7 = vor.u32 1.1754944e-38, %v1596_v9  ;;  %vm1595_vm10 = vcmp.eq.f32.partialorder %v1594_v2, 8.507059e+37 }
 0x5a0   :  { %v1616_v16 = vor.u32 1.1754944e-38, %v1615_v12  ;;  %vm1614_vm11 = vcmp.eq.f32.partialorder %v1613_v11, 8.507059e+37 }
 0x5a1   :  { %v1814_v26 = vpop.eup %1813 }
 0x5a2   :  { %v1623_v53 = vadd.f32 1.0, %v1814_v26 }
 0x5a3   :  { %v1816_v48 = vpop.eup %1815 }
 0x5a4   :  { %v1818_v54 = vpop.eup %1817  ;;  %v1586_v58 = vmul.f32 %v1816_v48, %v1584_v45  ;;  %1819 = vrcp.f32 %v1623_v53  ;;  %vm1591_vm4 = vweird.f32 %v1816_v48  ;;  %v1635_v8 = vand.u32 2147483648, %v1623_v53 }
 0x5a5   :  { %v1605_v59 = vmul.f32 %v1818_v54, %v1603_v63  ;;  %1821 = vtanh.f32 %v1579_v61  ;;  %vm1610_vm5 = vweird.f32 %v1818_v54  ;;  %vm1592_vm8 = vmor %vm1590_vm6, %vm1591_vm4  ;;  %vm1629_vm13 = vweird.f32 %v1623_v53 }
 0x5a6   :  { %v1587_v60 = vsub.f32 1.0, %v1586_v58  ;;  %vm1611_vm9 = vmor %vm1609_vm7, %vm1610_vm5  ;;  %v1633_v39 = vand.u32 2147483647, %v1623_v53  ;;  %v1636_v30 = vor.u32 1.1754944e-38, %v1635_v8 }
 0x5a7   :  { %v1606_v28 = vsub.f32 1.0, %v1605_v59 }
 0x5a8   :  { %v1588_v1 = vmul.f32 %v1816_v48, %v1587_v60  ;;  %vm1634_vm15 = vcmp.eq.f32.partialorder %v1633_v39, 8.507059e+37 }
 0x5a9   :  { %v1607_v6 = vmul.f32 %v1818_v54, %v1606_v28 }
 0x5aa   :  { %v1820_v4 = vpop.eup %1819  ;;  %v1589_v15 = vadd.f32 %v1816_v48, %v1588_v1 }
 0x5ab   :  { %v1608_v24 = vadd.f32 %v1818_v54, %v1607_v6  ;;  %v1625_v21 = vmul.f32 %v1820_v4, %v1623_v53  ;;  %v1822_v23 = vpop.eup %1821  ;;  %vm1630_vm12 = vweird.f32 %v1820_v4 }
 0x5ac   :  { %v1593_v17 = vsel %vm1592_vm8, %v1816_v48, %v1589_v15  ;;  %vm1631_vm14 = vmor %vm1629_vm13, %vm1630_vm12 }
 0x5ad   :  { %v1598_v5 = vsel %vm1595_vm10, %v1597_v7, %v1593_v17  ;;  %v1612_v20 = vsel %vm1611_vm9, %v1818_v54, %v1608_v24  ;;  %v1626_v22 = vsub.f32 1.0, %v1625_v21 }
 0x5ae   :  { %v1617_v10 = vsel %vm1614_vm11, %v1616_v16, %v1612_v20  ;;  %v1640_v19 = vmul.f32 %v1822_v23, %v1598_v5 }
 0x5af   :  { %v1639_v14 = vmul.f32 %v1617_v10, %v2910_v32  ;;  %v1627_v18 = vmul.f32 %v1820_v4, %v1626_v22 }
 0x5b1   :  { %v1641_v27 = vadd.f32 %v1640_v19, %v1639_v14  ;;  %v1628_v3 = vadd.f32 %v1820_v4, %v1627_v18 }
 0x5b3   :  { %1823 = vtanh.f32 %v1641_v27  ;;  %v1632_v29 = vsel %vm1631_vm14, %v1820_v4, %v1628_v3 }
 0x5b4   :  { %v1637_v33 = vsel %vm1634_vm15, %v1636_v30, %v1632_v29 }
 0x5b9   :  { %v1824_v31 = vpop.eup %1823 }
 0x5ba   :  { %v1643_v34 = vmul.f32 %v1824_v31, %v1637_v33 }
 0x5bc   :  { %1691 = vst [vmem:[%s2928_s4 + $0x38] sm:$0xff] %v1643_v34 }
 0x5bd   :  { %1652 = vsyncpa [#allocation6], 1 }
 0x5be   :  { %1653 = vsyncpa [#allocation8], 1 }

</bundles_post_ra>
